<compile_context>
chip_gen: v5e
topology: v5e:2x2
jax: 0.10.0
libtpu: 0.0.40
codegen_flags: <defaults>
</compile_context>

<pallas_src>
import functools

import jax
import jax.numpy as jnp
from jax.experimental import pallas as pl
from jax.experimental.pallas import tpu as pltpu


# ---------------------------------------------------------------------------
# Tiling helpers
# ---------------------------------------------------------------------------
def _round_up(n, m):
    return ((n + m - 1) // m) * m


def _row_tile(n, preferred=512):
    """Row tile: multiple of 8 dividing n, or n itself if small / no divisor."""
    if n <= preferred:
        return n
    t = (preferred // 8) * 8
    while t >= 8:
        if n % t == 0:
            return t
        t -= 8
    return n


def _col_tile(n, preferred=1024):
    """Lane tile: multiple of 128 dividing n, or n itself if small / none."""
    if n <= preferred:
        return n
    t = (preferred // 128) * 128
    while t >= 128:
        if n % t == 0:
            return t
        t -= 128
    return n


def _time_block(t, preferred=16):
    """Time steps per recurrence grid iteration (bounded unroll)."""
    if t <= preferred:
        return t
    b = preferred
    while b >= 2:
        if t % b == 0:
            return b
        b -= 1
    return 1


def _batch_tile(b):
    """Split the batch into two independent shards (v7x megacore) when it is
    large enough; keep each shard a multiple of 16 sublanes for f32/bf16."""
    if b % 32 == 0:
        return b // 2
    return b


def _fc_tiles(rows, hp, v, in_bytes, out_bytes, budget=24 << 20):
    """Pick (tm, tn) for the vocab GEMM under a double-buffered VMEM budget."""
    tm = _row_tile(rows, preferred=512)
    pref = 2048
    tn = _col_tile(v, preferred=pref)
    while pref > 128:
        need = 2 * (tm * hp * in_bytes + hp * tn * in_bytes + tm * tn * out_bytes)
        if need <= budget:
            break
        pref //= 2
        tn = _col_tile(v, preferred=pref)
    return tm, tn


# ---------------------------------------------------------------------------
# Weight padding (exact): pad each PyTorch gate [i|f|g|o] to a lane-aligned H.
# Padded hidden dims stay identically 0 (sigmoid(0)*tanh(0) chain), and padded
# vocab columns / W_fc rows are zero, so the real outputs are unchanged.
# ---------------------------------------------------------------------------
def _pad_gate_cols(w, h, hp):
    if hp == h:
        return w
    pad = [(0, 0)] * (w.ndim - 1) + [(0, hp - h)]
    parts = [jnp.pad(w[..., k * h:(k + 1) * h], pad) for k in range(4)]
    return jnp.concatenate(parts, axis=-1)


def _pad_to(x, shape):
    if tuple(x.shape) == tuple(shape):
        return x
    return jnp.pad(x, [(0, s - d) for d, s in zip(x.shape, shape)])


# ---------------------------------------------------------------------------
# Fused LSTM kernel: per time block, gates_x = x @ W_ih + bias (one GEMM),
# then an unrolled serial loop doing only h @ W_hh + gate math.
# Gate order matches PyTorch: [i, f, g, o].
# ---------------------------------------------------------------------------
def _lstm_fused_kernel(x_ref, wih_ref, whh_ref, b_ref, h_out_ref, h_ref, c_ref,
                       *, hidden, t_blk, b_tile, compute_dtype):
    @pl.when(pl.program_id(1) == 0)          # new batch tile -> reset carries
    def _():
        h_ref[...] = jnp.zeros_like(h_ref)
        c_ref[...] = jnp.zeros_like(c_ref)

    hp = hidden
    e = x_ref.shape[2]
    # Block input projection (time-invariant half of the gate matmul).
    x_flat = x_ref[...].reshape(t_blk * b_tile, e)
    gx = (jnp.dot(x_flat, wih_ref[...], preferred_element_type=jnp.float32)
          + b_ref[...])                      # (t_blk*b_tile, 4Hp) f32
    whh = whh_ref[...]                       # hoisted out of the time loop

    # Bounded static unroll; all slices below are static and lane-aligned.
    for t in range(t_blk):
        h_prev = h_ref[...]
        c_prev = c_ref[...]
        gates = (gx[t * b_tile:(t + 1) * b_tile]
                 + jnp.dot(h_prev.astype(compute_dtype), whh,
                           preferred_element_type=jnp.float32))
        i_g = jax.nn.sigmoid(gates[:, 0:hp])
        f_g = jax.nn.sigmoid(gates[:, hp:2 * hp])
        g_g = jnp.tanh(gates[:, 2 * hp:3 * hp])
        o_g = jax.nn.sigmoid(gates[:, 3 * hp:4 * hp])

        c_new = f_g * c_prev + i_g * g_g
        h_new = o_g * jnp.tanh(c_new)

        c_ref[...] = c_new
        h_ref[...] = h_new
        # Dense (lane+sublane contiguous) store: first-axis index, time-major.
        h_out_ref[t] = h_new.astype(h_out_ref.dtype)


def lstm_fused(x_seq, w_ih, w_hh, bias, *, compute_dtype):
    """x_seq: (T, B, E) compute dtype, weights gate-padded to Hp.
       Returns h_seq: (T, B, Hp) in compute dtype."""
    T, B, E = x_seq.shape
    Hp = w_hh.shape[0]
    G = w_hh.shape[1]                        # 4 * Hp
    t_blk = _time_block(T)
    b_tile = _batch_tile(B)
    kernel = functools.partial(_lstm_fused_kernel, hidden=Hp, t_blk=t_blk,
                               b_tile=b_tile, compute_dtype=compute_dtype)
    return pl.pallas_call(
        kernel,
        out_shape=jax.ShapeDtypeStruct((T, B, Hp), compute_dtype),
        grid_spec=pltpu.PrefetchScalarGridSpec(
            num_scalar_prefetch=0,
            grid=(B // b_tile, T // t_blk),
            in_specs=[
                pl.BlockSpec((t_blk, b_tile, E), lambda b, t: (t, b, 0)),  # x
                pl.BlockSpec((E, G), lambda b, t: (0, 0)),                 # W_ih
                pl.BlockSpec((Hp, G), lambda b, t: (0, 0)),                # W_hh
                pl.BlockSpec((1, G), lambda b, t: (0, 0)),                 # bias
            ],
            out_specs=pl.BlockSpec((t_blk, b_tile, Hp), lambda b, t: (t, b, 0)),
            scratch_shapes=[
                pltpu.VMEM((b_tile, Hp), jnp.float32),   # hidden carry (f32)
                pltpu.VMEM((b_tile, Hp), jnp.float32),   # cell carry   (f32)
            ],
        ),
        compiler_params=pltpu.CompilerParams(
            dimension_semantics=("parallel", "arbitrary")),  # batch || , time serial
    )(x_seq, w_ih, w_hh, bias)


# ---------------------------------------------------------------------------
# Vocab projection: logits = h @ W_fc + b_fc (fully parallel 2-D GEMM tiling)
# ---------------------------------------------------------------------------
def _fc_kernel(h_ref, wfc_ref, b_ref, out_ref):
    acc = (jnp.dot(h_ref[...], wfc_ref[...], preferred_element_type=jnp.float32)
           + b_ref[...])
    out_ref[...] = acc.astype(out_ref.dtype)


def fc_projection(h_flat, w_fc, b_fc, *, out_dtype):
    """h_flat: (R, Hp) compute dtype -> logits (R, Vp) in out_dtype."""
    R, Hp = h_flat.shape
    V = w_fc.shape[1]
    tm, tn = _fc_tiles(R, Hp, V,
                       in_bytes=jnp.dtype(h_flat.dtype).itemsize,
                       out_bytes=jnp.dtype(out_dtype).itemsize)
    return pl.pallas_call(
        _fc_kernel,
        out_shape=jax.ShapeDtypeStruct((R, V), out_dtype),
        grid_spec=pltpu.PrefetchScalarGridSpec(
            num_scalar_prefetch=0,
            grid=(R // tm, V // tn),
            in_specs=[
                pl.BlockSpec((tm, Hp), lambda i, j: (i, 0)),   # h rows
                pl.BlockSpec((Hp, tn), lambda i, j: (0, j)),   # W_fc vocab tile
                pl.BlockSpec((1, tn), lambda i, j: (0, j)),    # b_fc vocab tile
            ],
            out_specs=pl.BlockSpec((tm, tn), lambda i, j: (i, j)),
        ),
        compiler_params=pltpu.CompilerParams(
            dimension_semantics=("parallel", "parallel"),
            vmem_limit_bytes=32 << 20),
    )(h_flat, w_fc, b_fc)


# ---------------------------------------------------------------------------
# Full forward (mirrors DecoderRNN.forward)
# ---------------------------------------------------------------------------
def decoder_rnn_forward(params, features, captions, *,
                        compute_dtype=jnp.float32, logits_dtype=jnp.float32):
    """features: (B, E) f32, captions: (B, L) int32 -> logits (B, L, V)."""
    embed_w, w_ih, w_hh, bias, w_fc, b_fc = params
    B, E = features.shape
    H = w_hh.shape[0]
    V = w_fc.shape[1]
    Hp = _round_up(H, 128)
    Vp = _round_up(V, 128)

    # Plain-JAX glue: embedding gather + concat of the image feature step.
    cap = captions[:, :-1]                                    # (B, L-1)
    cap_emb = jnp.take(embed_w, cap, axis=0)                  # (B, L-1, E)
    lstm_in = jnp.concatenate([features[:, None, :], cap_emb], axis=1)  # (B,T,E)
    T = lstm_in.shape[1]

    # Lane-aligned (exact) weight padding; at production you would pad once.
    w_ih_p = _pad_gate_cols(w_ih, H, Hp)                      # (E, 4Hp)
    w_hh_p = _pad_to(_pad_gate_cols(w_hh, H, Hp), (Hp, 4 * Hp))
    bias_p = _pad_gate_cols(bias, H, Hp)                      # (1, 4Hp) f32
    w_fc_p = _pad_to(w_fc, (Hp, Vp))
    b_fc_p = _pad_to(b_fc, (1, Vp))                           # f32

    # Time-major inputs (small tensor); the big logits are never transposed.
    x_seq = jnp.transpose(lstm_in, (1, 0, 2)).astype(compute_dtype)  # (T,B,E)

    # Fused input projection + serial recurrence -> (T, B, Hp), dense stores.
    h_seq = lstm_fused(x_seq, w_ih_p.astype(compute_dtype),
                       w_hh_p.astype(compute_dtype), bias_p,
                       compute_dtype=compute_dtype)

    # Cheap layout fix of the small h tensor only, then the big parallel GEMM.
    h_flat = jnp.transpose(h_seq, (1, 0, 2)).reshape(B * T, Hp)
    logits = fc_projection(h_flat, w_fc_p.astype(compute_dtype), b_fc_p,
                           out_dtype=logits_dtype)
    logits = logits.reshape(B, T, Vp)
    if Vp != V:
        logits = logits[:, :, :V]
    return logits


# ---------------------------------------------------------------------------
# Pure-JAX reference (lax.scan LSTM) for correctness checking.
# ---------------------------------------------------------------------------
def _reference_forward(params, features, captions):
    embed_w, w_ih, w_hh, bias, w_fc, b_fc = params
    captions = captions[:, :-1]
    cap_emb = jnp.take(embed_w, captions, axis=0)
    lstm_in = jnp.concatenate([features[:, None, :], cap_emb], axis=1)
    x_seq = jnp.transpose(lstm_in, (1, 0, 2))  # (T, B, E)
    B = features.shape[0]
    H = w_hh.shape[0]

    def step(carry, x):
        h, c = carry
        gates = x @ w_ih + h @ w_hh + bias[0]
        i = jax.nn.sigmoid(gates[:, 0:H])
        f = jax.nn.sigmoid(gates[:, H:2 * H])
        g = jnp.tanh(gates[:, 2 * H:3 * H])
        o = jax.nn.sigmoid(gates[:, 3 * H:4 * H])
        c = f * c + i * g
        h = o * jnp.tanh(c)
        return (h, c), h @ w_fc + b_fc[0]

    init = (jnp.zeros((B, H), jnp.float32), jnp.zeros((B, H), jnp.float32))
    _, out = jax.lax.scan(step, init, x_seq)
    return jnp.transpose(out, (1, 0, 2))


def init_params(key, embed_size, hidden_size, vocab_size):
    """Deterministic synthetic parameters (uniform, PyTorch-like scale)."""
    ks = jax.random.split(key, 8)
    s = 1.0 / jnp.sqrt(hidden_size)
    embed_w = jax.random.normal(ks[0], (vocab_size, embed_size), jnp.float32)
    w_ih = jax.random.uniform(ks[1], (embed_size, 4 * hidden_size),
                              jnp.float32, -s, s)
    w_hh = jax.random.uniform(ks[2], (hidden_size, 4 * hidden_size),
                              jnp.float32, -s, s)
    b_ih = jax.random.uniform(ks[3], (4 * hidden_size,), jnp.float32, -s, s)
    b_hh = jax.random.uniform(ks[4], (4 * hidden_size,), jnp.float32, -s, s)
    bias = (b_ih + b_hh)[None, :]                             # (1, 4H)
    w_fc = jax.random.uniform(ks[5], (hidden_size, vocab_size),
                              jnp.float32, -s, s)
    b_fc = jax.random.uniform(ks[6], (vocab_size,), jnp.float32,
                              -s, s)[None, :]                 # (1, V)
    return (embed_w, w_ih, w_hh, bias, w_fc, b_fc)


if __name__ == "__main__":
    EMBED_SIZE = 32
    HIDDEN_SIZE = 32
    VOCAB_SIZE = 128
    BATCH = 8
    CAP_LEN = 8   # captions length L -> LSTM sequence length T = L

    key = jax.random.PRNGKey(0)
    k_par, k_feat, k_cap = jax.random.split(key, 3)

    params = init_params(k_par, EMBED_SIZE, HIDDEN_SIZE, VOCAB_SIZE)
    features = jax.random.normal(k_feat, (BATCH, EMBED_SIZE), jnp.float32)
    captions = jax.random.randint(k_cap, (BATCH, CAP_LEN), 0, VOCAB_SIZE,
                                  dtype=jnp.int32)

    ref = _reference_forward(params, features, captions)

    # f32 path: close match against the lax.scan reference.
    fwd_f32 = jax.jit(functools.partial(decoder_rnn_forward,
                                        compute_dtype=jnp.float32,
                                        logits_dtype=jnp.float32))
    out = jax.block_until_ready(fwd_f32(params, features, captions))
    assert out.shape == (BATCH, CAP_LEN, VOCAB_SIZE), out.shape
    assert jnp.allclose(out, ref, atol=1e-3, rtol=1e-3), (
        float(jnp.max(jnp.abs(out - ref))))

    # bf16 MXU path (f32 accumulation, f32 carries, bf16 logits): loose check.
    fwd_bf16 = jax.jit(functools.partial(decoder_rnn_forward,
                                         compute_dtype=jnp.bfloat16,
                                         logits_dtype=jnp.bfloat16))
    out_bf16 = jax.block_until_ready(fwd_bf16(params, features, captions))
    assert out_bf16.shape == (BATCH, CAP_LEN, VOCAB_SIZE), out_bf16.shape
    assert jnp.allclose(out_bf16.astype(jnp.float32), ref,
                        atol=2e-1, rtol=2e-1), (
        float(jnp.max(jnp.abs(out_bf16.astype(jnp.float32) - ref))))

    print("KERNEL_OK")
</pallas_src>

<mosaic_0001>
module attributes {stable_mosaic.version = 11 : i64} {
  func.func @_lstm_fused_kernel(%arg0: i32, %arg1: i32, %arg2: memref<8x8x32xf32, #tpu.memory_space<vmem>>, %arg3: memref<32x512xf32, #tpu.memory_space<vmem>>, %arg4: memref<128x512xf32, #tpu.memory_space<vmem>>, %arg5: memref<1x512xf32, #tpu.memory_space<vmem>>, %arg6: memref<8x8x128xf32, #tpu.memory_space<vmem>>, %arg7: memref<8x128xf32, #tpu.memory_space<vmem>>, %arg8: memref<8x128xf32, #tpu.memory_space<vmem>>) attributes {dimension_semantics = [#tpu.dimension_semantics<parallel>, #tpu.dimension_semantics<arbitrary>], iteration_bounds = array<i64: 1, 1>, scalar_prefetch = 0 : i64, scratch_operands = 2 : i64, tpu.core_type = #tpu.core_type<tc>, window_params = [{transform_indices = @transform_0, window_bounds = array<i64: 8, 8, 32>}, {pipeline_mode = #tpu.pipeline_mode<synchronous>, transform_indices = @transform_1, window_bounds = array<i64: 32, 512>}, {pipeline_mode = #tpu.pipeline_mode<synchronous>, transform_indices = @transform_2, window_bounds = array<i64: 128, 512>}, {pipeline_mode = #tpu.pipeline_mode<synchronous>, transform_indices = @transform_3, window_bounds = array<i64: 1, 512>}, {transform_indices = @transform_4, window_bounds = array<i64: 8, 8, 128>}]} {
    %c0_i32 = arith.constant 0 : i32
    %0 = arith.cmpi eq, %arg1, %c0_i32 : i32
    %1 = arith.extui %0 : i1 to i32
    %c0_i32_0 = arith.constant 0 : i32
    %2 = arith.cmpi ne, %1, %c0_i32_0 : i32
    scf.if %2 {
      %cst_122 = arith.constant 0.000000e+00 : f32
      %291 = vector.broadcast %cst_122 : f32 to vector<8x128xf32>
      %c0_123 = arith.constant 0 : index
      %c0_124 = arith.constant 0 : index
      %292 = vector.load %arg7[%c0_123, %c0_124] : memref<8x128xf32, #tpu.memory_space<vmem>>, vector<8x128xf32>
      tpu.vector_store %arg7[%c0_123, %c0_124], %291 {strides = array<i32>} : memref<8x128xf32, #tpu.memory_space<vmem>>, vector<8x128xf32>,
      %cst_125 = arith.constant 0.000000e+00 : f32
      %293 = vector.broadcast %cst_125 : f32 to vector<8x128xf32>
      %c0_126 = arith.constant 0 : index
      %c0_127 = arith.constant 0 : index
      %294 = vector.load %arg8[%c0_126, %c0_127] : memref<8x128xf32, #tpu.memory_space<vmem>>, vector<8x128xf32>
      tpu.vector_store %arg8[%c0_126, %c0_127], %293 {strides = array<i32>} : memref<8x128xf32, #tpu.memory_space<vmem>>, vector<8x128xf32>,
    } else {
    }
    %c0 = arith.constant 0 : index
    %c0_1 = arith.constant 0 : index
    %c0_2 = arith.constant 0 : index
    %3 = vector.load %arg2[%c0, %c0_1, %c0_2] : memref<8x8x32xf32, #tpu.memory_space<vmem>>, vector<8x8x32xf32>
    %4 = vector.shape_cast %3 : vector<8x8x32xf32> to vector<64x32xf32>
    %c0_3 = arith.constant 0 : index
    %c0_4 = arith.constant 0 : index
    %5 = vector.load %arg3[%c0_3, %c0_4] : memref<32x512xf32, #tpu.memory_space<vmem>>, vector<32x512xf32>
    %cst = arith.constant dense<0.000000e+00> : vector<64x512xf32>
    %6 = tpu.matmul %4, %5, %cst {dimension_numbers = #tpu.dot_dimension_numbers<[1], [0], [0], [1], [0, 0, 1, 1], [], []>} : vector<64x32xf32>, vector<32x512xf32>, vector<64x512xf32> -> vector<64x512xf32>
    %c0_5 = arith.constant 0 : index
    %c0_6 = arith.constant 0 : index
    %7 = vector.load %arg5[%c0_5, %c0_6] : memref<1x512xf32, #tpu.memory_space<vmem>>, vector<1x512xf32>
    %8 = vector.broadcast %7 : vector<1x512xf32> to vector<64x512xf32>
    %9 = arith.addf %6, %8 : vector<64x512xf32>
    %c0_7 = arith.constant 0 : index
    %c0_8 = arith.constant 0 : index
    %10 = vector.load %arg4[%c0_7, %c0_8] : memref<128x512xf32, #tpu.memory_space<vmem>>, vector<128x512xf32>
    %c0_9 = arith.constant 0 : index
    %c0_10 = arith.constant 0 : index
    %11 = vector.load %arg7[%c0_9, %c0_10] : memref<8x128xf32, #tpu.memory_space<vmem>>, vector<8x128xf32>
    %c0_11 = arith.constant 0 : index
    %c0_12 = arith.constant 0 : index
    %12 = vector.load %arg8[%c0_11, %c0_12] : memref<8x128xf32, #tpu.memory_space<vmem>>, vector<8x128xf32>
    %13 = vector.extract_strided_slice %9 {offsets = [0, 0], sizes = [8, 512], strides = [1, 1]} : vector<64x512xf32> to vector<8x512xf32>
    %cst_13 = arith.constant dense<0.000000e+00> : vector<8x512xf32>
    %14 = tpu.matmul %11, %10, %cst_13 {dimension_numbers = #tpu.dot_dimension_numbers<[1], [0], [0], [1], [0, 0, 1, 1], [], []>} : vector<8x128xf32>, vector<128x512xf32>, vector<8x512xf32> -> vector<8x512xf32>
    %15 = arith.addf %13, %14 : vector<8x512xf32>
    %16 = vector.extract_strided_slice %15 {offsets = [0, 0], sizes = [8, 128], strides = [1, 1]} : vector<8x512xf32> to vector<8x128xf32>
    %17 = arith.negf %16 : vector<8x128xf32>
    %18 = math.exp %17 : vector<8x128xf32>
    %cst_14 = arith.constant 1.000000e+00 : f32
    %19 = vector.broadcast %cst_14 : f32 to vector<8x128xf32>
    %20 = arith.addf %19, %18 : vector<8x128xf32>
    %21 = arith.divf %19, %20 : vector<8x128xf32>
    %22 = vector.extract_strided_slice %15 {offsets = [0, 128], sizes = [8, 128], strides = [1, 1]} : vector<8x512xf32> to vector<8x128xf32>
    %23 = arith.negf %22 : vector<8x128xf32>
    %24 = math.exp %23 : vector<8x128xf32>
    %cst_15 = arith.constant 1.000000e+00 : f32
    %25 = vector.broadcast %cst_15 : f32 to vector<8x128xf32>
    %26 = arith.addf %25, %24 : vector<8x128xf32>
    %27 = arith.divf %25, %26 : vector<8x128xf32>
    %28 = vector.extract_strided_slice %15 {offsets = [0, 256], sizes = [8, 128], strides = [1, 1]} : vector<8x512xf32> to vector<8x128xf32>
    %29 = math.tanh %28 : vector<8x128xf32>
    %30 = vector.extract_strided_slice %15 {offsets = [0, 384], sizes = [8, 128], strides = [1, 1]} : vector<8x512xf32> to vector<8x128xf32>
    %31 = arith.negf %30 : vector<8x128xf32>
    %32 = math.exp %31 : vector<8x128xf32>
    %cst_16 = arith.constant 1.000000e+00 : f32
    %33 = vector.broadcast %cst_16 : f32 to vector<8x128xf32>
    %34 = arith.addf %33, %32 : vector<8x128xf32>
    %35 = arith.divf %33, %34 : vector<8x128xf32>
    %36 = arith.mulf %27, %12 : vector<8x128xf32>
    %37 = arith.mulf %21, %29 : vector<8x128xf32>
    %38 = arith.addf %36, %37 : vector<8x128xf32>
    %39 = math.tanh %38 : vector<8x128xf32>
    %40 = arith.mulf %35, %39 : vector<8x128xf32>
    %c0_17 = arith.constant 0 : index
    %c0_18 = arith.constant 0 : index
    %41 = vector.load %arg8[%c0_17, %c0_18] : memref<8x128xf32, #tpu.memory_space<vmem>>, vector<8x128xf32>
    tpu.vector_store %arg8[%c0_17, %c0_18], %38 {strides = array<i32>} : memref<8x128xf32, #tpu.memory_space<vmem>>, vector<8x128xf32>,
    %c0_19 = arith.constant 0 : index
    %c0_20 = arith.constant 0 : index
    %42 = vector.load %arg7[%c0_19, %c0_20] : memref<8x128xf32, #tpu.memory_space<vmem>>, vector<8x128xf32>
    tpu.vector_store %arg7[%c0_19, %c0_20], %40 {strides = array<i32>} : memref<8x128xf32, #tpu.memory_space<vmem>>, vector<8x128xf32>,
    %c0_21 = arith.constant 0 : index
    %c0_22 = arith.constant 0 : index
    %c0_23 = arith.constant 0 : index
    %43 = vector.load %arg6[%c0_21, %c0_22, %c0_23] : memref<8x8x128xf32, #tpu.memory_space<vmem>>, vector<1x8x128xf32>
    %44 = vector.shape_cast %43 : vector<1x8x128xf32> to vector<8x128xf32>
    %45 = vector.shape_cast %40 : vector<8x128xf32> to vector<1x8x128xf32>
    tpu.vector_store %arg6[%c0_21, %c0_22, %c0_23], %45 {strides = array<i32>} : memref<8x8x128xf32, #tpu.memory_space<vmem>>, vector<1x8x128xf32>,
    %c0_24 = arith.constant 0 : index
    %c0_25 = arith.constant 0 : index
    %46 = vector.load %arg7[%c0_24, %c0_25] : memref<8x128xf32, #tpu.memory_space<vmem>>, vector<8x128xf32>
    %c0_26 = arith.constant 0 : index
    %c0_27 = arith.constant 0 : index
    %47 = vector.load %arg8[%c0_26, %c0_27] : memref<8x128xf32, #tpu.memory_space<vmem>>, vector<8x128xf32>
    %48 = vector.extract_strided_slice %9 {offsets = [8, 0], sizes = [8, 512], strides = [1, 1]} : vector<64x512xf32> to vector<8x512xf32>
    %cst_28 = arith.constant dense<0.000000e+00> : vector<8x512xf32>
    %49 = tpu.matmul %46, %10, %cst_28 {dimension_numbers = #tpu.dot_dimension_numbers<[1], [0], [0], [1], [0, 0, 1, 1], [], []>} : vector<8x128xf32>, vector<128x512xf32>, vector<8x512xf32> -> vector<8x512xf32>
    %50 = arith.addf %48, %49 : vector<8x512xf32>
    %51 = vector.extract_strided_slice %50 {offsets = [0, 0], sizes = [8, 128], strides = [1, 1]} : vector<8x512xf32> to vector<8x128xf32>
    %52 = arith.negf %51 : vector<8x128xf32>
    %53 = math.exp %52 : vector<8x128xf32>
    %cst_29 = arith.constant 1.000000e+00 : f32
    %54 = vector.broadcast %cst_29 : f32 to vector<8x128xf32>
    %55 = arith.addf %54, %53 : vector<8x128xf32>
    %56 = arith.divf %54, %55 : vector<8x128xf32>
    %57 = vector.extract_strided_slice %50 {offsets = [0, 128], sizes = [8, 128], strides = [1, 1]} : vector<8x512xf32> to vector<8x128xf32>
    %58 = arith.negf %57 : vector<8x128xf32>
    %59 = math.exp %58 : vector<8x128xf32>
    %cst_30 = arith.constant 1.000000e+00 : f32
    %60 = vector.broadcast %cst_30 : f32 to vector<8x128xf32>
    %61 = arith.addf %60, %59 : vector<8x128xf32>
    %62 = arith.divf %60, %61 : vector<8x128xf32>
    %63 = vector.extract_strided_slice %50 {offsets = [0, 256], sizes = [8, 128], strides = [1, 1]} : vector<8x512xf32> to vector<8x128xf32>
    %64 = math.tanh %63 : vector<8x128xf32>
    %65 = vector.extract_strided_slice %50 {offsets = [0, 384], sizes = [8, 128], strides = [1, 1]} : vector<8x512xf32> to vector<8x128xf32>
    %66 = arith.negf %65 : vector<8x128xf32>
    %67 = math.exp %66 : vector<8x128xf32>
    %cst_31 = arith.constant 1.000000e+00 : f32
    %68 = vector.broadcast %cst_31 : f32 to vector<8x128xf32>
    %69 = arith.addf %68, %67 : vector<8x128xf32>
    %70 = arith.divf %68, %69 : vector<8x128xf32>
    %71 = arith.mulf %62, %47 : vector<8x128xf32>
    %72 = arith.mulf %56, %64 : vector<8x128xf32>
    %73 = arith.addf %71, %72 : vector<8x128xf32>
    %74 = math.tanh %73 : vector<8x128xf32>
    %75 = arith.mulf %70, %74 : vector<8x128xf32>
    %c0_32 = arith.constant 0 : index
    %c0_33 = arith.constant 0 : index
    %76 = vector.load %arg8[%c0_32, %c0_33] : memref<8x128xf32, #tpu.memory_space<vmem>>, vector<8x128xf32>
    tpu.vector_store %arg8[%c0_32, %c0_33], %73 {strides = array<i32>} : memref<8x128xf32, #tpu.memory_space<vmem>>, vector<8x128xf32>,
    %c0_34 = arith.constant 0 : index
    %c0_35 = arith.constant 0 : index
    %77 = vector.load %arg7[%c0_34, %c0_35] : memref<8x128xf32, #tpu.memory_space<vmem>>, vector<8x128xf32>
    tpu.vector_store %arg7[%c0_34, %c0_35], %75 {strides = array<i32>} : memref<8x128xf32, #tpu.memory_space<vmem>>, vector<8x128xf32>,
    %c1 = arith.constant 1 : index
    %c0_36 = arith.constant 0 : index
    %c0_37 = arith.constant 0 : index
    %78 = vector.load %arg6[%c1, %c0_36, %c0_37] : memref<8x8x128xf32, #tpu.memory_space<vmem>>, vector<1x8x128xf32>
    %79 = vector.shape_cast %78 : vector<1x8x128xf32> to vector<8x128xf32>
    %80 = vector.shape_cast %75 : vector<8x128xf32> to vector<1x8x128xf32>
    tpu.vector_store %arg6[%c1, %c0_36, %c0_37], %80 {strides = array<i32>} : memref<8x8x128xf32, #tpu.memory_space<vmem>>, vector<1x8x128xf32>,
    %c0_38 = arith.constant 0 : index
    %c0_39 = arith.constant 0 : index
    %81 = vector.load %arg7[%c0_38, %c0_39] : memref<8x128xf32, #tpu.memory_space<vmem>>, vector<8x128xf32>
    %c0_40 = arith.constant 0 : index
    %c0_41 = arith.constant 0 : index
    %82 = vector.load %arg8[%c0_40, %c0_41] : memref<8x128xf32, #tpu.memory_space<vmem>>, vector<8x128xf32>
    %83 = vector.extract_strided_slice %9 {offsets = [16, 0], sizes = [8, 512], strides = [1, 1]} : vector<64x512xf32> to vector<8x512xf32>
    %cst_42 = arith.constant dense<0.000000e+00> : vector<8x512xf32>
    %84 = tpu.matmul %81, %10, %cst_42 {dimension_numbers = #tpu.dot_dimension_numbers<[1], [0], [0], [1], [0, 0, 1, 1], [], []>} : vector<8x128xf32>, vector<128x512xf32>, vector<8x512xf32> -> vector<8x512xf32>
    %85 = arith.addf %83, %84 : vector<8x512xf32>
    %86 = vector.extract_strided_slice %85 {offsets = [0, 0], sizes = [8, 128], strides = [1, 1]} : vector<8x512xf32> to vector<8x128xf32>
    %87 = arith.negf %86 : vector<8x128xf32>
    %88 = math.exp %87 : vector<8x128xf32>
    %cst_43 = arith.constant 1.000000e+00 : f32
    %89 = vector.broadcast %cst_43 : f32 to vector<8x128xf32>
    %90 = arith.addf %89, %88 : vector<8x128xf32>
    %91 = arith.divf %89, %90 : vector<8x128xf32>
    %92 = vector.extract_strided_slice %85 {offsets = [0, 128], sizes = [8, 128], strides = [1, 1]} : vector<8x512xf32> to vector<8x128xf32>
    %93 = arith.negf %92 : vector<8x128xf32>
    %94 = math.exp %93 : vector<8x128xf32>
    %cst_44 = arith.constant 1.000000e+00 : f32
    %95 = vector.broadcast %cst_44 : f32 to vector<8x128xf32>
    %96 = arith.addf %95, %94 : vector<8x128xf32>
    %97 = arith.divf %95, %96 : vector<8x128xf32>
    %98 = vector.extract_strided_slice %85 {offsets = [0, 256], sizes = [8, 128], strides = [1, 1]} : vector<8x512xf32> to vector<8x128xf32>
    %99 = math.tanh %98 : vector<8x128xf32>
    %100 = vector.extract_strided_slice %85 {offsets = [0, 384], sizes = [8, 128], strides = [1, 1]} : vector<8x512xf32> to vector<8x128xf32>
    %101 = arith.negf %100 : vector<8x128xf32>
    %102 = math.exp %101 : vector<8x128xf32>
    %cst_45 = arith.constant 1.000000e+00 : f32
    %103 = vector.broadcast %cst_45 : f32 to vector<8x128xf32>
    %104 = arith.addf %103, %102 : vector<8x128xf32>
    %105 = arith.divf %103, %104 : vector<8x128xf32>
    %106 = arith.mulf %97, %82 : vector<8x128xf32>
    %107 = arith.mulf %91, %99 : vector<8x128xf32>
    %108 = arith.addf %106, %107 : vector<8x128xf32>
    %109 = math.tanh %108 : vector<8x128xf32>
    %110 = arith.mulf %105, %109 : vector<8x128xf32>
    %c0_46 = arith.constant 0 : index
    %c0_47 = arith.constant 0 : index
    %111 = vector.load %arg8[%c0_46, %c0_47] : memref<8x128xf32, #tpu.memory_space<vmem>>, vector<8x128xf32>
    tpu.vector_store %arg8[%c0_46, %c0_47], %108 {strides = array<i32>} : memref<8x128xf32, #tpu.memory_space<vmem>>, vector<8x128xf32>,
    %c0_48 = arith.constant 0 : index
    %c0_49 = arith.constant 0 : index
    %112 = vector.load %arg7[%c0_48, %c0_49] : memref<8x128xf32, #tpu.memory_space<vmem>>, vector<8x128xf32>
    tpu.vector_store %arg7[%c0_48, %c0_49], %110 {strides = array<i32>} : memref<8x128xf32, #tpu.memory_space<vmem>>, vector<8x128xf32>,
    %c2 = arith.constant 2 : index
    %c0_50 = arith.constant 0 : index
    %c0_51 = arith.constant 0 : index
    %113 = vector.load %arg6[%c2, %c0_50, %c0_51] : memref<8x8x128xf32, #tpu.memory_space<vmem>>, vector<1x8x128xf32>
    %114 = vector.shape_cast %113 : vector<1x8x128xf32> to vector<8x128xf32>
    %115 = vector.shape_cast %110 : vector<8x128xf32> to vector<1x8x128xf32>
    tpu.vector_store %arg6[%c2, %c0_50, %c0_51], %115 {strides = array<i32>} : memref<8x8x128xf32, #tpu.memory_space<vmem>>, vector<1x8x128xf32>,
    %c0_52 = arith.constant 0 : index
    %c0_53 = arith.constant 0 : index
    %116 = vector.load %arg7[%c0_52, %c0_53] : memref<8x128xf32, #tpu.memory_space<vmem>>, vector<8x128xf32>
    %c0_54 = arith.constant 0 : index
    %c0_55 = arith.constant 0 : index
    %117 = vector.load %arg8[%c0_54, %c0_55] : memref<8x128xf32, #tpu.memory_space<vmem>>, vector<8x128xf32>
    %118 = vector.extract_strided_slice %9 {offsets = [24, 0], sizes = [8, 512], strides = [1, 1]} : vector<64x512xf32> to vector<8x512xf32>
    %cst_56 = arith.constant dense<0.000000e+00> : vector<8x512xf32>
    %119 = tpu.matmul %116, %10, %cst_56 {dimension_numbers = #tpu.dot_dimension_numbers<[1], [0], [0], [1], [0, 0, 1, 1], [], []>} : vector<8x128xf32>, vector<128x512xf32>, vector<8x512xf32> -> vector<8x512xf32>
    %120 = arith.addf %118, %119 : vector<8x512xf32>
    %121 = vector.extract_strided_slice %120 {offsets = [0, 0], sizes = [8, 128], strides = [1, 1]} : vector<8x512xf32> to vector<8x128xf32>
    %122 = arith.negf %121 : vector<8x128xf32>
    %123 = math.exp %122 : vector<8x128xf32>
    %cst_57 = arith.constant 1.000000e+00 : f32
    %124 = vector.broadcast %cst_57 : f32 to vector<8x128xf32>
    %125 = arith.addf %124, %123 : vector<8x128xf32>
    %126 = arith.divf %124, %125 : vector<8x128xf32>
    %127 = vector.extract_strided_slice %120 {offsets = [0, 128], sizes = [8, 128], strides = [1, 1]} : vector<8x512xf32> to vector<8x128xf32>
    %128 = arith.negf %127 : vector<8x128xf32>
    %129 = math.exp %128 : vector<8x128xf32>
    %cst_58 = arith.constant 1.000000e+00 : f32
    %130 = vector.broadcast %cst_58 : f32 to vector<8x128xf32>
    %131 = arith.addf %130, %129 : vector<8x128xf32>
    %132 = arith.divf %130, %131 : vector<8x128xf32>
    %133 = vector.extract_strided_slice %120 {offsets = [0, 256], sizes = [8, 128], strides = [1, 1]} : vector<8x512xf32> to vector<8x128xf32>
    %134 = math.tanh %133 : vector<8x128xf32>
    %135 = vector.extract_strided_slice %120 {offsets = [0, 384], sizes = [8, 128], strides = [1, 1]} : vector<8x512xf32> to vector<8x128xf32>
    %136 = arith.negf %135 : vector<8x128xf32>
    %137 = math.exp %136 : vector<8x128xf32>
    %cst_59 = arith.constant 1.000000e+00 : f32
    %138 = vector.broadcast %cst_59 : f32 to vector<8x128xf32>
    %139 = arith.addf %138, %137 : vector<8x128xf32>
    %140 = arith.divf %138, %139 : vector<8x128xf32>
    %141 = arith.mulf %132, %117 : vector<8x128xf32>
    %142 = arith.mulf %126, %134 : vector<8x128xf32>
    %143 = arith.addf %141, %142 : vector<8x128xf32>
    %144 = math.tanh %143 : vector<8x128xf32>
    %145 = arith.mulf %140, %144 : vector<8x128xf32>
    %c0_60 = arith.constant 0 : index
    %c0_61 = arith.constant 0 : index
    %146 = vector.load %arg8[%c0_60, %c0_61] : memref<8x128xf32, #tpu.memory_space<vmem>>, vector<8x128xf32>
    tpu.vector_store %arg8[%c0_60, %c0_61], %143 {strides = array<i32>} : memref<8x128xf32, #tpu.memory_space<vmem>>, vector<8x128xf32>,
    %c0_62 = arith.constant 0 : index
    %c0_63 = arith.constant 0 : index
    %147 = vector.load %arg7[%c0_62, %c0_63] : memref<8x128xf32, #tpu.memory_space<vmem>>, vector<8x128xf32>
    tpu.vector_store %arg7[%c0_62, %c0_63], %145 {strides = array<i32>} : memref<8x128xf32, #tpu.memory_space<vmem>>, vector<8x128xf32>,
    %c3 = arith.constant 3 : index
    %c0_64 = arith.constant 0 : index
    %c0_65 = arith.constant 0 : index
    %148 = vector.load %arg6[%c3, %c0_64, %c0_65] : memref<8x8x128xf32, #tpu.memory_space<vmem>>, vector<1x8x128xf32>
    %149 = vector.shape_cast %148 : vector<1x8x128xf32> to vector<8x128xf32>
    %150 = vector.shape_cast %145 : vector<8x128xf32> to vector<1x8x128xf32>
    tpu.vector_store %arg6[%c3, %c0_64, %c0_65], %150 {strides = array<i32>} : memref<8x8x128xf32, #tpu.memory_space<vmem>>, vector<1x8x128xf32>,
    %c0_66 = arith.constant 0 : index
    %c0_67 = arith.constant 0 : index
    %151 = vector.load %arg7[%c0_66, %c0_67] : memref<8x128xf32, #tpu.memory_space<vmem>>, vector<8x128xf32>
    %c0_68 = arith.constant 0 : index
    %c0_69 = arith.constant 0 : index
    %152 = vector.load %arg8[%c0_68, %c0_69] : memref<8x128xf32, #tpu.memory_space<vmem>>, vector<8x128xf32>
    %153 = vector.extract_strided_slice %9 {offsets = [32, 0], sizes = [8, 512], strides = [1, 1]} : vector<64x512xf32> to vector<8x512xf32>
    %cst_70 = arith.constant dense<0.000000e+00> : vector<8x512xf32>
    %154 = tpu.matmul %151, %10, %cst_70 {dimension_numbers = #tpu.dot_dimension_numbers<[1], [0], [0], [1], [0, 0, 1, 1], [], []>} : vector<8x128xf32>, vector<128x512xf32>, vector<8x512xf32> -> vector<8x512xf32>
    %155 = arith.addf %153, %154 : vector<8x512xf32>
    %156 = vector.extract_strided_slice %155 {offsets = [0, 0], sizes = [8, 128], strides = [1, 1]} : vector<8x512xf32> to vector<8x128xf32>
    %157 = arith.negf %156 : vector<8x128xf32>
    %158 = math.exp %157 : vector<8x128xf32>
    %cst_71 = arith.constant 1.000000e+00 : f32
    %159 = vector.broadcast %cst_71 : f32 to vector<8x128xf32>
    %160 = arith.addf %159, %158 : vector<8x128xf32>
    %161 = arith.divf %159, %160 : vector<8x128xf32>
    %162 = vector.extract_strided_slice %155 {offsets = [0, 128], sizes = [8, 128], strides = [1, 1]} : vector<8x512xf32> to vector<8x128xf32>
    %163 = arith.negf %162 : vector<8x128xf32>
    %164 = math.exp %163 : vector<8x128xf32>
    %cst_72 = arith.constant 1.000000e+00 : f32
    %165 = vector.broadcast %cst_72 : f32 to vector<8x128xf32>
    %166 = arith.addf %165, %164 : vector<8x128xf32>
    %167 = arith.divf %165, %166 : vector<8x128xf32>
    %168 = vector.extract_strided_slice %155 {offsets = [0, 256], sizes = [8, 128], strides = [1, 1]} : vector<8x512xf32> to vector<8x128xf32>
    %169 = math.tanh %168 : vector<8x128xf32>
    %170 = vector.extract_strided_slice %155 {offsets = [0, 384], sizes = [8, 128], strides = [1, 1]} : vector<8x512xf32> to vector<8x128xf32>
    %171 = arith.negf %170 : vector<8x128xf32>
    %172 = math.exp %171 : vector<8x128xf32>
    %cst_73 = arith.constant 1.000000e+00 : f32
    %173 = vector.broadcast %cst_73 : f32 to vector<8x128xf32>
    %174 = arith.addf %173, %172 : vector<8x128xf32>
    %175 = arith.divf %173, %174 : vector<8x128xf32>
    %176 = arith.mulf %167, %152 : vector<8x128xf32>
    %177 = arith.mulf %161, %169 : vector<8x128xf32>
    %178 = arith.addf %176, %177 : vector<8x128xf32>
    %179 = math.tanh %178 : vector<8x128xf32>
    %180 = arith.mulf %175, %179 : vector<8x128xf32>
    %c0_74 = arith.constant 0 : index
    %c0_75 = arith.constant 0 : index
    %181 = vector.load %arg8[%c0_74, %c0_75] : memref<8x128xf32, #tpu.memory_space<vmem>>, vector<8x128xf32>
    tpu.vector_store %arg8[%c0_74, %c0_75], %178 {strides = array<i32>} : memref<8x128xf32, #tpu.memory_space<vmem>>, vector<8x128xf32>,
    %c0_76 = arith.constant 0 : index
    %c0_77 = arith.constant 0 : index
    %182 = vector.load %arg7[%c0_76, %c0_77] : memref<8x128xf32, #tpu.memory_space<vmem>>, vector<8x128xf32>
    tpu.vector_store %arg7[%c0_76, %c0_77], %180 {strides = array<i32>} : memref<8x128xf32, #tpu.memory_space<vmem>>, vector<8x128xf32>,
    %c4 = arith.constant 4 : index
    %c0_78 = arith.constant 0 : index
    %c0_79 = arith.constant 0 : index
    %183 = vector.load %arg6[%c4, %c0_78, %c0_79] : memref<8x8x128xf32, #tpu.memory_space<vmem>>, vector<1x8x128xf32>
    %184 = vector.shape_cast %183 : vector<1x8x128xf32> to vector<8x128xf32>
    %185 = vector.shape_cast %180 : vector<8x128xf32> to vector<1x8x128xf32>
    tpu.vector_store %arg6[%c4, %c0_78, %c0_79], %185 {strides = array<i32>} : memref<8x8x128xf32, #tpu.memory_space<vmem>>, vector<1x8x128xf32>,
    %c0_80 = arith.constant 0 : index
    %c0_81 = arith.constant 0 : index
    %186 = vector.load %arg7[%c0_80, %c0_81] : memref<8x128xf32, #tpu.memory_space<vmem>>, vector<8x128xf32>
    %c0_82 = arith.constant 0 : index
    %c0_83 = arith.constant 0 : index
    %187 = vector.load %arg8[%c0_82, %c0_83] : memref<8x128xf32, #tpu.memory_space<vmem>>, vector<8x128xf32>
    %188 = vector.extract_strided_slice %9 {offsets = [40, 0], sizes = [8, 512], strides = [1, 1]} : vector<64x512xf32> to vector<8x512xf32>
    %cst_84 = arith.constant dense<0.000000e+00> : vector<8x512xf32>
    %189 = tpu.matmul %186, %10, %cst_84 {dimension_numbers = #tpu.dot_dimension_numbers<[1], [0], [0], [1], [0, 0, 1, 1], [], []>} : vector<8x128xf32>, vector<128x512xf32>, vector<8x512xf32> -> vector<8x512xf32>
    %190 = arith.addf %188, %189 : vector<8x512xf32>
    %191 = vector.extract_strided_slice %190 {offsets = [0, 0], sizes = [8, 128], strides = [1, 1]} : vector<8x512xf32> to vector<8x128xf32>
    %192 = arith.negf %191 : vector<8x128xf32>
    %193 = math.exp %192 : vector<8x128xf32>
    %cst_85 = arith.constant 1.000000e+00 : f32
    %194 = vector.broadcast %cst_85 : f32 to vector<8x128xf32>
    %195 = arith.addf %194, %193 : vector<8x128xf32>
    %196 = arith.divf %194, %195 : vector<8x128xf32>
    %197 = vector.extract_strided_slice %190 {offsets = [0, 128], sizes = [8, 128], strides = [1, 1]} : vector<8x512xf32> to vector<8x128xf32>
    %198 = arith.negf %197 : vector<8x128xf32>
    %199 = math.exp %198 : vector<8x128xf32>
    %cst_86 = arith.constant 1.000000e+00 : f32
    %200 = vector.broadcast %cst_86 : f32 to vector<8x128xf32>
    %201 = arith.addf %200, %199 : vector<8x128xf32>
    %202 = arith.divf %200, %201 : vector<8x128xf32>
    %203 = vector.extract_strided_slice %190 {offsets = [0, 256], sizes = [8, 128], strides = [1, 1]} : vector<8x512xf32> to vector<8x128xf32>
    %204 = math.tanh %203 : vector<8x128xf32>
    %205 = vector.extract_strided_slice %190 {offsets = [0, 384], sizes = [8, 128], strides = [1, 1]} : vector<8x512xf32> to vector<8x128xf32>
    %206 = arith.negf %205 : vector<8x128xf32>
    %207 = math.exp %206 : vector<8x128xf32>
    %cst_87 = arith.constant 1.000000e+00 : f32
    %208 = vector.broadcast %cst_87 : f32 to vector<8x128xf32>
    %209 = arith.addf %208, %207 : vector<8x128xf32>
    %210 = arith.divf %208, %209 : vector<8x128xf32>
    %211 = arith.mulf %202, %187 : vector<8x128xf32>
    %212 = arith.mulf %196, %204 : vector<8x128xf32>
    %213 = arith.addf %211, %212 : vector<8x128xf32>
    %214 = math.tanh %213 : vector<8x128xf32>
    %215 = arith.mulf %210, %214 : vector<8x128xf32>
    %c0_88 = arith.constant 0 : index
    %c0_89 = arith.constant 0 : index
    %216 = vector.load %arg8[%c0_88, %c0_89] : memref<8x128xf32, #tpu.memory_space<vmem>>, vector<8x128xf32>
    tpu.vector_store %arg8[%c0_88, %c0_89], %213 {strides = array<i32>} : memref<8x128xf32, #tpu.memory_space<vmem>>, vector<8x128xf32>,
    %c0_90 = arith.constant 0 : index
    %c0_91 = arith.constant 0 : index
    %217 = vector.load %arg7[%c0_90, %c0_91] : memref<8x128xf32, #tpu.memory_space<vmem>>, vector<8x128xf32>
    tpu.vector_store %arg7[%c0_90, %c0_91], %215 {strides = array<i32>} : memref<8x128xf32, #tpu.memory_space<vmem>>, vector<8x128xf32>,
    %c5 = arith.constant 5 : index
    %c0_92 = arith.constant 0 : index
    %c0_93 = arith.constant 0 : index
    %218 = vector.load %arg6[%c5, %c0_92, %c0_93] : memref<8x8x128xf32, #tpu.memory_space<vmem>>, vector<1x8x128xf32>
    %219 = vector.shape_cast %218 : vector<1x8x128xf32> to vector<8x128xf32>
    %220 = vector.shape_cast %215 : vector<8x128xf32> to vector<1x8x128xf32>
    tpu.vector_store %arg6[%c5, %c0_92, %c0_93], %220 {strides = array<i32>} : memref<8x8x128xf32, #tpu.memory_space<vmem>>, vector<1x8x128xf32>,
    %c0_94 = arith.constant 0 : index
    %c0_95 = arith.constant 0 : index
    %221 = vector.load %arg7[%c0_94, %c0_95] : memref<8x128xf32, #tpu.memory_space<vmem>>, vector<8x128xf32>
    %c0_96 = arith.constant 0 : index
    %c0_97 = arith.constant 0 : index
    %222 = vector.load %arg8[%c0_96, %c0_97] : memref<8x128xf32, #tpu.memory_space<vmem>>, vector<8x128xf32>
    %223 = vector.extract_strided_slice %9 {offsets = [48, 0], sizes = [8, 512], strides = [1, 1]} : vector<64x512xf32> to vector<8x512xf32>
    %cst_98 = arith.constant dense<0.000000e+00> : vector<8x512xf32>
    %224 = tpu.matmul %221, %10, %cst_98 {dimension_numbers = #tpu.dot_dimension_numbers<[1], [0], [0], [1], [0, 0, 1, 1], [], []>} : vector<8x128xf32>, vector<128x512xf32>, vector<8x512xf32> -> vector<8x512xf32>
    %225 = arith.addf %223, %224 : vector<8x512xf32>
    %226 = vector.extract_strided_slice %225 {offsets = [0, 0], sizes = [8, 128], strides = [1, 1]} : vector<8x512xf32> to vector<8x128xf32>
    %227 = arith.negf %226 : vector<8x128xf32>
    %228 = math.exp %227 : vector<8x128xf32>
    %cst_99 = arith.constant 1.000000e+00 : f32
    %229 = vector.broadcast %cst_99 : f32 to vector<8x128xf32>
    %230 = arith.addf %229, %228 : vector<8x128xf32>
    %231 = arith.divf %229, %230 : vector<8x128xf32>
    %232 = vector.extract_strided_slice %225 {offsets = [0, 128], sizes = [8, 128], strides = [1, 1]} : vector<8x512xf32> to vector<8x128xf32>
    %233 = arith.negf %232 : vector<8x128xf32>
    %234 = math.exp %233 : vector<8x128xf32>
    %cst_100 = arith.constant 1.000000e+00 : f32
    %235 = vector.broadcast %cst_100 : f32 to vector<8x128xf32>
    %236 = arith.addf %235, %234 : vector<8x128xf32>
    %237 = arith.divf %235, %236 : vector<8x128xf32>
    %238 = vector.extract_strided_slice %225 {offsets = [0, 256], sizes = [8, 128], strides = [1, 1]} : vector<8x512xf32> to vector<8x128xf32>
    %239 = math.tanh %238 : vector<8x128xf32>
    %240 = vector.extract_strided_slice %225 {offsets = [0, 384], sizes = [8, 128], strides = [1, 1]} : vector<8x512xf32> to vector<8x128xf32>
    %241 = arith.negf %240 : vector<8x128xf32>
    %242 = math.exp %241 : vector<8x128xf32>
    %cst_101 = arith.constant 1.000000e+00 : f32
    %243 = vector.broadcast %cst_101 : f32 to vector<8x128xf32>
    %244 = arith.addf %243, %242 : vector<8x128xf32>
    %245 = arith.divf %243, %244 : vector<8x128xf32>
    %246 = arith.mulf %237, %222 : vector<8x128xf32>
    %247 = arith.mulf %231, %239 : vector<8x128xf32>
    %248 = arith.addf %246, %247 : vector<8x128xf32>
    %249 = math.tanh %248 : vector<8x128xf32>
    %250 = arith.mulf %245, %249 : vector<8x128xf32>
    %c0_102 = arith.constant 0 : index
    %c0_103 = arith.constant 0 : index
    %251 = vector.load %arg8[%c0_102, %c0_103] : memref<8x128xf32, #tpu.memory_space<vmem>>, vector<8x128xf32>
    tpu.vector_store %arg8[%c0_102, %c0_103], %248 {strides = array<i32>} : memref<8x128xf32, #tpu.memory_space<vmem>>, vector<8x128xf32>,
    %c0_104 = arith.constant 0 : index
    %c0_105 = arith.constant 0 : index
    %252 = vector.load %arg7[%c0_104, %c0_105] : memref<8x128xf32, #tpu.memory_space<vmem>>, vector<8x128xf32>
    tpu.vector_store %arg7[%c0_104, %c0_105], %250 {strides = array<i32>} : memref<8x128xf32, #tpu.memory_space<vmem>>, vector<8x128xf32>,
    %c6 = arith.constant 6 : index
    %c0_106 = arith.constant 0 : index
    %c0_107 = arith.constant 0 : index
    %253 = vector.load %arg6[%c6, %c0_106, %c0_107] : memref<8x8x128xf32, #tpu.memory_space<vmem>>, vector<1x8x128xf32>
    %254 = vector.shape_cast %253 : vector<1x8x128xf32> to vector<8x128xf32>
    %255 = vector.shape_cast %250 : vector<8x128xf32> to vector<1x8x128xf32>
    tpu.vector_store %arg6[%c6, %c0_106, %c0_107], %255 {strides = array<i32>} : memref<8x8x128xf32, #tpu.memory_space<vmem>>, vector<1x8x128xf32>,
    %c0_108 = arith.constant 0 : index
    %c0_109 = arith.constant 0 : index
    %256 = vector.load %arg7[%c0_108, %c0_109] : memref<8x128xf32, #tpu.memory_space<vmem>>, vector<8x128xf32>
    %c0_110 = arith.constant 0 : index
    %c0_111 = arith.constant 0 : index
    %257 = vector.load %arg8[%c0_110, %c0_111] : memref<8x128xf32, #tpu.memory_space<vmem>>, vector<8x128xf32>
    %258 = vector.extract_strided_slice %9 {offsets = [56, 0], sizes = [8, 512], strides = [1, 1]} : vector<64x512xf32> to vector<8x512xf32>
    %cst_112 = arith.constant dense<0.000000e+00> : vector<8x512xf32>
    %259 = tpu.matmul %256, %10, %cst_112 {dimension_numbers = #tpu.dot_dimension_numbers<[1], [0], [0], [1], [0, 0, 1, 1], [], []>} : vector<8x128xf32>, vector<128x512xf32>, vector<8x512xf32> -> vector<8x512xf32>
    %260 = arith.addf %258, %259 : vector<8x512xf32>
    %261 = vector.extract_strided_slice %260 {offsets = [0, 0], sizes = [8, 128], strides = [1, 1]} : vector<8x512xf32> to vector<8x128xf32>
    %262 = arith.negf %261 : vector<8x128xf32>
    %263 = math.exp %262 : vector<8x128xf32>
    %cst_113 = arith.constant 1.000000e+00 : f32
    %264 = vector.broadcast %cst_113 : f32 to vector<8x128xf32>
    %265 = arith.addf %264, %263 : vector<8x128xf32>
    %266 = arith.divf %264, %265 : vector<8x128xf32>
    %267 = vector.extract_strided_slice %260 {offsets = [0, 128], sizes = [8, 128], strides = [1, 1]} : vector<8x512xf32> to vector<8x128xf32>
    %268 = arith.negf %267 : vector<8x128xf32>
    %269 = math.exp %268 : vector<8x128xf32>
    %cst_114 = arith.constant 1.000000e+00 : f32
    %270 = vector.broadcast %cst_114 : f32 to vector<8x128xf32>
    %271 = arith.addf %270, %269 : vector<8x128xf32>
    %272 = arith.divf %270, %271 : vector<8x128xf32>
    %273 = vector.extract_strided_slice %260 {offsets = [0, 256], sizes = [8, 128], strides = [1, 1]} : vector<8x512xf32> to vector<8x128xf32>
    %274 = math.tanh %273 : vector<8x128xf32>
    %275 = vector.extract_strided_slice %260 {offsets = [0, 384], sizes = [8, 128], strides = [1, 1]} : vector<8x512xf32> to vector<8x128xf32>
    %276 = arith.negf %275 : vector<8x128xf32>
    %277 = math.exp %276 : vector<8x128xf32>
    %cst_115 = arith.constant 1.000000e+00 : f32
    %278 = vector.broadcast %cst_115 : f32 to vector<8x128xf32>
    %279 = arith.addf %278, %277 : vector<8x128xf32>
    %280 = arith.divf %278, %279 : vector<8x128xf32>
    %281 = arith.mulf %272, %257 : vector<8x128xf32>
    %282 = arith.mulf %266, %274 : vector<8x128xf32>
    %283 = arith.addf %281, %282 : vector<8x128xf32>
    %284 = math.tanh %283 : vector<8x128xf32>
    %285 = arith.mulf %280, %284 : vector<8x128xf32>
    %c0_116 = arith.constant 0 : index
    %c0_117 = arith.constant 0 : index
    %286 = vector.load %arg8[%c0_116, %c0_117] : memref<8x128xf32, #tpu.memory_space<vmem>>, vector<8x128xf32>
    tpu.vector_store %arg8[%c0_116, %c0_117], %283 {strides = array<i32>} : memref<8x128xf32, #tpu.memory_space<vmem>>, vector<8x128xf32>,
    %c0_118 = arith.constant 0 : index
    %c0_119 = arith.constant 0 : index
    %287 = vector.load %arg7[%c0_118, %c0_119] : memref<8x128xf32, #tpu.memory_space<vmem>>, vector<8x128xf32>
    tpu.vector_store %arg7[%c0_118, %c0_119], %285 {strides = array<i32>} : memref<8x128xf32, #tpu.memory_space<vmem>>, vector<8x128xf32>,
    %c7 = arith.constant 7 : index
    %c0_120 = arith.constant 0 : index
    %c0_121 = arith.constant 0 : index
    %288 = vector.load %arg6[%c7, %c0_120, %c0_121] : memref<8x8x128xf32, #tpu.memory_space<vmem>>, vector<1x8x128xf32>
    %289 = vector.shape_cast %288 : vector<1x8x128xf32> to vector<8x128xf32>
    %290 = vector.shape_cast %285 : vector<8x128xf32> to vector<1x8x128xf32>
    tpu.vector_store %arg6[%c7, %c0_120, %c0_121], %290 {strides = array<i32>} : memref<8x8x128xf32, #tpu.memory_space<vmem>>, vector<1x8x128xf32>,
    return
  }
  func.func @transform_0(%arg0: i32, %arg1: i32) -> (i32, i32, i32) {
    %c0_i32 = arith.constant 0 : i32
    %c0_i32_0 = arith.constant 0 : i32
    return %arg1, %arg0, %c0_i32 : i32, i32, i32
  }
  func.func @transform_1(%arg0: i32, %arg1: i32) -> (i32, i32) {
    %c0_i32 = arith.constant 0 : i32
    %c0_i32_0 = arith.constant 0 : i32
    %c0_i32_1 = arith.constant 0 : i32
    return %c0_i32, %c0_i32_0 : i32, i32
  }
  func.func @transform_2(%arg0: i32, %arg1: i32) -> (i32, i32) {
    %c0_i32 = arith.constant 0 : i32
    %c0_i32_0 = arith.constant 0 : i32
    %c0_i32_1 = arith.constant 0 : i32
    return %c0_i32, %c0_i32_0 : i32, i32
  }
  func.func @transform_3(%arg0: i32, %arg1: i32) -> (i32, i32) {
    %c0_i32 = arith.constant 0 : i32
    %c0_i32_0 = arith.constant 0 : i32
    %c0_i32_1 = arith.constant 0 : i32
    return %c0_i32, %c0_i32_0 : i32, i32
  }
  func.func @transform_4(%arg0: i32, %arg1: i32) -> (i32, i32, i32) {
    %c0_i32 = arith.constant 0 : i32
    %c0_i32_0 = arith.constant 0 : i32
    return %arg1, %arg0, %c0_i32 : i32, i32, i32
  }
}

module attributes {stable_mosaic.version = 11 : i64} {
  func.func @_fc_kernel(%arg0: i32, %arg1: i32, %arg2: memref<64x128xf32, #tpu.memory_space<vmem>>, %arg3: memref<128x128xf32, #tpu.memory_space<vmem>>, %arg4: memref<1x128xf32, #tpu.memory_space<vmem>>, %arg5: memref<64x128xf32, #tpu.memory_space<vmem>>) attributes {dimension_semantics = [#tpu.dimension_semantics<parallel>, #tpu.dimension_semantics<parallel>], iteration_bounds = array<i64: 1, 1>, scalar_prefetch = 0 : i64, scratch_operands = 0 : i64, tpu.core_type = #tpu.core_type<tc>, window_params = [{transform_indices = @transform_0, window_bounds = array<i64: 64, 128>}, {transform_indices = @transform_1, window_bounds = array<i64: 128, 128>}, {transform_indices = @transform_2, window_bounds = array<i64: 1, 128>}, {transform_indices = @transform_3, window_bounds = array<i64: 64, 128>}]} {
    %c0 = arith.constant 0 : index
    %c0_0 = arith.constant 0 : index
    %0 = vector.load %arg2[%c0, %c0_0] : memref<64x128xf32, #tpu.memory_space<vmem>>, vector<64x128xf32>
    %c0_1 = arith.constant 0 : index
    %c0_2 = arith.constant 0 : index
    %1 = vector.load %arg3[%c0_1, %c0_2] : memref<128x128xf32, #tpu.memory_space<vmem>>, vector<128x128xf32>
    %cst = arith.constant dense<0.000000e+00> : vector<64x128xf32>
    %2 = tpu.matmul %0, %1, %cst {dimension_numbers = #tpu.dot_dimension_numbers<[1], [0], [0], [1], [0, 0, 1, 1], [], []>} : vector<64x128xf32>, vector<128x128xf32>, vector<64x128xf32> -> vector<64x128xf32>
    %c0_3 = arith.constant 0 : index
    %c0_4 = arith.constant 0 : index
    %3 = vector.load %arg4[%c0_3, %c0_4] : memref<1x128xf32, #tpu.memory_space<vmem>>, vector<1x128xf32>
    %4 = vector.broadcast %3 : vector<1x128xf32> to vector<64x128xf32>
    %5 = arith.addf %2, %4 : vector<64x128xf32>
    %c0_5 = arith.constant 0 : index
    %c0_6 = arith.constant 0 : index
    %6 = vector.load %arg5[%c0_5, %c0_6] : memref<64x128xf32, #tpu.memory_space<vmem>>, vector<64x128xf32>
    tpu.vector_store %arg5[%c0_5, %c0_6], %5 {strides = array<i32>} : memref<64x128xf32, #tpu.memory_space<vmem>>, vector<64x128xf32>,
    return
  }
  func.func @transform_0(%arg0: i32, %arg1: i32) -> (i32, i32) {
    %c0_i32 = arith.constant 0 : i32
    %c0_i32_0 = arith.constant 0 : i32
    return %arg0, %c0_i32 : i32, i32
  }
  func.func @transform_1(%arg0: i32, %arg1: i32) -> (i32, i32) {
    %c0_i32 = arith.constant 0 : i32
    %c0_i32_0 = arith.constant 0 : i32
    return %c0_i32, %arg1 : i32, i32
  }
  func.func @transform_2(%arg0: i32, %arg1: i32) -> (i32, i32) {
    %c0_i32 = arith.constant 0 : i32
    %c0_i32_0 = arith.constant 0 : i32
    return %c0_i32, %arg1 : i32, i32
  }
  func.func @transform_3(%arg0: i32, %arg1: i32) -> (i32, i32) {
    %c0_i32 = arith.constant 0 : i32
    return %arg0, %arg1 : i32, i32
  }
}

</mosaic_0001>

<bundles_post_ra>
// kernel: decoder_rnn_forward.3
= control target key start
LH: loop header
LB: loop body
LE: loop exit
PB: predicated region body
PF: predicated region fallthrough
CT: control target
= control target key end

     0   :  { %s289_s0 = inlined_call_operand.vmem [shape: f32[64,128], index: 0, kind: input, shape index: {}]   ;;  %s290_s1 = inlined_call_operand.vmem [shape: f32[128,128], index: 1, kind: input, shape index: {}]   ;;  %s291_s2 = inlined_call_operand.vmem [shape: f32[1,128], index: 2, kind: input, shape index: {}]   ;;  %s292_s3 = inlined_call_operand.hbm [shape: f32[64,128], index: 3, kind: output, shape index: {}]  }
   0x1   :  { %v38_v0 = vld [vmem:[%s290_s1 + $0x78] sm:$0xff]  ;;  %v37_v1 = vld [vmem:[%s290_s1 + $0x70] sm:$0xff]  ;;  %v36_v2 = vld [vmem:[%s290_s1 + $0x68] sm:$0xff] }
   0x2   :  { %111 = vmatpush.msra.mxu2 %v38_v0  ;;  %112 = vmatpush.msra.mxu3 %v38_v0  ;;  %v35_v3 = vld [vmem:[%s290_s1 + $0x60] sm:$0xff]  ;;  %v34_v4 = vld [vmem:[%s290_s1 + $0x58] sm:$0xff] }
   0x3   :  { %43 = vmatpush.msra.mxu0 %v38_v0  ;;  %110 = vmatpush.msra.mxu1 %v38_v0 }
   0x4   :  { %114 = vmatpush.msra.mxu2 %v37_v1  ;;  %115 = vmatpush.msra.mxu3 %v37_v1 }
   0x5   :  { %44 = vmatpush.msra.mxu0 %v37_v1  ;;  %113 = vmatpush.msra.mxu1 %v37_v1 }
   0x6   :  { %117 = vmatpush.msra.mxu2 %v36_v2  ;;  %118 = vmatpush.msra.mxu3 %v36_v2 }
   0x7   :  { %45 = vmatpush.msra.mxu0 %v36_v2  ;;  %116 = vmatpush.msra.mxu1 %v36_v2 }
   0x8   :  { %120 = vmatpush.msra.mxu2 %v35_v3  ;;  %121 = vmatpush.msra.mxu3 %v35_v3 }
   0x9   :  { %8 = vsyncpa [#allocation3], 0  ;;  %v33_v5 = vld [vmem:[%s290_s1 + $0x50] sm:$0xff]  ;;  %46 = vmatpush.msra.mxu0 %v35_v3  ;;  %119 = vmatpush.msra.mxu1 %v35_v3  ;;  %v32_v6 = vld [vmem:[%s290_s1 + $0x48] sm:$0xff]  ;;  %s98_s9 = sshll.u32 %s292_s3, 4  ;;  %s189_s10 = smov 128   ;;  %s99_s9 = int_to_ptr.hbm [resolvable:$true] %s98_s9 }
   0xa   :  { %123 = vmatpush.msra.mxu2 %v34_v4  ;;  %124 = vmatpush.msra.mxu3 %v34_v4  ;;  %v31_v7 = vld [vmem:[%s290_s1 + $0x40] sm:$0xff]  ;;  %v30_v8 = vld [vmem:[%s290_s1 + $0x38] sm:$0xff]  ;;  %v29_v9 = vld [vmem:[%s290_s1 + $0x30] sm:$0xff]  ;;  %s190_s11 = smov 8  }
   0xb   :  { %47 = vmatpush.msra.mxu0 %v34_v4  ;;  %122 = vmatpush.msra.mxu1 %v34_v4  ;;  %v28_v10 = vld [vmem:[%s290_s1 + $0x28] sm:$0xff]  ;;  %v27_v11 = vld [vmem:[%s290_s1 + $0x20] sm:$0xff]  ;;  %v26_v12 = vld [vmem:[%s290_s1 + $0x18] sm:$0xff] }
   0xc   :  { %126 = vmatpush.msra.mxu2 %v33_v5  ;;  %127 = vmatpush.msra.mxu3 %v33_v5  ;;  %v25_v13 = vld [vmem:[%s290_s1 + $0x10] sm:$0xff]  ;;  %v24_v14 = vld [vmem:[%s290_s1 + $0x8] sm:$0xff]  ;;  %v23_v15 = vld [vmem:[%s290_s1] sm:$0xff] }
   0xd   :  { %48 = vmatpush.msra.mxu0 %v33_v5  ;;  %125 = vmatpush.msra.mxu1 %v33_v5  ;;  %v19_v16 = vld [vmem:[%s289_s0 + $0x20] sm:$0xff]  ;;  %v21_v17 = vld [vmem:[%s289_s0 + $0x30] sm:$0xff]  ;;  %v20_v20 = vld [vmem:[%s289_s0 + $0x28] sm:$0xff] }
   0xe   :  { %129 = vmatpush.msra.mxu2 %v32_v6  ;;  %130 = vmatpush.msra.mxu3 %v32_v6  ;;  %v15_v18 = vld [vmem:[%s289_s0] sm:$0xff]  ;;  %v17_v19 = vld [vmem:[%s289_s0 + $0x10] sm:$0xff]  ;;  %v22_v21 = vld [vmem:[%s289_s0 + $0x38] sm:$0xff] }
   0xf   :  { %49 = vmatpush.msra.mxu0 %v32_v6  ;;  %128 = vmatpush.msra.mxu1 %v32_v6  ;;  %v16_v22 = vld [vmem:[%s289_s0 + $0x8] sm:$0xff]  ;;  %v18_v23 = vld [vmem:[%s289_s0 + $0x18] sm:$0xff]  ;;  %v161_v24 = vld [vmem:[%s291_s2] ss:$0 sm:$0xff]  ;;  %s188_s0 = smov [#allocation2]  }
  0x10   :  { %132 = vmatpush.msra.mxu2 %v31_v7  ;;  %133 = vmatpush.msra.mxu3 %v31_v7  ;;  %s96_s7 = sshll.u32 %s188_s0, 4  ;;  %s97_s7 = int_to_ptr.vmem [resolvable:$true] %s96_s7 }
  0x11   :  { %50 = vmatpush.msra.mxu0 %v31_v7  ;;  %131 = vmatpush.msra.mxu1 %v31_v7 }
  0x12   :  { %135 = vmatpush.msra.mxu2 %v30_v8  ;;  %136 = vmatpush.msra.mxu3 %v30_v8 }
  0x13   :  { %51 = vmatpush.msra.mxu0 %v30_v8  ;;  %134 = vmatpush.msra.mxu1 %v30_v8 }
  0x14   :  { %138 = vmatpush.msra.mxu2 %v29_v9  ;;  %139 = vmatpush.msra.mxu3 %v29_v9 }
  0x15   :  { %52 = vmatpush.msra.mxu0 %v29_v9  ;;  %137 = vmatpush.msra.mxu1 %v29_v9 }
  0x16   :  { %141 = vmatpush.msra.mxu2 %v28_v10  ;;  %142 = vmatpush.msra.mxu3 %v28_v10 }
  0x17   :  { %53 = vmatpush.msra.mxu0 %v28_v10  ;;  %140 = vmatpush.msra.mxu1 %v28_v10 }
  0x18   :  { %144 = vmatpush.msra.mxu2 %v27_v11  ;;  %145 = vmatpush.msra.mxu3 %v27_v11 }
  0x19   :  { %54 = vmatpush.msra.mxu0 %v27_v11  ;;  %143 = vmatpush.msra.mxu1 %v27_v11 }
  0x1a   :  { %147 = vmatpush.msra.mxu2 %v26_v12  ;;  %148 = vmatpush.msra.mxu3 %v26_v12 }
  0x1b   :  { %55 = vmatpush.msra.mxu0 %v26_v12  ;;  %146 = vmatpush.msra.mxu1 %v26_v12 }
  0x1c   :  { %150 = vmatpush.msra.mxu2 %v25_v13  ;;  %151 = vmatpush.msra.mxu3 %v25_v13 }
  0x1d   :  { %56 = vmatpush.msra.mxu0 %v25_v13  ;;  %149 = vmatpush.msra.mxu1 %v25_v13 }
  0x1e   :  { %153 = vmatpush.msra.mxu2 %v24_v14  ;;  %154 = vmatpush.msra.mxu3 %v24_v14 }
  0x1f   :  { %57 = vmatpush.msra.mxu0 %v24_v14  ;;  %152 = vmatpush.msra.mxu1 %v24_v14 }
  0x20   :  { %156 = vmatpush.msra.mxu2 %v23_v15  ;;  %157 = vmatpush.msra.mxu3 %v23_v15 }
  0x21   :  { %71 = vmatmul.f32.vlgmr.msra.gmra.mxu2 %v19_v16  ;;  %77 = vmatmul.f32.vlgmr.msra.gmra.mxu3 %v21_v17 }
  0x22   :  { %58 = vmatpush.msra.mxu0 %v23_v15  ;;  %155 = vmatpush.msra.mxu1 %v23_v15 }
  0x23   :  { %59 = vmatmul.f32.vlgmr.msra.gmra.mxu0 %v15_v18  ;;  %65 = vmatmul.f32.vlgmr.msra.gmra.mxu1 %v17_v19 }
  0x29   :  { %74 = vmatmul.f32.gmra.mxu2 %v20_v20  ;;  %80 = vmatmul.f32.gmra.mxu3 %v22_v21 }
  0x2b   :  { %62 = vmatmul.f32.gmra.mxu0 %v16_v22  ;;  %68 = vmatmul.f32.gmra.mxu1 %v18_v23 }
  0xa0   :  { %v60_v25 = vpop.f32.mrf.mxu0  ;;  %v66_v26 = vpop.f32.mrf.mxu1 }
  0xa1   :  { %v61_v27 = vadd.f32 %v161_v24, %v60_v25  ;;  %v67_v28 = vadd.f32 %v161_v24, %v66_v26 }
  0xa3   :  { %84 = vst [vmem:[#allocation2] sm:$0xff] %v61_v27 }
  0xa4   :  { %86 = vst [vmem:[#allocation2 + $0x10] sm:$0xff] %v67_v28  ;;  %v72_v29 = vpop.f32.mrf.mxu2  ;;  %v78_v30 = vpop.f32.mrf.mxu3 }
  0xa5   :  { %v73_v31 = vadd.f32 %v161_v24, %v72_v29  ;;  %v79_v32 = vadd.f32 %v161_v24, %v78_v30 }
  0xa7   :  { %88 = vst [vmem:[#allocation2 + $0x20] sm:$0xff] %v73_v31 }
  0xa8   :  { %90 = vst [vmem:[#allocation2 + $0x30] sm:$0xff] %v79_v32  ;;  %v63_v33 = vpop.f32.mrf.mxu0  ;;  %v69_v34 = vpop.f32.mrf.mxu1 }
  0xa9   :  { %v64_v35 = vadd.f32 %v161_v24, %v63_v33  ;;  %v70_v36 = vadd.f32 %v161_v24, %v69_v34 }
  0xab   :  { %85 = vst [vmem:[#allocation2 + $0x8] sm:$0xff] %v64_v35 }
  0xac   :  { %87 = vst [vmem:[#allocation2 + $0x18] sm:$0xff] %v70_v36  ;;  %v75_v37 = vpop.f32.mrf.mxu2  ;;  %v81_v38 = vpop.f32.mrf.mxu3 }
  0xad   :  { %v76_v39 = vadd.f32 %v161_v24, %v75_v37  ;;  %v82_v40 = vadd.f32 %v161_v24, %v81_v38 }
  0xaf   :  { %89 = vst [vmem:[#allocation2 + $0x28] sm:$0xff] %v76_v39 }
  0xb0   :  { %91 = vst [vmem:[#allocation2 + $0x38] sm:$0xff] %v82_v40 }
  0xb1   :  { %104 = dma.vmem_to_hbm [thread:$0]  %s97_s7, 1024, %s99_s9, [#allocation3], %s189_s10, %s189_s10, %s190_s11  }
  0xb2   :  { %186 = dma.done.wait [#allocation3], 1024  }
  0xb3   :  { %187 = vsyncadd [#allocation3], 4294966272 }
  0xb4   :  { %109 = vsyncpa [#allocation3], 1 }

// kernel: decoder_rnn_forward.2
= control target key start
LH: loop header
LB: loop body
LE: loop exit
PB: predicated region body
PF: predicated region fallthrough
CT: control target
= control target key end

     0   :  { %vm57_vm0 = vcmask 261120   ;;  %s3230_s1 = inlined_call_operand.vmem [shape: f32[32,512], index: 1, kind: input, shape index: {}]   ;;  %s3231_s0 = inlined_call_operand.vmem [shape: f32[8,8,32], index: 0, kind: input, shape index: {}]   ;;  %s3232_s2 = inlined_call_operand.vmem [shape: f32[128,512], index: 2, kind: input, shape index: {}]   ;;  %s3233_s3 = inlined_call_operand.vmem [shape: f32[1,512], index: 3, kind: input, shape index: {}]   ;;  %s3234_s4 = inlined_call_operand.vmem [shape: f32[8,8,128], index: 4, kind: output, shape index: {}]  }
   0x1   :  { %v43_v0 = vld [vmem:[%s3230_s1 + $0x60] sm:$0xff]  ;;  %v44_v1 = vld [vmem:[%s3230_s1 + $0x68] sm:$0xff]  ;;  %v45_v2 = vld [vmem:[%s3230_s1 + $0x70] sm:$0xff] }
   0x2   :  { %94 = vmatpush.msra.mxu0 %v43_v0  ;;  %135 = vmatpush.msra.mxu1 %v44_v1  ;;  %v46_v3 = vld [vmem:[%s3230_s1 + $0x78] sm:$0xff]  ;;  %v39_v4 = vld [vmem:[%s3230_s1 + $0x40] sm:$0xff]  ;;  %v40_v5 = vld [vmem:[%s3230_s1 + $0x48] sm:$0xff] }
   0x3   :  { %176 = vmatpush.msra.mxu2 %v45_v2  ;;  %217 = vmatpush.msra.mxu3 %v46_v3  ;;  %v41_v6 = vld [vmem:[%s3230_s1 + $0x50] sm:$0xff]  ;;  %v42_v7 = vld [vmem:[%s3230_s1 + $0x58] sm:$0xff]  ;;  %v35_v8 = vld [vmem:[%s3230_s1 + $0x20] sm:$0xff] }
   0x4   :  { %95 = vmatpush.msra.mxu0 %v39_v4  ;;  %136 = vmatpush.msra.mxu1 %v40_v5  ;;  %v36_v9 = vld [vmem:[%s3230_s1 + $0x28] sm:$0xff]  ;;  %v37_v10 = vld [vmem:[%s3230_s1 + $0x30] sm:$0xff]  ;;  %v38_v11 = vld [vmem:[%s3230_s1 + $0x38] sm:$0xff] }
   0x5   :  { %177 = vmatpush.msra.mxu2 %v41_v6  ;;  %218 = vmatpush.msra.mxu3 %v42_v7  ;;  %v31_v12 = vld [vmem:[%s3230_s1] sm:$0xff]  ;;  %v32_v13 = vld [vmem:[%s3230_s1 + $0x8] sm:$0xff]  ;;  %v33_v14 = vld [vmem:[%s3230_s1 + $0x10] sm:$0xff] }
   0x6   :  { %96 = vmatpush.msra.mxu0 %v35_v8  ;;  %137 = vmatpush.msra.mxu1 %v36_v9  ;;  %v34_v15 = vld [vmem:[%s3230_s1 + $0x18] sm:$0xff]  ;;  %v23_v16 = vld [vmem:[%s3231_s0] sm:$0xff]  ;;  %v1878_v18 = vld [vmem:[%s3232_s2 + $0x1e8] sm:$0xff] }
   0x7   :  { %178 = vmatpush.msra.mxu2 %v37_v10  ;;  %219 = vmatpush.msra.mxu3 %v38_v11  ;;  %v1873_v17 = vld [vmem:[%s3232_s2 + $0x1e0] sm:$0xff]  ;;  %v1885_v19 = vld [vmem:[%s3232_s2 + $0x1f8] sm:$0xff]  ;;  %v1890_v20 = vld [vmem:[%s3232_s2 + $0x1f0] sm:$0xff] }
   0x8   :  { %97 = vmatpush.msra.mxu0 %v31_v12  ;;  %138 = vmatpush.msra.mxu1 %v32_v13  ;;  %v1897_v21 = vld [vmem:[%s3232_s2 + $0x1c0] sm:$0xff]  ;;  %v1902_v22 = vld [vmem:[%s3232_s2 + $0x1c8] sm:$0xff]  ;;  %v1909_v23 = vld [vmem:[%s3232_s2 + $0x1d8] sm:$0xff] }
   0x9   :  { %179 = vmatpush.msra.mxu2 %v33_v14  ;;  %220 = vmatpush.msra.mxu3 %v34_v15  ;;  %v1914_v24 = vld [vmem:[%s3232_s2 + $0x1d0] sm:$0xff]  ;;  %v1920_v25 = vld [vmem:[%s3232_s2 + $0x1a0] sm:$0xff]  ;;  %v1925_v26 = vld [vmem:[%s3232_s2 + $0x1a8] sm:$0xff] }
   0xa   :  { %1537 = vmatmul.msk.f32.vlgmr.msra.gmra.mxu0 %vm57_vm0, %v23_v16  ;;  %1545 = vmatmul.msk.f32.vlgmr.msra.gmra.mxu1 %vm57_vm0, %v23_v16  ;;  %v1933_v27 = vld [vmem:[%s3232_s2 + $0x1b8] sm:$0xff]  ;;  %v1938_v28 = vld [vmem:[%s3232_s2 + $0x1b0] sm:$0xff]  ;;  %v24_v29 = vld [vmem:[%s3231_s0 + $0x8] sm:$0xff] }
   0xb   :  { %1553 = vmatmul.msk.f32.vlgmr.msra.gmra.mxu2 %vm57_vm0, %v23_v16  ;;  %1561 = vmatmul.msk.f32.vlgmr.msra.gmra.mxu3 %vm57_vm0, %v23_v16  ;;  %v1950_v30 = vld [vmem:[%s3232_s2 + $0x180] sm:$0xff]  ;;  %v1955_v31 = vld [vmem:[%s3232_s2 + $0x188] sm:$0xff]  ;;  %v1964_v32 = vld [vmem:[%s3232_s2 + $0x198] sm:$0xff] }
   0xc   :  { %312 = vmatpush.msrb.mxu0 %v1873_v17  ;;  %332 = vmatpush.msrb.mxu1 %v1878_v18  ;;  %v1969_v33 = vld [vmem:[%s3232_s2 + $0x190] sm:$0xff]  ;;  %v1976_v34 = vld [vmem:[%s3232_s2 + $0x160] sm:$0xff]  ;;  %v1981_v35 = vld [vmem:[%s3232_s2 + $0x168] sm:$0xff] }
   0xd   :  { %372 = vmatpush.msrb.mxu3 %v1885_v19  ;;  %352 = vmatpush.msrb.mxu2 %v1890_v20  ;;  %v1988_v36 = vld [vmem:[%s3232_s2 + $0x178] sm:$0xff]  ;;  %v1993_v37 = vld [vmem:[%s3232_s2 + $0x170] sm:$0xff]  ;;  %v1999_v38 = vld [vmem:[%s3232_s2 + $0x140] sm:$0xff] }
   0xe   :  { %313 = vmatpush.msrb.mxu0 %v1897_v21  ;;  %333 = vmatpush.msrb.mxu1 %v1902_v22  ;;  %v2004_v39 = vld [vmem:[%s3232_s2 + $0x148] sm:$0xff]  ;;  %v2012_v40 = vld [vmem:[%s3232_s2 + $0x158] sm:$0xff]  ;;  %v2017_v41 = vld [vmem:[%s3232_s2 + $0x150] sm:$0xff] }
   0xf   :  { %373 = vmatpush.msrb.mxu3 %v1909_v23  ;;  %353 = vmatpush.msrb.mxu2 %v1914_v24  ;;  %v25_v42 = vld [vmem:[%s3231_s0 + $0x10] sm:$0xff]  ;;  %v2029_v43 = vld [vmem:[%s3232_s2 + $0x120] sm:$0xff]  ;;  %v2034_v44 = vld [vmem:[%s3232_s2 + $0x128] sm:$0xff] }
  0x10   :  { %314 = vmatpush.msrb.mxu0 %v1920_v25  ;;  %334 = vmatpush.msrb.mxu1 %v1925_v26  ;;  %v2043_v45 = vld [vmem:[%s3232_s2 + $0x138] sm:$0xff]  ;;  %v2048_v46 = vld [vmem:[%s3232_s2 + $0x130] sm:$0xff]  ;;  %v2055_v47 = vld [vmem:[%s3232_s2 + $0x100] sm:$0xff] }
  0x11   :  { %374 = vmatpush.msrb.mxu3 %v1933_v27  ;;  %354 = vmatpush.msrb.mxu2 %v1938_v28  ;;  %v2060_v48 = vld [vmem:[%s3232_s2 + $0x108] sm:$0xff]  ;;  %v2067_v49 = vld [vmem:[%s3232_s2 + $0x118] sm:$0xff]  ;;  %v2072_v50 = vld [vmem:[%s3232_s2 + $0x110] sm:$0xff] }
  0x12   :  { %1538 = vmatmul.msk.f32.gmra.mxu0 %vm57_vm0, %v24_v29  ;;  %1546 = vmatmul.msk.f32.gmra.mxu1 %vm57_vm0, %v24_v29  ;;  %v2078_v51 = vld [vmem:[%s3232_s2 + $0xe0] sm:$0xff]  ;;  %v2083_v52 = vld [vmem:[%s3232_s2 + $0xe8] sm:$0xff]  ;;  %v2091_v53 = vld [vmem:[%s3232_s2 + $0xf8] sm:$0xff] }
  0x13   :  { %1554 = vmatmul.msk.f32.gmra.mxu2 %vm57_vm0, %v24_v29  ;;  %1562 = vmatmul.msk.f32.gmra.mxu3 %vm57_vm0, %v24_v29  ;;  %v2096_v54 = vld [vmem:[%s3232_s2 + $0xf0] sm:$0xff]  ;;  %v26_v55 = vld [vmem:[%s3231_s0 + $0x18] sm:$0xff]  ;;  %v2108_v56 = vld [vmem:[%s3232_s2 + $0xc0] sm:$0xff] }
  0x14   :  { %315 = vmatpush.msrb.mxu0 %v1950_v30  ;;  %335 = vmatpush.msrb.mxu1 %v1955_v31  ;;  %v2113_v57 = vld [vmem:[%s3232_s2 + $0xc8] sm:$0xff]  ;;  %v2122_v58 = vld [vmem:[%s3232_s2 + $0xd8] sm:$0xff]  ;;  %v2127_v59 = vld [vmem:[%s3232_s2 + $0xd0] sm:$0xff] }
  0x15   :  { %375 = vmatpush.msrb.mxu3 %v1964_v32  ;;  %355 = vmatpush.msrb.mxu2 %v1969_v33  ;;  %3321 = vst [vmem:[#allocation4_spill] sm:$0xff] %v2122_v58  ;;  %v2134_v60 = vld [vmem:[%s3232_s2 + $0xa0] sm:$0xff]  ;;  %v2139_v61 = vld [vmem:[%s3232_s2 + $0xa8] sm:$0xff]  ;;  %v2146_v62 = vld [vmem:[%s3232_s2 + $0xb8] sm:$0xff] }
  0x16   :  { %316 = vmatpush.msrb.mxu0 %v1976_v34  ;;  %336 = vmatpush.msrb.mxu1 %v1981_v35  ;;  %3322 = vst [vmem:[#allocation5_spill] sm:$0xff] %v2127_v59  ;;  %v2151_v63 = vld [vmem:[%s3232_s2 + $0xb0] sm:$0xff]  ;;  %v2157_v0 = vld [vmem:[%s3232_s2 + $0x80] sm:$0xff]  ;;  %v2162_v1 = vld [vmem:[%s3232_s2 + $0x88] sm:$0xff] }
  0x17   :  { %376 = vmatpush.msrb.mxu3 %v1988_v36  ;;  %356 = vmatpush.msrb.mxu2 %v1993_v37  ;;  %3323 = vst [vmem:[#allocation6_spill] sm:$0xff] %v2134_v60  ;;  %v2170_v2 = vld [vmem:[%s3232_s2 + $0x98] sm:$0xff]  ;;  %v2175_v3 = vld [vmem:[%s3232_s2 + $0x90] sm:$0xff]  ;;  %v27_v4 = vld [vmem:[%s3231_s0 + $0x20] sm:$0xff] }
  0x18   :  { %317 = vmatpush.msrb.mxu0 %v1999_v38  ;;  %337 = vmatpush.msrb.mxu1 %v2004_v39  ;;  %3324 = vst [vmem:[#allocation7_spill] sm:$0xff] %v2139_v61  ;;  %v2187_v5 = vld [vmem:[%s3232_s2 + $0x60] sm:$0xff]  ;;  %v2192_v6 = vld [vmem:[%s3232_s2 + $0x68] sm:$0xff]  ;;  %v2201_v7 = vld [vmem:[%s3232_s2 + $0x78] sm:$0xff] }
  0x19   :  { %377 = vmatpush.msrb.mxu3 %v2012_v40  ;;  %357 = vmatpush.msrb.mxu2 %v2017_v41  ;;  %3325 = vst [vmem:[#allocation8_spill] sm:$0xff] %v2146_v62  ;;  %v2206_v8 = vld [vmem:[%s3232_s2 + $0x70] sm:$0xff]  ;;  %v2213_v9 = vld [vmem:[%s3232_s2 + $0x40] sm:$0xff]  ;;  %v2218_v10 = vld [vmem:[%s3232_s2 + $0x48] sm:$0xff] }
  0x1a   :  { %1539 = vmatmul.msk.f32.gmra.mxu0 %vm57_vm0, %v25_v42  ;;  %1547 = vmatmul.msk.f32.gmra.mxu1 %vm57_vm0, %v25_v42  ;;  %3326 = vst [vmem:[#allocation9_spill] sm:$0xff] %v2151_v63  ;;  %v2225_v11 = vld [vmem:[%s3232_s2 + $0x58] sm:$0xff]  ;;  %v2230_v12 = vld [vmem:[%s3232_s2 + $0x50] sm:$0xff]  ;;  %v2236_v13 = vld [vmem:[%s3232_s2 + $0x20] sm:$0xff] }
  0x1b   :  { %1555 = vmatmul.msk.f32.gmra.mxu2 %vm57_vm0, %v25_v42  ;;  %1563 = vmatmul.msk.f32.gmra.mxu3 %vm57_vm0, %v25_v42  ;;  %3327 = vst [vmem:[#allocation10_spill] sm:$0xff] %v2157_v0  ;;  %v2241_v14 = vld [vmem:[%s3232_s2 + $0x28] sm:$0xff]  ;;  %v2249_v15 = vld [vmem:[%s3232_s2 + $0x30] sm:$0xff]  ;;  %v2254_v16 = vld [vmem:[%s3232_s2 + $0x38] sm:$0xff] }
  0x1c   :  { %318 = vmatpush.msrb.mxu0 %v2029_v43  ;;  %338 = vmatpush.msrb.mxu1 %v2034_v44  ;;  %3328 = vst [vmem:[#allocation11_spill] sm:$0xff] %v2162_v1  ;;  %v28_v29 = vld [vmem:[%s3231_s0 + $0x28] sm:$0xff]  ;;  %v2266_v42 = vld [vmem:[%s3232_s2] sm:$0xff] }
  0x1d   :  { %378 = vmatpush.msrb.mxu3 %v2043_v45  ;;  %358 = vmatpush.msrb.mxu2 %v2048_v46  ;;  %3329 = vst [vmem:[#allocation12_spill] sm:$0xff] %v2170_v2 }
  0x1e   :  { %319 = vmatpush.msrb.mxu0 %v2055_v47  ;;  %339 = vmatpush.msrb.mxu1 %v2060_v48  ;;  %3330 = vst [vmem:[#allocation13_spill] sm:$0xff] %v2175_v3 }
  0x1f   :  { %379 = vmatpush.msrb.mxu3 %v2067_v49  ;;  %359 = vmatpush.msrb.mxu2 %v2072_v50  ;;  %3331 = vst [vmem:[#allocation14_spill] sm:$0xff] %v2187_v5 }
  0x20   :  { %320 = vmatpush.msrb.mxu0 %v2078_v51  ;;  %340 = vmatpush.msrb.mxu1 %v2083_v52  ;;  %3332 = vst [vmem:[#allocation15_spill] sm:$0xff] %v2192_v6 }
  0x21   :  { %380 = vmatpush.msrb.mxu3 %v2091_v53  ;;  %360 = vmatpush.msrb.mxu2 %v2096_v54  ;;  %3333 = vst [vmem:[#allocation16_spill] sm:$0xff] %v2201_v7 }
  0x22   :  { %1540 = vmatmul.msk.f32.gmra.mxu0 %vm57_vm0, %v26_v55  ;;  %1548 = vmatmul.msk.f32.gmra.mxu1 %vm57_vm0, %v26_v55  ;;  %3334 = vst [vmem:[#allocation17_spill] sm:$0xff] %v2206_v8 }
  0x23   :  { %1556 = vmatmul.msk.f32.gmra.mxu2 %vm57_vm0, %v26_v55  ;;  %1564 = vmatmul.msk.f32.gmra.mxu3 %vm57_vm0, %v26_v55  ;;  %3335 = vst [vmem:[#allocation18_spill] sm:$0xff] %v2213_v9  ;;  %v2271_v55 = vld [vmem:[%s3232_s2 + $0x8] sm:$0xff] }
  0x24   :  { %321 = vmatpush.msrb.mxu0 %v2108_v56  ;;  %341 = vmatpush.msrb.mxu1 %v2113_v57  ;;  %3336 = vst [vmem:[#allocation19_spill] sm:$0xff] %v2218_v10 }
  0x25   :  { %381 = vmatpush.msrb.mxu3 %v2122_v58  ;;  %361 = vmatpush.msrb.mxu2 %v2127_v59  ;;  %3337 = vst [vmem:[#allocation20_spill] sm:$0xff] %v2225_v11 }
  0x26   :  { %322 = vmatpush.msrb.mxu0 %v2134_v60  ;;  %342 = vmatpush.msrb.mxu1 %v2139_v61  ;;  %3338 = vst [vmem:[#allocation21_spill] sm:$0xff] %v2230_v12 }
  0x27   :  { %382 = vmatpush.msrb.mxu3 %v2146_v62  ;;  %362 = vmatpush.msrb.mxu2 %v2151_v63  ;;  %3339 = vst [vmem:[#allocation22_spill] sm:$0xff] %v2236_v13 }
  0x28   :  { %323 = vmatpush.msrb.mxu0 %v2157_v0  ;;  %343 = vmatpush.msrb.mxu1 %v2162_v1  ;;  %3340 = vst [vmem:[#allocation23_spill] sm:$0xff] %v2241_v14 }
  0x29   :  { %383 = vmatpush.msrb.mxu3 %v2170_v2  ;;  %363 = vmatpush.msrb.mxu2 %v2175_v3  ;;  %3341 = vst [vmem:[#allocation24_spill] sm:$0xff] %v2249_v15 }
  0x2a   :  { %1541 = vmatmul.msk.f32.gmra.mxu0 %vm57_vm0, %v27_v4  ;;  %1549 = vmatmul.msk.f32.gmra.mxu1 %vm57_vm0, %v27_v4  ;;  %3342 = vst [vmem:[#allocation25_spill] sm:$0xff] %v2254_v16 }
  0x2b   :  { %1557 = vmatmul.msk.f32.gmra.mxu2 %vm57_vm0, %v27_v4  ;;  %1565 = vmatmul.msk.f32.gmra.mxu3 %vm57_vm0, %v27_v4  ;;  %3343 = vst [vmem:[#allocation26_spill] sm:$0xff] %v2266_v42  ;;  %v2280_v4 = vld [vmem:[%s3232_s2 + $0x10] sm:$0xff] }
  0x2c   :  { %324 = vmatpush.msrb.mxu0 %v2187_v5  ;;  %344 = vmatpush.msrb.mxu1 %v2192_v6  ;;  %3344 = vst [vmem:[#allocation27_spill] sm:$0xff] %v2271_v55 }
  0x2d   :  { %384 = vmatpush.msrb.mxu3 %v2201_v7  ;;  %364 = vmatpush.msrb.mxu2 %v2206_v8  ;;  %3345 = vst [vmem:[#allocation28_spill] sm:$0xff] %v2280_v4 }
  0x2e   :  { %325 = vmatpush.msrb.mxu0 %v2213_v9  ;;  %345 = vmatpush.msrb.mxu1 %v2218_v10 }
  0x2f   :  { %385 = vmatpush.msrb.mxu3 %v2225_v11  ;;  %365 = vmatpush.msrb.mxu2 %v2230_v12 }
  0x30   :  { %326 = vmatpush.msrb.mxu0 %v2236_v13  ;;  %346 = vmatpush.msrb.mxu1 %v2241_v14  ;;  %v2285_v14 = vld [vmem:[%s3232_s2 + $0x18] sm:$0xff] }
  0x31   :  { %366 = vmatpush.msrb.mxu2 %v2249_v15  ;;  %386 = vmatpush.msrb.mxu3 %v2254_v16  ;;  %3346 = vst [vmem:[#allocation29_spill] sm:$0xff] %v2285_v14  ;;  %v29_v16 = vld [vmem:[%s3231_s0 + $0x30] sm:$0xff] }
  0x32   :  { %1542 = vmatmul.msk.f32.gmra.mxu0 %vm57_vm0, %v28_v29  ;;  %1550 = vmatmul.msk.f32.gmra.mxu1 %vm57_vm0, %v28_v29 }
  0x33   :  { %1558 = vmatmul.msk.f32.gmra.mxu2 %vm57_vm0, %v28_v29  ;;  %1566 = vmatmul.msk.f32.gmra.mxu3 %vm57_vm0, %v28_v29  ;;  %v30_v29 = vld [vmem:[%s3231_s0 + $0x38] sm:$0xff] }
  0x34   :  { %327 = vmatpush.msrb.mxu0 %v2266_v42  ;;  %347 = vmatpush.msrb.mxu1 %v2271_v55 }
  0x35   :  { %367 = vmatpush.msrb.mxu2 %v2280_v4  ;;  %387 = vmatpush.msrb.mxu3 %v2285_v14 }
  0x36   :  { %464 = vmatpush.msra.mxu0 %v1873_v17  ;;  %484 = vmatpush.msra.mxu1 %v1878_v18 }
  0x37   :  { %504 = vmatpush.msra.mxu2 %v1890_v20  ;;  %524 = vmatpush.msra.mxu3 %v1885_v19 }
  0x38   :  { %465 = vmatpush.msra.mxu0 %v1897_v21  ;;  %485 = vmatpush.msra.mxu1 %v1902_v22 }
  0x39   :  { %505 = vmatpush.msra.mxu2 %v1914_v24  ;;  %525 = vmatpush.msra.mxu3 %v1909_v23 }
  0x3a   :  { %1543 = vmatmul.msk.f32.gmra.mxu0 %vm57_vm0, %v29_v16  ;;  %1551 = vmatmul.msk.f32.gmra.mxu1 %vm57_vm0, %v29_v16 }
  0x3b   :  { %1559 = vmatmul.msk.f32.gmra.mxu2 %vm57_vm0, %v29_v16  ;;  %1567 = vmatmul.msk.f32.gmra.mxu3 %vm57_vm0, %v29_v16  ;;  %v1793_v16 = vmov 0.0  }
  0x3c   :  { %466 = vmatpush.msra.mxu0 %v1920_v25  ;;  %486 = vmatpush.msra.mxu1 %v1925_v26 }
  0x3d   :  { %506 = vmatpush.msra.mxu2 %v1938_v28  ;;  %526 = vmatpush.msra.mxu3 %v1933_v27 }
  0x3e   :  { %467 = vmatpush.msra.mxu0 %v1950_v30  ;;  %487 = vmatpush.msra.mxu1 %v1955_v31 }
  0x3f   :  { %507 = vmatpush.msra.mxu2 %v1969_v33  ;;  %527 = vmatpush.msra.mxu3 %v1964_v32 }
  0x40   :  { %468 = vmatpush.msra.mxu0 %v1976_v34  ;;  %488 = vmatpush.msra.mxu1 %v1981_v35 }
  0x41   :  { %508 = vmatpush.msra.mxu2 %v1993_v37  ;;  %528 = vmatpush.msra.mxu3 %v1988_v36 }
  0x42   :  { %1544 = vmatmul.msk.f32.gmra.mxu0 %vm57_vm0, %v30_v29  ;;  %1552 = vmatmul.msk.f32.gmra.mxu1 %vm57_vm0, %v30_v29 }
  0x43   :  { %1560 = vmatmul.msk.f32.gmra.mxu2 %vm57_vm0, %v30_v29  ;;  %1568 = vmatmul.msk.f32.gmra.mxu3 %vm57_vm0, %v30_v29  ;;  %v3347_v29 = vld [vmem:[#allocation23_spill] sm:$0xff] }
  0x44   :  { %469 = vmatpush.msra.mxu0 %v1999_v38  ;;  %489 = vmatpush.msra.mxu1 %v2004_v39 }
  0x45   :  { %509 = vmatpush.msra.mxu2 %v2017_v41  ;;  %529 = vmatpush.msra.mxu3 %v2012_v40 }
  0x46   :  { %470 = vmatpush.msra.mxu0 %v2029_v43  ;;  %490 = vmatpush.msra.mxu1 %v2034_v44 }
  0x47   :  { %510 = vmatpush.msra.mxu2 %v2048_v46  ;;  %530 = vmatpush.msra.mxu3 %v2043_v45 }
  0x48   :  { %471 = vmatpush.msra.mxu0 %v2055_v47  ;;  %491 = vmatpush.msra.mxu1 %v2060_v48 }
  0x49   :  { %511 = vmatpush.msra.mxu2 %v2072_v50  ;;  %531 = vmatpush.msra.mxu3 %v2067_v49 }
  0x4a   :  { %328 = vmatmul.f32.vlgmr.msrb.gmra.mxu0 %v1793_v16  ;;  %348 = vmatmul.f32.vlgmr.msrb.gmra.mxu1 %v1793_v16 }
  0x4b   :  { %368 = vmatmul.f32.vlgmr.msrb.gmra.mxu2 %v1793_v16  ;;  %388 = vmatmul.f32.vlgmr.msrb.gmra.mxu3 %v1793_v16  ;;  %v3348_v16 = vld [vmem:[#allocation25_spill] sm:$0xff] }
  0x4c   :  { %472 = vmatpush.msra.mxu0 %v2078_v51  ;;  %492 = vmatpush.msra.mxu1 %v2083_v52 }
  0x4d   :  { %512 = vmatpush.msra.mxu2 %v2096_v54  ;;  %532 = vmatpush.msra.mxu3 %v2091_v53 }
  0x4e   :  { %473 = vmatpush.msra.mxu0 %v2108_v56  ;;  %493 = vmatpush.msra.mxu1 %v2113_v57 }
  0x4f   :  { %513 = vmatpush.msra.mxu2 %v2127_v59  ;;  %533 = vmatpush.msra.mxu3 %v2122_v58 }
  0x50   :  { %474 = vmatpush.msra.mxu0 %v2134_v60  ;;  %494 = vmatpush.msra.mxu1 %v2139_v61 }
  0x51   :  { %514 = vmatpush.msra.mxu2 %v2151_v63  ;;  %534 = vmatpush.msra.mxu3 %v2146_v62 }
  0x52   :  { %475 = vmatpush.msra.mxu0 %v2157_v0  ;;  %495 = vmatpush.msra.mxu1 %v2162_v1 }
  0x53   :  { %515 = vmatpush.msra.mxu2 %v2175_v3  ;;  %535 = vmatpush.msra.mxu3 %v2170_v2 }
  0x54   :  { %476 = vmatpush.msra.mxu0 %v2187_v5  ;;  %496 = vmatpush.msra.mxu1 %v2192_v6 }
  0x55   :  { %516 = vmatpush.msra.mxu2 %v2206_v8  ;;  %536 = vmatpush.msra.mxu3 %v2201_v7 }
  0x56   :  { %477 = vmatpush.msra.mxu0 %v2213_v9  ;;  %497 = vmatpush.msra.mxu1 %v2218_v10 }
  0x57   :  { %517 = vmatpush.msra.mxu2 %v2230_v12  ;;  %537 = vmatpush.msra.mxu3 %v2225_v11 }
  0x58   :  { %478 = vmatpush.msra.mxu0 %v2236_v13  ;;  %498 = vmatpush.msra.mxu1 %v3347_v29 }
  0x59   :  { %518 = vmatpush.msra.mxu2 %v2249_v15  ;;  %538 = vmatpush.msra.mxu3 %v3348_v16 }
  0x5a   :  { %479 = vmatpush.msra.mxu0 %v2266_v42  ;;  %499 = vmatpush.msra.mxu1 %v2271_v55 }
  0x5b   :  { %519 = vmatpush.msra.mxu2 %v2280_v4  ;;  %539 = vmatpush.msra.mxu3 %v2285_v14 }
  0x5c   :  { %617 = vmatpush.msrb.mxu0 %v1873_v17  ;;  %637 = vmatpush.msrb.mxu1 %v1878_v18 }
  0x5d   :  { %657 = vmatpush.msrb.mxu2 %v1890_v20  ;;  %677 = vmatpush.msrb.mxu3 %v1885_v19 }
  0x5e   :  { %618 = vmatpush.msrb.mxu0 %v1897_v21  ;;  %638 = vmatpush.msrb.mxu1 %v1902_v22 }
  0x5f   :  { %658 = vmatpush.msrb.mxu2 %v1914_v24  ;;  %678 = vmatpush.msrb.mxu3 %v1909_v23 }
  0x60   :  { %619 = vmatpush.msrb.mxu0 %v1920_v25  ;;  %639 = vmatpush.msrb.mxu1 %v1925_v26 }
  0x61   :  { %659 = vmatpush.msrb.mxu2 %v1938_v28  ;;  %679 = vmatpush.msrb.mxu3 %v1933_v27 }
  0x62   :  { %620 = vmatpush.msrb.mxu0 %v1950_v30  ;;  %640 = vmatpush.msrb.mxu1 %v1955_v31 }
  0x63   :  { %660 = vmatpush.msrb.mxu2 %v1969_v33  ;;  %680 = vmatpush.msrb.mxu3 %v1964_v32 }
  0x64   :  { %621 = vmatpush.msrb.mxu0 %v1976_v34  ;;  %641 = vmatpush.msrb.mxu1 %v1981_v35 }
  0x65   :  { %661 = vmatpush.msrb.mxu2 %v1993_v37  ;;  %681 = vmatpush.msrb.mxu3 %v1988_v36 }
  0x66   :  { %622 = vmatpush.msrb.mxu0 %v1999_v38  ;;  %642 = vmatpush.msrb.mxu1 %v2004_v39 }
  0x67   :  { %662 = vmatpush.msrb.mxu2 %v2017_v41  ;;  %682 = vmatpush.msrb.mxu3 %v2012_v40 }
  0x68   :  { %623 = vmatpush.msrb.mxu0 %v2029_v43  ;;  %643 = vmatpush.msrb.mxu1 %v2034_v44 }
  0x69   :  { %663 = vmatpush.msrb.mxu2 %v2048_v46  ;;  %683 = vmatpush.msrb.mxu3 %v2043_v45 }
  0x6a   :  { %624 = vmatpush.msrb.mxu0 %v2055_v47  ;;  %644 = vmatpush.msrb.mxu1 %v2060_v48 }
  0x6b   :  { %664 = vmatpush.msrb.mxu2 %v2072_v50  ;;  %684 = vmatpush.msrb.mxu3 %v2067_v49 }
  0x6c   :  { %625 = vmatpush.msrb.mxu0 %v2078_v51  ;;  %645 = vmatpush.msrb.mxu1 %v2083_v52 }
  0x6d   :  { %665 = vmatpush.msrb.mxu2 %v2096_v54  ;;  %685 = vmatpush.msrb.mxu3 %v2091_v53 }
  0x6e   :  { %626 = vmatpush.msrb.mxu0 %v2108_v56  ;;  %646 = vmatpush.msrb.mxu1 %v2113_v57 }
  0x6f   :  { %666 = vmatpush.msrb.mxu2 %v2127_v59  ;;  %686 = vmatpush.msrb.mxu3 %v2122_v58 }
  0x70   :  { %627 = vmatpush.msrb.mxu0 %v2134_v60  ;;  %647 = vmatpush.msrb.mxu1 %v2139_v61 }
  0x71   :  { %667 = vmatpush.msrb.mxu2 %v2151_v63  ;;  %687 = vmatpush.msrb.mxu3 %v2146_v62 }
  0x72   :  { %628 = vmatpush.msrb.mxu0 %v2157_v0  ;;  %648 = vmatpush.msrb.mxu1 %v2162_v1 }
  0x73   :  { %668 = vmatpush.msrb.mxu2 %v2175_v3  ;;  %688 = vmatpush.msrb.mxu3 %v2170_v2 }
  0x74   :  { %629 = vmatpush.msrb.mxu0 %v2187_v5  ;;  %649 = vmatpush.msrb.mxu1 %v2192_v6 }
  0x75   :  { %669 = vmatpush.msrb.mxu2 %v2206_v8  ;;  %689 = vmatpush.msrb.mxu3 %v2201_v7 }
  0x76   :  { %630 = vmatpush.msrb.mxu0 %v2213_v9  ;;  %650 = vmatpush.msrb.mxu1 %v2218_v10 }
  0x77   :  { %670 = vmatpush.msrb.mxu2 %v2230_v12  ;;  %690 = vmatpush.msrb.mxu3 %v2225_v11 }
  0x78   :  { %631 = vmatpush.msrb.mxu0 %v2236_v13  ;;  %651 = vmatpush.msrb.mxu1 %v3347_v29  ;;  %v47_v13 = vld [vmem:[%s3233_s3] sm:$0xf] }
  0x79   :  { %671 = vmatpush.msrb.mxu2 %v2249_v15  ;;  %691 = vmatpush.msrb.mxu3 %v3348_v16  ;;  %v49_v11 = vperm.slane %v47_v13, 0  ;;  %v50_v29 = vperm.slane %v47_v13, 1 }
  0x7a   :  { %632 = vmatpush.msrb.mxu0 %v2266_v42  ;;  %652 = vmatpush.msrb.mxu1 %v2271_v55 }
  0x7b   :  { %672 = vmatpush.msrb.mxu2 %v2280_v4  ;;  %692 = vmatpush.msrb.mxu3 %v2285_v14  ;;  %v2446_v4 = vperm.slane %v47_v13, 2  ;;  %v52_v14 = vperm.slane %v47_v13, 3 }
  0x87   :  { %v99_v10 = vpop.f32.mrf.mxu0  ;;  %v140_v12 = vpop.f32.mrf.mxu1 }
  0x8e   :  { %v2438_v9 = vpop.f32.mrf.mxu2  ;;  %v2440_v15 = vpop.f32.mrf.mxu3 }
  0x8f   :  { %v102_v16 = vpop.f32.mrf.mxu0  ;;  %v143_v42 = vpop.f32.mrf.mxu1 }
  0x90   :  { %v2442_v7 = vadd.f32 %v102_v16, %v49_v11  ;;  %v2444_v55 = vadd.f32 %v143_v42, %v50_v29 }
  0x92   :  { %3349 = vst [vmem:[#allocation30_spill] sm:$0xff] %v2442_v7 }
  0x93   :  { %3350 = vst [vmem:[#allocation31_spill] sm:$0xff] %v2444_v55 }
  0x96   :  { %v184_v8 = vpop.f32.mrf.mxu2  ;;  %v225_v6 = vpop.f32.mrf.mxu3 }
  0x97   :  { %v2449_v5 = vadd.f32 %v184_v8, %v2446_v4  ;;  %v2451_v2 = vadd.f32 %v225_v6, %v52_v14  ;;  %v105_v3 = vpop.f32.mrf.mxu0  ;;  %v146_v1 = vpop.f32.mrf.mxu1 }
  0x98   :  { %v2453_v0 = vadd.f32 %v105_v3, %v49_v11  ;;  %v2455_v62 = vadd.f32 %v146_v1, %v50_v29 }
  0x99   :  { %3351 = vst [vmem:[#allocation32_spill] sm:$0xff] %v2449_v5 }
  0x9a   :  { %3352 = vst [vmem:[#allocation33_spill] sm:$0xff] %v2451_v2 }
  0x9b   :  { %3353 = vst [vmem:[#allocation34_spill] sm:$0xff] %v2453_v0 }
  0x9c   :  { %3354 = vst [vmem:[#allocation35_spill] sm:$0xff] %v2455_v62 }
  0x9e   :  { %v187_v16 = vpop.f32.mrf.mxu2  ;;  %v228_v7 = vpop.f32.mrf.mxu3 }
  0x9f   :  { %v2458_v42 = vadd.f32 %v187_v16, %v2446_v4  ;;  %v2460_v55 = vadd.f32 %v228_v7, %v52_v14  ;;  %v108_v13 = vpop.f32.mrf.mxu0  ;;  %v149_v63 = vpop.f32.mrf.mxu1 }
  0xa0   :  { %v2462_v61 = vadd.f32 %v108_v13, %v49_v11  ;;  %v2464_v8 = vadd.f32 %v149_v63, %v50_v29 }
  0xa1   :  { %3355 = vst [vmem:[#allocation36_spill] sm:$0xff] %v2458_v42 }
  0xa2   :  { %3356 = vst [vmem:[#allocation37_spill] sm:$0xff] %v2460_v55 }
  0xa3   :  { %3357 = vst [vmem:[#allocation38_spill] sm:$0xff] %v2462_v61 }
  0xa4   :  { %3358 = vst [vmem:[#allocation39_spill] sm:$0xff] %v2464_v8 }
  0xa6   :  { %v190_v6 = vpop.f32.mrf.mxu2  ;;  %v231_v5 = vpop.f32.mrf.mxu3 }
  0xa7   :  { %v2467_v3 = vadd.f32 %v190_v6, %v2446_v4  ;;  %v2469_v1 = vadd.f32 %v231_v5, %v52_v14  ;;  %v111_v62 = vpop.f32.mrf.mxu0  ;;  %v152_v0 = vpop.f32.mrf.mxu1 }
  0xa8   :  { %v2471_v2 = vadd.f32 %v111_v62, %v49_v11  ;;  %v2473_v16 = vadd.f32 %v152_v0, %v50_v29 }
  0xa9   :  { %3359 = vst [vmem:[#allocation40_spill] sm:$0xff] %v2467_v3 }
  0xaa   :  { %3360 = vst [vmem:[#allocation41_spill] sm:$0xff] %v2469_v1 }
  0xab   :  { %3361 = vst [vmem:[#allocation42_spill] sm:$0xff] %v2471_v2 }
  0xac   :  { %3362 = vst [vmem:[#allocation43_spill] sm:$0xff] %v2473_v16 }
  0xae   :  { %v193_v7 = vpop.f32.mrf.mxu2  ;;  %v234_v42 = vpop.f32.mrf.mxu3 }
  0xaf   :  { %v2476_v13 = vadd.f32 %v193_v7, %v2446_v4  ;;  %v2478_v63 = vadd.f32 %v234_v42, %v52_v14  ;;  %v114_v8 = vpop.f32.mrf.mxu0  ;;  %v155_v61 = vpop.f32.mrf.mxu1 }
  0xb0   :  { %v2480_v55 = vadd.f32 %v114_v8, %v49_v11  ;;  %v2482_v6 = vadd.f32 %v155_v61, %v50_v29 }
  0xb1   :  { %3363 = vst [vmem:[#allocation44_spill] sm:$0xff] %v2476_v13 }
  0xb2   :  { %3364 = vst [vmem:[#allocation45_spill] sm:$0xff] %v2478_v63 }
  0xb3   :  { %3365 = vst [vmem:[#allocation46_spill] sm:$0xff] %v2480_v55 }
  0xb4   :  { %3366 = vst [vmem:[#allocation47_spill] sm:$0xff] %v2482_v6 }
  0xb6   :  { %v196_v5 = vpop.f32.mrf.mxu2  ;;  %v237_v3 = vpop.f32.mrf.mxu3 }
  0xb7   :  { %v2485_v62 = vadd.f32 %v196_v5, %v2446_v4  ;;  %v2487_v0 = vadd.f32 %v237_v3, %v52_v14  ;;  %v117_v16 = vpop.f32.mrf.mxu0  ;;  %v158_v2 = vpop.f32.mrf.mxu1  ;;  %v100_v3 = vadd.f32 %v99_v10, %v49_v11 }
  0xb8   :  { %v2489_v1 = vadd.f32 %v117_v16, %v49_v11  ;;  %v2491_v7 = vadd.f32 %v158_v2, %v50_v29 }
  0xb9   :  { %3367 = vst [vmem:[#allocation48_spill] sm:$0xff] %v2485_v62  ;;  %v141_v62 = vadd.f32 %v140_v12, %v50_v29 }
  0xba   :  { %3368 = vst [vmem:[#allocation49_spill] sm:$0xff] %v2487_v0 }
  0xbb   :  { %3369 = vst [vmem:[#allocation50_spill] sm:$0xff] %v2489_v1 }
  0xbc   :  { %3370 = vst [vmem:[#allocation51_spill] sm:$0xff] %v2491_v7 }
  0xbe   :  { %v199_v42 = vpop.f32.mrf.mxu2  ;;  %v240_v13 = vpop.f32.mrf.mxu3 }
  0xbf   :  { %v2494_v8 = vadd.f32 %v199_v42, %v2446_v4  ;;  %v2496_v61 = vadd.f32 %v240_v13, %v52_v14  ;;  %v120_v6 = vpop.f32.mrf.mxu0  ;;  %v161_v55 = vpop.f32.mrf.mxu1 }
  0xc0   :  { %v2498_v63 = vadd.f32 %v120_v6, %v49_v11  ;;  %v2500_v5 = vadd.f32 %v161_v55, %v50_v29  ;;  %v223_v6 = vadd.f32 %v2440_v15, %v52_v14 }
  0xc1   :  { %3371 = vst [vmem:[#allocation52_spill] sm:$0xff] %v2494_v8 }
  0xc2   :  { %3372 = vst [vmem:[#allocation53_spill] sm:$0xff] %v2496_v61 }
  0xc3   :  { %3373 = vst [vmem:[#allocation54_spill] sm:$0xff] %v2498_v63 }
  0xc4   :  { %3374 = vst [vmem:[#allocation55_spill] sm:$0xff] %v2500_v5 }
  0xc6   :  { %v202_v0 = vpop.f32.mrf.mxu2  ;;  %v243_v16 = vpop.f32.mrf.mxu3 }
  0xc7   :  { %v2503_v2 = vadd.f32 %v202_v0, %v2446_v4  ;;  %v2505_v7 = vadd.f32 %v243_v16, %v52_v14  ;;  %v329_v1 = vpop.f32.mrf.mxu0  ;;  %v349_v42 = vpop.f32.mrf.mxu1 }
  0xc8   :  { %v392_v8 = vadd.f32 %v329_v1, %v100_v3  ;;  %v393_v13 = vadd.f32 %v349_v42, %v141_v62  ;;  %v182_v1 = vadd.f32 %v2438_v9, %v2446_v4 }
  0xc9   :  { %3375 = vst [vmem:[#allocation56_spill] sm:$0xff] %v2503_v2 }
  0xca   :  { %3376 = vst [vmem:[#allocation57_spill] sm:$0xff] %v2505_v7  ;;  %v1569_v61 = vmul.f32 -1.442695, %v392_v8  ;;  %v1570_v60 = vmul.f32 -1.442695, %v393_v13 }
  0xcc   :  { %1601 = vpow2.f32 %v1569_v61 }
  0xcd   :  { %1603 = vpow2.f32 %v1570_v60 }
  0xce   :  { %v389_v55 = vpop.f32.mrf.mxu3  ;;  %v369_v16 = vpop.f32.mrf.mxu2 }
  0xcf   :  { %v395_v10 = vadd.f32 %v389_v55, %v223_v6  ;;  %v394_v61 = vadd.f32 %v369_v16, %v182_v1 }
  0xd1   :  { %v1571_v11 = vmul.f32 -1.442695, %v395_v10 }
  0xd2   :  { %v1602_v12 = vpop.eup %1601 }
  0xd3   :  { %v1604_v29 = vpop.eup %1603  ;;  %v399_v5 = vadd.f32 1.0, %v1602_v12  ;;  %1605 = vpow2.f32 %v1571_v11 }
  0xd4   :  { %v418_v0 = vadd.f32 1.0, %v1604_v29 }
  0xd5   :  { %1607 = vrcp.f32 %v399_v5  ;;  %v411_v13 = vand.u32 2147483648, %v399_v5  ;;  %v409_v10 = vand.u32 2147483647, %v399_v5  ;;  %vm405_vm3 = vweird.f32 %v399_v5 }
  0xd6   :  { %1609 = vrcp.f32 %v418_v0  ;;  %v430_v6 = vand.u32 2147483648, %v418_v0  ;;  %v428_v12 = vand.u32 2147483647, %v418_v0  ;;  %vm424_vm4 = vweird.f32 %v418_v0 }
  0xd7   :  { %v412_v4 = vor.u32 1.1754944e-38, %v411_v13  ;;  %vm410_vm6 = vcmp.eq.f32.partialorder %v409_v10, 8.507059e+37 }
  0xd8   :  { %v431_v1 = vor.u32 1.1754944e-38, %v430_v6  ;;  %vm429_vm8 = vcmp.eq.f32.partialorder %v428_v12, 8.507059e+37 }
  0xd9   :  { %v1606_v2 = vpop.eup %1605 }
  0xda   :  { %v438_v62 = vadd.f32 1.0, %v1606_v2 }
  0xdb   :  { %v1608_v8 = vpop.eup %1607 }
  0xdc   :  { %v1610_v14 = vpop.eup %1609  ;;  %v401_v60 = vmul.f32 %v1608_v8, %v399_v5  ;;  %1611 = vrcp.f32 %v438_v62  ;;  %vm406_vm1 = vweird.f32 %v1608_v8  ;;  %vm444_vm10 = vweird.f32 %v438_v62 }
  0xdd   :  { %v420_v15 = vmul.f32 %v1610_v14, %v418_v0  ;;  %1613 = vtanh.f32 %v394_v61  ;;  %vm425_vm2 = vweird.f32 %v1610_v14  ;;  %vm407_vm5 = vmor %vm405_vm3, %vm406_vm1  ;;  %v450_v0 = vand.u32 2147483648, %v438_v62 }
  0xde   :  { %v402_v3 = vsub.f32 1.0, %v401_v60  ;;  %vm426_vm7 = vmor %vm424_vm4, %vm425_vm2 }
  0xdf   :  { %v421_v42 = vsub.f32 1.0, %v420_v15  ;;  %v451_v6 = vor.u32 1.1754944e-38, %v450_v0 }
  0xe0   :  { %v403_v55 = vmul.f32 %v1608_v8, %v402_v3 }
  0xe1   :  { %v422_v11 = vmul.f32 %v1610_v14, %v421_v42 }
  0xe2   :  { %v1612_v29 = vpop.eup %1611  ;;  %v404_v9 = vadd.f32 %v1608_v8, %v403_v55 }
  0xe3   :  { %v423_v2 = vadd.f32 %v1610_v14, %v422_v11  ;;  %v440_v16 = vmul.f32 %v1612_v29, %v438_v62  ;;  %v1614_v61 = vpop.eup %1613  ;;  %vm445_vm9 = vweird.f32 %v1612_v29 }
  0xe4   :  { %v408_v60 = vsel %vm407_vm5, %v1608_v8, %v404_v9  ;;  %v448_v8 = vand.u32 2147483647, %v438_v62  ;;  %vm446_vm11 = vmor %vm444_vm10, %vm445_vm9 }
  0xe5   :  { %v413_v15 = vsel %vm410_vm6, %v412_v4, %v408_v60  ;;  %v427_v3 = vsel %vm426_vm7, %v1610_v14, %v423_v2  ;;  %v441_v7 = vsub.f32 1.0, %v440_v16  ;;  %v3406_v4 = vld [vmem:[#allocation32_spill] sm:$0xff] }
  0xe6   :  { %v432_v42 = vsel %vm429_vm8, %v431_v1, %v427_v3  ;;  %v455_v63 = vmul.f32 %v1614_v61, %v413_v15  ;;  %vm449_vm12 = vcmp.eq.f32.partialorder %v448_v8, 8.507059e+37 }
  0xe7   :  { %v454_v58 = vmul.f32 0.0, %v432_v42  ;;  %v442_v59 = vmul.f32 %v1612_v29, %v441_v7 }
  0xe9   :  { %v2510_v55 = vadd.f32 %v455_v63, %v454_v58  ;;  %v443_v5 = vadd.f32 %v1612_v29, %v442_v59 }
  0xeb   :  { %1615 = vtanh.f32 %v2510_v55  ;;  %v447_v13 = vsel %vm446_vm11, %v1612_v29, %v443_v5 }
  0xec   :  { %v452_v10 = vsel %vm449_vm12, %v451_v6, %v447_v13 }
  0xf1   :  { %v1616_v14 = vpop.eup %1615 }
  0xf2   :  { %v458_v11 = vmul.f32 %v1616_v14, %v452_v10 }
  0xf4   :  { %461 = vst [vmem:[%s3234_s4] sm:$0xff] %v458_v11  ;;  %480 = vmatmul.f32.vlgmr.msra.gmra.mxu0 %v458_v11  ;;  %500 = vmatmul.f32.vlgmr.msra.gmra.mxu1 %v458_v11 }
  0xf5   :  { %520 = vmatmul.f32.vlgmr.msra.gmra.mxu2 %v458_v11  ;;  %540 = vmatmul.f32.vlgmr.msra.gmra.mxu3 %v458_v11 }
  0xf6   :  { %770 = vmatpush.msra.mxu0 %v1873_v17  ;;  %790 = vmatpush.msra.mxu1 %v1878_v18  ;;  %v3377_v17 = vld [vmem:[#allocation5_spill] sm:$0xff]  ;;  %v3378_v18 = vld [vmem:[#allocation4_spill] sm:$0xff] }
  0xf7   :  { %810 = vmatpush.msra.mxu2 %v1890_v20  ;;  %830 = vmatpush.msra.mxu3 %v1885_v19  ;;  %v3379_v19 = vld [vmem:[#allocation6_spill] sm:$0xff]  ;;  %v3380_v20 = vld [vmem:[#allocation7_spill] sm:$0xff] }
  0xf8   :  { %771 = vmatpush.msra.mxu0 %v1897_v21  ;;  %791 = vmatpush.msra.mxu1 %v1902_v22  ;;  %v3381_v21 = vld [vmem:[#allocation9_spill] sm:$0xff]  ;;  %v3382_v22 = vld [vmem:[#allocation8_spill] sm:$0xff] }
  0xf9   :  { %811 = vmatpush.msra.mxu2 %v1914_v24  ;;  %831 = vmatpush.msra.mxu3 %v1909_v23  ;;  %v3383_v23 = vld [vmem:[#allocation10_spill] sm:$0xff]  ;;  %v3384_v24 = vld [vmem:[#allocation11_spill] sm:$0xff] }
  0xfa   :  { %772 = vmatpush.msra.mxu0 %v1920_v25  ;;  %792 = vmatpush.msra.mxu1 %v1925_v26  ;;  %v3385_v25 = vld [vmem:[#allocation13_spill] sm:$0xff]  ;;  %v3386_v26 = vld [vmem:[#allocation12_spill] sm:$0xff] }
  0xfb   :  { %812 = vmatpush.msra.mxu2 %v1938_v28  ;;  %832 = vmatpush.msra.mxu3 %v1933_v27  ;;  %v3387_v27 = vld [vmem:[#allocation14_spill] sm:$0xff]  ;;  %v3388_v28 = vld [vmem:[#allocation15_spill] sm:$0xff] }
  0xfc   :  { %773 = vmatpush.msra.mxu0 %v1950_v30  ;;  %793 = vmatpush.msra.mxu1 %v1955_v31  ;;  %v3389_v30 = vld [vmem:[#allocation17_spill] sm:$0xff]  ;;  %v3390_v31 = vld [vmem:[#allocation16_spill] sm:$0xff] }
  0xfd   :  { %813 = vmatpush.msra.mxu2 %v1969_v33  ;;  %833 = vmatpush.msra.mxu3 %v1964_v32  ;;  %v3391_v32 = vld [vmem:[#allocation18_spill] sm:$0xff]  ;;  %v3392_v33 = vld [vmem:[#allocation19_spill] sm:$0xff] }
  0xfe   :  { %774 = vmatpush.msra.mxu0 %v1976_v34  ;;  %794 = vmatpush.msra.mxu1 %v1981_v35  ;;  %v3393_v34 = vld [vmem:[#allocation21_spill] sm:$0xff]  ;;  %v3394_v35 = vld [vmem:[#allocation20_spill] sm:$0xff] }
  0xff   :  { %814 = vmatpush.msra.mxu2 %v1993_v37  ;;  %834 = vmatpush.msra.mxu3 %v1988_v36  ;;  %v3395_v36 = vld [vmem:[#allocation22_spill] sm:$0xff]  ;;  %v3396_v37 = vld [vmem:[#allocation23_spill] sm:$0xff] }
 0x100   :  { %775 = vmatpush.msra.mxu0 %v1999_v38  ;;  %795 = vmatpush.msra.mxu1 %v2004_v39  ;;  %v3397_v38 = vld [vmem:[#allocation24_spill] sm:$0xff]  ;;  %v3398_v39 = vld [vmem:[#allocation25_spill] sm:$0xff] }
 0x101   :  { %815 = vmatpush.msra.mxu2 %v2017_v41  ;;  %835 = vmatpush.msra.mxu3 %v2012_v40  ;;  %v3399_v40 = vld [vmem:[#allocation26_spill] sm:$0xff]  ;;  %v3400_v41 = vld [vmem:[#allocation27_spill] sm:$0xff] }
 0x102   :  { %776 = vmatpush.msra.mxu0 %v2029_v43  ;;  %796 = vmatpush.msra.mxu1 %v2034_v44  ;;  %v3401_v43 = vld [vmem:[#allocation28_spill] sm:$0xff]  ;;  %v3402_v44 = vld [vmem:[#allocation29_spill] sm:$0xff] }
 0x103   :  { %816 = vmatpush.msra.mxu2 %v2048_v46  ;;  %836 = vmatpush.msra.mxu3 %v2043_v45 }
 0x104   :  { %777 = vmatpush.msra.mxu0 %v2055_v47  ;;  %797 = vmatpush.msra.mxu1 %v2060_v48  ;;  %v3403_v47 = vld [vmem:[#allocation30_spill] sm:$0xff] }
 0x105   :  { %817 = vmatpush.msra.mxu2 %v2072_v50  ;;  %837 = vmatpush.msra.mxu3 %v2067_v49  ;;  %v3404_v49 = vld [vmem:[#allocation31_spill] sm:$0xff] }
 0x106   :  { %778 = vmatpush.msra.mxu0 %v2078_v51  ;;  %798 = vmatpush.msra.mxu1 %v2083_v52 }
 0x107   :  { %818 = vmatpush.msra.mxu2 %v2096_v54  ;;  %838 = vmatpush.msra.mxu3 %v2091_v53  ;;  %v3405_v54 = vld [vmem:[#allocation33_spill] sm:$0xff] }
 0x108   :  { %779 = vmatpush.msra.mxu0 %v2108_v56  ;;  %799 = vmatpush.msra.mxu1 %v2113_v57 }
 0x109   :  { %819 = vmatpush.msra.mxu2 %v3377_v17  ;;  %839 = vmatpush.msra.mxu3 %v3378_v18 }
 0x10a   :  { %780 = vmatpush.msra.mxu0 %v3379_v19  ;;  %800 = vmatpush.msra.mxu1 %v3380_v20 }
 0x10b   :  { %820 = vmatpush.msra.mxu2 %v3381_v21  ;;  %840 = vmatpush.msra.mxu3 %v3382_v22 }
 0x10c   :  { %781 = vmatpush.msra.mxu0 %v3383_v23  ;;  %801 = vmatpush.msra.mxu1 %v3384_v24 }
 0x10d   :  { %821 = vmatpush.msra.mxu2 %v3385_v25  ;;  %841 = vmatpush.msra.mxu3 %v3386_v26 }
 0x10e   :  { %782 = vmatpush.msra.mxu0 %v3387_v27  ;;  %802 = vmatpush.msra.mxu1 %v3388_v28 }
 0x10f   :  { %822 = vmatpush.msra.mxu2 %v3389_v30  ;;  %842 = vmatpush.msra.mxu3 %v3390_v31 }
 0x110   :  { %783 = vmatpush.msra.mxu0 %v3391_v32  ;;  %803 = vmatpush.msra.mxu1 %v3392_v33 }
 0x111   :  { %823 = vmatpush.msra.mxu2 %v3393_v34  ;;  %843 = vmatpush.msra.mxu3 %v3394_v35 }
 0x112   :  { %784 = vmatpush.msra.mxu0 %v3395_v36  ;;  %804 = vmatpush.msra.mxu1 %v3396_v37 }
 0x113   :  { %824 = vmatpush.msra.mxu2 %v3397_v38  ;;  %844 = vmatpush.msra.mxu3 %v3398_v39  ;;  %v2600_v38 = vld [vmem:[%s3232_s2 + $0x1e8] sm:$0xff]  ;;  %v2606_v39 = vld [vmem:[%s3232_s2 + $0x1f0] sm:$0xff] }
 0x114   :  { %785 = vmatpush.msra.mxu0 %v3399_v40  ;;  %805 = vmatpush.msra.mxu1 %v3400_v41 }
 0x115   :  { %825 = vmatpush.msra.mxu2 %v3401_v43  ;;  %845 = vmatpush.msra.mxu3 %v3402_v44 }
 0x171   :  { %v481_v45 = vpop.f32.mrf.mxu0  ;;  %v501_v46 = vpop.f32.mrf.mxu1 }
 0x172   :  { %v544_v48 = vadd.f32 %v481_v45, %v3403_v47  ;;  %v545_v50 = vadd.f32 %v501_v46, %v3404_v49  ;;  %v2612_v45 = vld [vmem:[%s3232_s2 + $0x1f8] sm:$0xff]  ;;  %v2618_v46 = vld [vmem:[%s3232_s2 + $0x1c0] sm:$0xff]  ;;  %v2624_v47 = vld [vmem:[%s3232_s2 + $0x1c8] sm:$0xff] }
 0x173   :  { %v2636_v49 = vld [vmem:[%s3232_s2 + $0x1d8] sm:$0xff] }
 0x174   :  { %v1572_v51 = vmul.f32 -1.442695, %v544_v48  ;;  %v1573_v52 = vmul.f32 -1.442695, %v545_v50  ;;  %v2630_v48 = vld [vmem:[%s3232_s2 + $0x1d0] sm:$0xff]  ;;  %v2642_v50 = vld [vmem:[%s3232_s2 + $0x1a0] sm:$0xff] }
 0x176   :  { %1617 = vpow2.f32 %v1572_v51  ;;  %v2648_v51 = vld [vmem:[%s3232_s2 + $0x1a8] sm:$0xff] }
 0x177   :  { %1619 = vpow2.f32 %v1573_v52  ;;  %v2654_v52 = vld [vmem:[%s3232_s2 + $0x1b0] sm:$0xff] }
 0x178   :  { %v541_v53 = vpop.f32.mrf.mxu3  ;;  %v521_v62 = vpop.f32.mrf.mxu2 }
 0x179   :  { %v547_v56 = vadd.f32 %v541_v53, %v3405_v54  ;;  %v546_v2 = vadd.f32 %v521_v62, %v3406_v4  ;;  %v2660_v53 = vld [vmem:[%s3232_s2 + $0x1b8] sm:$0xff]  ;;  %v2666_v54 = vld [vmem:[%s3232_s2 + $0x180] sm:$0xff] }
 0x17a   :  { %v2708_v62 = vld [vmem:[%s3232_s2 + $0x178] sm:$0xff] }
 0x17b   :  { %v1574_v57 = vmul.f32 -1.442695, %v547_v56  ;;  %v2672_v56 = vld [vmem:[%s3232_s2 + $0x188] sm:$0xff]  ;;  %v2732_v4 = vld [vmem:[%s3232_s2 + $0x158] sm:$0xff] }
 0x17c   :  { %v1618_v58 = vpop.eup %1617 }
 0x17d   :  { %v1620_v59 = vpop.eup %1619  ;;  %v551_v63 = vadd.f32 1.0, %v1618_v58  ;;  %1621 = vpow2.f32 %v1574_v57  ;;  %v2678_v57 = vld [vmem:[%s3232_s2 + $0x190] sm:$0xff]  ;;  %v2684_v58 = vld [vmem:[%s3232_s2 + $0x198] sm:$0xff] }
 0x17e   :  { %v570_v7 = vadd.f32 1.0, %v1620_v59  ;;  %v2690_v59 = vld [vmem:[%s3232_s2 + $0x160] sm:$0xff] }
 0x17f   :  { %1623 = vrcp.f32 %v551_v63  ;;  %v563_v3 = vand.u32 2147483648, %v551_v63  ;;  %v561_v0 = vand.u32 2147483647, %v551_v63  ;;  %vm557_vm15 = vweird.f32 %v551_v63 }
 0x180   :  { %1625 = vrcp.f32 %v570_v7  ;;  %v582_v42 = vand.u32 2147483648, %v570_v7  ;;  %v580_v13 = vand.u32 2147483647, %v570_v7  ;;  %vm576_vm0 = vweird.f32 %v570_v7 }
 0x181   :  { %v564_v10 = vor.u32 1.1754944e-38, %v563_v3  ;;  %vm562_vm3 = vcmp.eq.f32.partialorder %v561_v0, 8.507059e+37  ;;  %v2774_v3 = vld [vmem:[%s3232_s2 + $0x110] sm:$0xff]  ;;  %v2792_v0 = vld [vmem:[%s3232_s2 + $0xe8] sm:$0xff] }
 0x182   :  { %v583_v18 = vor.u32 1.1754944e-38, %v582_v42  ;;  %vm581_vm4 = vcmp.eq.f32.partialorder %v580_v13, 8.507059e+37  ;;  %v2780_v42 = vld [vmem:[%s3232_s2 + $0x118] sm:$0xff] }
 0x183   :  { %v1622_v12 = vpop.eup %1621  ;;  %v2804_v13 = vld [vmem:[%s3232_s2 + $0xf8] sm:$0xff] }
 0x184   :  { %v590_v29 = vadd.f32 1.0, %v1622_v12  ;;  %v2714_v12 = vld [vmem:[%s3232_s2 + $0x140] sm:$0xff] }
 0x185   :  { %v1624_v9 = vpop.eup %1623 }
 0x186   :  { %v1626_v16 = vpop.eup %1625  ;;  %v553_v1 = vmul.f32 %v1624_v9, %v551_v63  ;;  %1627 = vrcp.f32 %v590_v29  ;;  %vm558_vm13 = vweird.f32 %v1624_v9  ;;  %v602_v31 = vand.u32 2147483648, %v590_v29  ;;  %v2696_v63 = vld [vmem:[%s3232_s2 + $0x168] sm:$0xff] }
 0x187   :  { %v572_v60 = vmul.f32 %v1626_v16, %v570_v7  ;;  %1629 = vtanh.f32 %v546_v2  ;;  %vm577_vm14 = vweird.f32 %v1626_v16  ;;  %vm559_vm1 = vmor %vm557_vm15, %vm558_vm13  ;;  %vm596_vm6 = vweird.f32 %v590_v29  ;;  %v2702_v7 = vld [vmem:[%s3232_s2 + $0x170] sm:$0xff]  ;;  %v2738_v2 = vld [vmem:[%s3232_s2 + $0x120] sm:$0xff] }
 0x188   :  { %v554_v61 = vsub.f32 1.0, %v553_v1  ;;  %vm578_vm2 = vmor %vm576_vm0, %vm577_vm14  ;;  %v600_v32 = vand.u32 2147483647, %v590_v29  ;;  %v603_v34 = vor.u32 1.1754944e-38, %v602_v31  ;;  %v2750_v1 = vld [vmem:[%s3232_s2 + $0x130] sm:$0xff]  ;;  %v2906_v31 = vld [vmem:[%s3232_s2 + $0x40] sm:$0xff] }
 0x189   :  { %v573_v15 = vsub.f32 1.0, %v572_v60  ;;  %v2756_v60 = vld [vmem:[%s3232_s2 + $0x138] sm:$0xff]  ;;  %3421 = vst [vmem:[#allocation18_spill] sm:$0xff] %v2906_v31 }
 0x18a   :  { %v555_v5 = vmul.f32 %v1624_v9, %v554_v61  ;;  %vm601_vm8 = vcmp.eq.f32.partialorder %v600_v32, 8.507059e+37  ;;  %v2762_v61 = vld [vmem:[%s3232_s2 + $0x100] sm:$0xff]  ;;  %v2912_v32 = vld [vmem:[%s3232_s2 + $0x48] sm:$0xff] }
 0x18b   :  { %v574_v8 = vmul.f32 %v1626_v16, %v573_v15  ;;  %v2768_v15 = vld [vmem:[%s3232_s2 + $0x108] sm:$0xff]  ;;  %3422 = vst [vmem:[#allocation19_spill] sm:$0xff] %v2912_v32 }
 0x18c   :  { %v1628_v6 = vpop.eup %1627  ;;  %v556_v14 = vadd.f32 %v1624_v9, %v555_v5  ;;  %v2786_v5 = vld [vmem:[%s3232_s2 + $0xe0] sm:$0xff] }
 0x18d   :  { %v575_v11 = vadd.f32 %v1626_v16, %v574_v8  ;;  %v592_v17 = vmul.f32 %v1628_v6, %v590_v29  ;;  %v1630_v20 = vpop.eup %1629  ;;  %vm597_vm5 = vweird.f32 %v1628_v6  ;;  %v2720_v29 = vld [vmem:[%s3232_s2 + $0x148] sm:$0xff]  ;;  %v2798_v8 = vld [vmem:[%s3232_s2 + $0xf0] sm:$0xff] }
 0x18e   :  { %v560_v19 = vsel %vm559_vm1, %v1624_v9, %v556_v14  ;;  %vm598_vm7 = vmor %vm596_vm6, %vm597_vm5  ;;  %v2726_v9 = vld [vmem:[%s3232_s2 + $0x150] sm:$0xff]  ;;  %v2816_v14 = vld [vmem:[%s3232_s2 + $0xc8] sm:$0xff] }
 0x18f   :  { %v565_v21 = vsel %vm562_vm3, %v564_v10, %v560_v19  ;;  %v579_v22 = vsel %vm578_vm2, %v1626_v16, %v575_v11  ;;  %v593_v23 = vsub.f32 1.0, %v592_v17  ;;  %v2744_v16 = vld [vmem:[%s3232_s2 + $0x128] sm:$0xff]  ;;  %v2822_v10 = vld [vmem:[%s3232_s2 + $0xd0] sm:$0xff]  ;;  %v2828_v11 = vld [vmem:[%s3232_s2 + $0xd8] sm:$0xff] }
 0x190   :  { %v584_v24 = vsel %vm581_vm4, %v583_v18, %v579_v22  ;;  %v607_v25 = vmul.f32 %v1630_v20, %v565_v21  ;;  %3407 = vst [vmem:[#allocation5_spill] sm:$0xff] %v2822_v10  ;;  %v2834_v17 = vld [vmem:[%s3232_s2 + $0xa0] sm:$0xff]  ;;  %v2840_v18 = vld [vmem:[%s3232_s2 + $0xa8] sm:$0xff]  ;;  %v2846_v19 = vld [vmem:[%s3232_s2 + $0xb0] sm:$0xff] }
 0x191   :  { %v606_v26 = vmul.f32 %v584_v24, %v2510_v55  ;;  %v594_v27 = vmul.f32 %v1628_v6, %v593_v23  ;;  %v2594_v55 = vld [vmem:[%s3232_s2 + $0x1e0] sm:$0xff]  ;;  %3408 = vst [vmem:[#allocation4_spill] sm:$0xff] %v2828_v11  ;;  %v2852_v20 = vld [vmem:[%s3232_s2 + $0xb8] sm:$0xff]  ;;  %v2864_v22 = vld [vmem:[%s3232_s2 + $0x88] sm:$0xff] }
 0x192   :  { %3409 = vst [vmem:[#allocation6_spill] sm:$0xff] %v2834_v17  ;;  %v2858_v21 = vld [vmem:[%s3232_s2 + $0x80] sm:$0xff]  ;;  %v2870_v23 = vld [vmem:[%s3232_s2 + $0x90] sm:$0xff]  ;;  %v2876_v24 = vld [vmem:[%s3232_s2 + $0x98] sm:$0xff] }
 0x193   :  { %v2585_v28 = vadd.f32 %v607_v25, %v606_v26  ;;  %v595_v30 = vadd.f32 %v1628_v6, %v594_v27  ;;  %3410 = vst [vmem:[#allocation7_spill] sm:$0xff] %v2840_v18  ;;  %v2882_v25 = vld [vmem:[%s3232_s2 + $0x60] sm:$0xff]  ;;  %v2888_v26 = vld [vmem:[%s3232_s2 + $0x68] sm:$0xff]  ;;  %v2894_v27 = vld [vmem:[%s3232_s2 + $0x70] sm:$0xff] }
 0x194   :  { %3411 = vst [vmem:[#allocation9_spill] sm:$0xff] %v2846_v19 }
 0x195   :  { %1631 = vtanh.f32 %v2585_v28  ;;  %v599_v33 = vsel %vm598_vm7, %v1628_v6, %v595_v30  ;;  %v2810_v6 = vld [vmem:[%s3232_s2 + $0xc0] sm:$0xff]  ;;  %3412 = vst [vmem:[#allocation8_spill] sm:$0xff] %v2852_v20  ;;  %v2900_v30 = vld [vmem:[%s3232_s2 + $0x78] sm:$0xff] }
 0x196   :  { %v604_v36 = vsel %vm601_vm8, %v603_v34, %v599_v33  ;;  %3413 = vst [vmem:[#allocation10_spill] sm:$0xff] %v2858_v21  ;;  %v2918_v33 = vld [vmem:[%s3232_s2 + $0x50] sm:$0xff]  ;;  %v2924_v34 = vld [vmem:[%s3232_s2 + $0x58] sm:$0xff] }
 0x197   :  { %3414 = vst [vmem:[#allocation11_spill] sm:$0xff] %v2864_v22 }
 0x198   :  { %3415 = vst [vmem:[#allocation13_spill] sm:$0xff] %v2870_v23 }
 0x199   :  { %3416 = vst [vmem:[#allocation12_spill] sm:$0xff] %v2876_v24 }
 0x19a   :  { %3417 = vst [vmem:[#allocation14_spill] sm:$0xff] %v2882_v25 }
 0x19b   :  { %v1632_v35 = vpop.eup %1631  ;;  %3418 = vst [vmem:[#allocation15_spill] sm:$0xff] %v2888_v26 }
 0x19c   :  { %v610_v37 = vmul.f32 %v1632_v35, %v604_v36  ;;  %3419 = vst [vmem:[#allocation17_spill] sm:$0xff] %v2894_v27  ;;  %v2930_v35 = vld [vmem:[%s3232_s2 + $0x20] sm:$0xff]  ;;  %v2936_v36 = vld [vmem:[%s3232_s2 + $0x28] sm:$0xff] }
 0x19d   :  { %3420 = vst [vmem:[#allocation16_spill] sm:$0xff] %v2900_v30 }
 0x19e   :  { %1575 = vst [vmem:[%s3234_s4 + $0x8] sm:$0xff] %v610_v37  ;;  %633 = vmatmul.f32.vlgmr.msrb.gmra.mxu0 %v610_v37  ;;  %653 = vmatmul.f32.vlgmr.msrb.gmra.mxu1 %v610_v37 }
 0x19f   :  { %673 = vmatmul.f32.vlgmr.msrb.gmra.mxu2 %v610_v37  ;;  %693 = vmatmul.f32.vlgmr.msrb.gmra.mxu3 %v610_v37  ;;  %3423 = vst [vmem:[#allocation21_spill] sm:$0xff] %v2918_v33  ;;  %v2942_v37 = vld [vmem:[%s3232_s2 + $0x30] sm:$0xff] }
 0x1a0   :  { %923 = vmatpush.msrb.mxu0 %v2594_v55  ;;  %943 = vmatpush.msrb.mxu1 %v2600_v38  ;;  %3424 = vst [vmem:[#allocation20_spill] sm:$0xff] %v2924_v34 }
 0x1a1   :  { %963 = vmatpush.msrb.mxu2 %v2606_v39  ;;  %983 = vmatpush.msrb.mxu3 %v2612_v45  ;;  %3425 = vst [vmem:[#allocation22_spill] sm:$0xff] %v2930_v35 }
 0x1a2   :  { %924 = vmatpush.msrb.mxu0 %v2618_v46  ;;  %944 = vmatpush.msrb.mxu1 %v2624_v47  ;;  %3426 = vst [vmem:[#allocation23_spill] sm:$0xff] %v2936_v36 }
 0x1a3   :  { %964 = vmatpush.msrb.mxu2 %v2630_v48  ;;  %984 = vmatpush.msrb.mxu3 %v2636_v49  ;;  %3427 = vst [vmem:[#allocation24_spill] sm:$0xff] %v2942_v37 }
 0x1a4   :  { %925 = vmatpush.msrb.mxu0 %v2642_v50  ;;  %945 = vmatpush.msrb.mxu1 %v2648_v51 }
 0x1a5   :  { %965 = vmatpush.msrb.mxu2 %v2654_v52  ;;  %985 = vmatpush.msrb.mxu3 %v2660_v53 }
 0x1a6   :  { %926 = vmatpush.msrb.mxu0 %v2666_v54  ;;  %946 = vmatpush.msrb.mxu1 %v2672_v56 }
 0x1a7   :  { %966 = vmatpush.msrb.mxu2 %v2678_v57  ;;  %986 = vmatpush.msrb.mxu3 %v2684_v58 }
 0x1a8   :  { %927 = vmatpush.msrb.mxu0 %v2690_v59  ;;  %947 = vmatpush.msrb.mxu1 %v2696_v63 }
 0x1a9   :  { %967 = vmatpush.msrb.mxu2 %v2702_v7  ;;  %987 = vmatpush.msrb.mxu3 %v2708_v62 }
 0x1aa   :  { %928 = vmatpush.msrb.mxu0 %v2714_v12  ;;  %948 = vmatpush.msrb.mxu1 %v2720_v29 }
 0x1ab   :  { %968 = vmatpush.msrb.mxu2 %v2726_v9  ;;  %988 = vmatpush.msrb.mxu3 %v2732_v4 }
 0x1ac   :  { %929 = vmatpush.msrb.mxu0 %v2738_v2  ;;  %949 = vmatpush.msrb.mxu1 %v2744_v16 }
 0x1ad   :  { %969 = vmatpush.msrb.mxu2 %v2750_v1  ;;  %989 = vmatpush.msrb.mxu3 %v2756_v60 }
 0x1ae   :  { %930 = vmatpush.msrb.mxu0 %v2762_v61  ;;  %950 = vmatpush.msrb.mxu1 %v2768_v15 }
 0x1af   :  { %970 = vmatpush.msrb.mxu2 %v2774_v3  ;;  %990 = vmatpush.msrb.mxu3 %v2780_v42 }
 0x1b0   :  { %931 = vmatpush.msrb.mxu0 %v2786_v5  ;;  %951 = vmatpush.msrb.mxu1 %v2792_v0 }
 0x1b1   :  { %971 = vmatpush.msrb.mxu2 %v2798_v8  ;;  %991 = vmatpush.msrb.mxu3 %v2804_v13 }
 0x1b2   :  { %932 = vmatpush.msrb.mxu0 %v2810_v6  ;;  %952 = vmatpush.msrb.mxu1 %v2816_v14 }
 0x1b3   :  { %972 = vmatpush.msrb.mxu2 %v2822_v10  ;;  %992 = vmatpush.msrb.mxu3 %v2828_v11 }
 0x1b4   :  { %933 = vmatpush.msrb.mxu0 %v2834_v17  ;;  %953 = vmatpush.msrb.mxu1 %v2840_v18 }
 0x1b5   :  { %973 = vmatpush.msrb.mxu2 %v2846_v19  ;;  %993 = vmatpush.msrb.mxu3 %v2852_v20 }
 0x1b6   :  { %934 = vmatpush.msrb.mxu0 %v2858_v21  ;;  %954 = vmatpush.msrb.mxu1 %v2864_v22 }
 0x1b7   :  { %974 = vmatpush.msrb.mxu2 %v2870_v23  ;;  %994 = vmatpush.msrb.mxu3 %v2876_v24 }
 0x1b8   :  { %935 = vmatpush.msrb.mxu0 %v2882_v25  ;;  %955 = vmatpush.msrb.mxu1 %v2888_v26 }
 0x1b9   :  { %975 = vmatpush.msrb.mxu2 %v2894_v27  ;;  %995 = vmatpush.msrb.mxu3 %v2900_v30 }
 0x1ba   :  { %936 = vmatpush.msrb.mxu0 %v2906_v31  ;;  %956 = vmatpush.msrb.mxu1 %v2912_v32 }
 0x1bb   :  { %976 = vmatpush.msrb.mxu2 %v2918_v33  ;;  %996 = vmatpush.msrb.mxu3 %v2924_v34  ;;  %v2948_v34 = vld [vmem:[%s3232_s2 + $0x38] sm:$0xff]  ;;  %v3429_v33 = vld [vmem:[#allocation34_spill] sm:$0xff] }
 0x1bc   :  { %937 = vmatpush.msrb.mxu0 %v2930_v35  ;;  %957 = vmatpush.msrb.mxu1 %v2936_v36  ;;  %3428 = vst [vmem:[#allocation25_spill] sm:$0xff] %v2948_v34 }
 0x1bd   :  { %977 = vmatpush.msrb.mxu2 %v2942_v37  ;;  %997 = vmatpush.msrb.mxu3 %v2948_v34  ;;  %v3430_v37 = vld [vmem:[#allocation35_spill] sm:$0xff]  ;;  %v3431_v34 = vld [vmem:[#allocation37_spill] sm:$0xff] }
 0x1be   :  { %938 = vmatpush.msrb.mxu0 %v3399_v40  ;;  %958 = vmatpush.msrb.mxu1 %v3400_v41 }
 0x1bf   :  { %978 = vmatpush.msrb.mxu2 %v3401_v43  ;;  %998 = vmatpush.msrb.mxu3 %v3402_v44 }
 0x21b   :  { %v634_v36 = vpop.f32.mrf.mxu0  ;;  %v654_v35 = vpop.f32.mrf.mxu1 }
 0x21c   :  { %v697_v32 = vadd.f32 %v634_v36, %v3429_v33  ;;  %v698_v31 = vadd.f32 %v654_v35, %v3430_v37  ;;  %v3432_v35 = vld [vmem:[#allocation36_spill] sm:$0xff] }
 0x21e   :  { %v1576_v30 = vmul.f32 -1.442695, %v697_v32  ;;  %v1577_v27 = vmul.f32 -1.442695, %v698_v31 }
 0x220   :  { %1633 = vpow2.f32 %v1576_v30 }
 0x221   :  { %1635 = vpow2.f32 %v1577_v27 }
 0x222   :  { %v694_v26 = vpop.f32.mrf.mxu3  ;;  %v674_v44 = vpop.f32.mrf.mxu2 }
 0x223   :  { %v700_v25 = vadd.f32 %v694_v26, %v3431_v34  ;;  %v699_v32 = vadd.f32 %v674_v44, %v3432_v35 }
 0x225   :  { %v1578_v40 = vmul.f32 -1.442695, %v700_v25 }
 0x226   :  { %v1634_v24 = vpop.eup %1633 }
 0x227   :  { %v1636_v41 = vpop.eup %1635  ;;  %v704_v23 = vadd.f32 1.0, %v1634_v24  ;;  %1637 = vpow2.f32 %v1578_v40 }
 0x228   :  { %v723_v43 = vadd.f32 1.0, %v1636_v41 }
 0x229   :  { %1639 = vrcp.f32 %v704_v23  ;;  %v716_v25 = vand.u32 2147483648, %v704_v23  ;;  %v714_v40 = vand.u32 2147483647, %v704_v23  ;;  %vm710_vm11 = vweird.f32 %v704_v23 }
 0x22a   :  { %1641 = vrcp.f32 %v723_v43  ;;  %v735_v34 = vand.u32 2147483648, %v723_v43  ;;  %v733_v21 = vand.u32 2147483647, %v723_v43  ;;  %vm729_vm12 = vweird.f32 %v723_v43 }
 0x22b   :  { %v717_v44 = vor.u32 1.1754944e-38, %v716_v25  ;;  %vm715_vm15 = vcmp.eq.f32.partialorder %v714_v40, 8.507059e+37 }
 0x22c   :  { %vm734_vm0 = vcmp.eq.f32.partialorder %v733_v21, 8.507059e+37 }
 0x22d   :  { %v1638_v22 = vpop.eup %1637 }
 0x22e   :  { %v743_v33 = vadd.f32 1.0, %v1638_v22 }
 0x22f   :  { %v1640_v36 = vpop.eup %1639 }
 0x230   :  { %v1642_v31 = vpop.eup %1641  ;;  %v706_v30 = vmul.f32 %v1640_v36, %v704_v23  ;;  %1643 = vrcp.f32 %v743_v33  ;;  %vm711_vm9 = vweird.f32 %v1640_v36  ;;  %v755_v25 = vand.u32 2147483648, %v743_v33 }
 0x231   :  { %v725_v27 = vmul.f32 %v1642_v31, %v723_v43  ;;  %1645 = vtanh.f32 %v699_v32  ;;  %vm730_vm10 = vweird.f32 %v1642_v31  ;;  %vm712_vm13 = vmor %vm710_vm11, %vm711_vm9  ;;  %vm749_vm2 = vweird.f32 %v743_v33 }
 0x232   :  { %v707_v37 = vsub.f32 1.0, %v706_v30  ;;  %vm731_vm14 = vmor %vm729_vm12, %vm730_vm10  ;;  %v736_v30 = vor.u32 1.1754944e-38, %v735_v34  ;;  %v756_v40 = vor.u32 1.1754944e-38, %v755_v25  ;;  %v3451_v25 = vld [vmem:[#allocation22_spill] sm:$0xff] }
 0x233   :  { %v726_v26 = vsub.f32 1.0, %v725_v27 }
 0x234   :  { %v708_v24 = vmul.f32 %v1640_v36, %v707_v37 }
 0x235   :  { %v727_v41 = vmul.f32 %v1642_v31, %v726_v26 }
 0x236   :  { %v1644_v20 = vpop.eup %1643  ;;  %v709_v22 = vadd.f32 %v1640_v36, %v708_v24 }
 0x237   :  { %v728_v35 = vadd.f32 %v1642_v31, %v727_v41  ;;  %v745_v19 = vmul.f32 %v1644_v20, %v743_v33  ;;  %v1646_v32 = vpop.eup %1645  ;;  %vm750_vm1 = vweird.f32 %v1644_v20  ;;  %v3440_v41 = vld [vmem:[#allocation11_spill] sm:$0xff] }
 0x238   :  { %v713_v27 = vsel %vm712_vm13, %v1640_v36, %v709_v22  ;;  %v753_v36 = vand.u32 2147483647, %v743_v33  ;;  %vm751_vm3 = vmor %vm749_vm2, %vm750_vm1  ;;  %v3439_v33 = vld [vmem:[#allocation10_spill] sm:$0xff]  ;;  %v3441_v22 = vld [vmem:[#allocation13_spill] sm:$0xff] }
 0x239   :  { %v718_v18 = vsel %vm715_vm15, %v717_v44, %v713_v27  ;;  %v732_v37 = vsel %vm731_vm14, %v1642_v31, %v728_v35  ;;  %v746_v17 = vsub.f32 1.0, %v745_v19  ;;  %v3442_v44 = vld [vmem:[#allocation12_spill] sm:$0xff]  ;;  %v3443_v35 = vld [vmem:[#allocation14_spill] sm:$0xff]  ;;  %v3445_v27 = vld [vmem:[#allocation17_spill] sm:$0xff] }
 0x23a   :  { %v737_v26 = vsel %vm734_vm0, %v736_v30, %v732_v37  ;;  %v760_v11 = vmul.f32 %v1646_v32, %v718_v18  ;;  %vm754_vm4 = vcmp.eq.f32.partialorder %v753_v36, 8.507059e+37  ;;  %v3437_v18 = vld [vmem:[#allocation9_spill] sm:$0xff]  ;;  %v3444_v30 = vld [vmem:[#allocation15_spill] sm:$0xff]  ;;  %v3446_v32 = vld [vmem:[#allocation16_spill] sm:$0xff] }
 0x23b   :  { %v759_v10 = vmul.f32 %v737_v26, %v2585_v28  ;;  %v747_v24 = vmul.f32 %v1644_v20, %v746_v17  ;;  %v3433_v28 = vld [vmem:[#allocation5_spill] sm:$0xff]  ;;  %v3436_v17 = vld [vmem:[#allocation7_spill] sm:$0xff]  ;;  %v3447_v37 = vld [vmem:[#allocation18_spill] sm:$0xff] }
 0x23c   :  { %v3448_v26 = vld [vmem:[#allocation19_spill] sm:$0xff] }
 0x23d   :  { %v2960_v23 = vadd.f32 %v760_v11, %v759_v10  ;;  %v748_v43 = vadd.f32 %v1644_v20, %v747_v24  ;;  %v3434_v10 = vld [vmem:[#allocation4_spill] sm:$0xff]  ;;  %v3435_v11 = vld [vmem:[#allocation6_spill] sm:$0xff]  ;;  %v3449_v24 = vld [vmem:[#allocation21_spill] sm:$0xff] }
 0x23e   :  { %v3452_v36 = vld [vmem:[#allocation23_spill] sm:$0xff] }
 0x23f   :  { %1647 = vtanh.f32 %v2960_v23  ;;  %v752_v34 = vsel %vm751_vm3, %v1644_v20, %v748_v43  ;;  %v3438_v20 = vld [vmem:[#allocation8_spill] sm:$0xff] }
 0x240   :  { %v757_v19 = vsel %vm754_vm4, %v756_v40, %v752_v34  ;;  %v3450_v43 = vld [vmem:[#allocation20_spill] sm:$0xff]  ;;  %v3454_v40 = vld [vmem:[#allocation25_spill] sm:$0xff] }
 0x241   :  { %v3453_v34 = vld [vmem:[#allocation24_spill] sm:$0xff] }
 0x245   :  { %v1648_v21 = vpop.eup %1647 }
 0x246   :  { %v763_v31 = vmul.f32 %v1648_v21, %v757_v19  ;;  %v3029_v21 = vld [vmem:[%s3232_s2] sm:$0xff]  ;;  %v3035_v19 = vld [vmem:[%s3232_s2 + $0x8] sm:$0xff] }
 0x247   :  { %3455 = vst [vmem:[#allocation26_spill] sm:$0xff] %v3029_v21 }
 0x248   :  { %1579 = vst [vmem:[%s3234_s4 + $0x10] sm:$0xff] %v763_v31  ;;  %786 = vmatmul.f32.vlgmr.msra.gmra.mxu0 %v763_v31  ;;  %806 = vmatmul.f32.vlgmr.msra.gmra.mxu1 %v763_v31 }
 0x249   :  { %826 = vmatmul.f32.vlgmr.msra.gmra.mxu2 %v763_v31  ;;  %846 = vmatmul.f32.vlgmr.msra.gmra.mxu3 %v763_v31  ;;  %3456 = vst [vmem:[#allocation27_spill] sm:$0xff] %v3035_v19  ;;  %v3041_v31 = vld [vmem:[%s3232_s2 + $0x10] sm:$0xff] }
 0x24a   :  { %1076 = vmatpush.msra.mxu0 %v2594_v55  ;;  %1096 = vmatpush.msra.mxu1 %v2600_v38  ;;  %3457 = vst [vmem:[#allocation28_spill] sm:$0xff] %v3041_v31 }
 0x24b   :  { %1116 = vmatpush.msra.mxu2 %v2606_v39  ;;  %1136 = vmatpush.msra.mxu3 %v2612_v45 }
 0x24c   :  { %1077 = vmatpush.msra.mxu0 %v2618_v46  ;;  %1097 = vmatpush.msra.mxu1 %v2624_v47 }
 0x24d   :  { %1117 = vmatpush.msra.mxu2 %v2630_v48  ;;  %1137 = vmatpush.msra.mxu3 %v2636_v49 }
 0x24e   :  { %1078 = vmatpush.msra.mxu0 %v2642_v50  ;;  %1098 = vmatpush.msra.mxu1 %v2648_v51 }
 0x24f   :  { %1118 = vmatpush.msra.mxu2 %v2654_v52  ;;  %1138 = vmatpush.msra.mxu3 %v2660_v53 }
 0x250   :  { %1079 = vmatpush.msra.mxu0 %v2666_v54  ;;  %1099 = vmatpush.msra.mxu1 %v2672_v56 }
 0x251   :  { %1119 = vmatpush.msra.mxu2 %v2678_v57  ;;  %1139 = vmatpush.msra.mxu3 %v2684_v58 }
 0x252   :  { %1080 = vmatpush.msra.mxu0 %v2690_v59  ;;  %1100 = vmatpush.msra.mxu1 %v2696_v63 }
 0x253   :  { %1120 = vmatpush.msra.mxu2 %v2702_v7  ;;  %1140 = vmatpush.msra.mxu3 %v2708_v62 }
 0x254   :  { %1081 = vmatpush.msra.mxu0 %v2714_v12  ;;  %1101 = vmatpush.msra.mxu1 %v2720_v29 }
 0x255   :  { %1121 = vmatpush.msra.mxu2 %v2726_v9  ;;  %1141 = vmatpush.msra.mxu3 %v2732_v4 }
 0x256   :  { %1082 = vmatpush.msra.mxu0 %v2738_v2  ;;  %1102 = vmatpush.msra.mxu1 %v2744_v16 }
 0x257   :  { %1122 = vmatpush.msra.mxu2 %v2750_v1  ;;  %1142 = vmatpush.msra.mxu3 %v2756_v60 }
 0x258   :  { %1083 = vmatpush.msra.mxu0 %v2762_v61  ;;  %1103 = vmatpush.msra.mxu1 %v2768_v15 }
 0x259   :  { %1123 = vmatpush.msra.mxu2 %v2774_v3  ;;  %1143 = vmatpush.msra.mxu3 %v2780_v42 }
 0x25a   :  { %1084 = vmatpush.msra.mxu0 %v2786_v5  ;;  %1104 = vmatpush.msra.mxu1 %v2792_v0 }
 0x25b   :  { %1124 = vmatpush.msra.mxu2 %v2798_v8  ;;  %1144 = vmatpush.msra.mxu3 %v2804_v13 }
 0x25c   :  { %1085 = vmatpush.msra.mxu0 %v2810_v6  ;;  %1105 = vmatpush.msra.mxu1 %v2816_v14 }
 0x25d   :  { %1125 = vmatpush.msra.mxu2 %v3433_v28  ;;  %1145 = vmatpush.msra.mxu3 %v3434_v10 }
 0x25e   :  { %1086 = vmatpush.msra.mxu0 %v3435_v11  ;;  %1106 = vmatpush.msra.mxu1 %v3436_v17 }
 0x25f   :  { %1126 = vmatpush.msra.mxu2 %v3437_v18  ;;  %1146 = vmatpush.msra.mxu3 %v3438_v20 }
 0x260   :  { %1087 = vmatpush.msra.mxu0 %v3439_v33  ;;  %1107 = vmatpush.msra.mxu1 %v3440_v41 }
 0x261   :  { %1127 = vmatpush.msra.mxu2 %v3441_v22  ;;  %1147 = vmatpush.msra.mxu3 %v3442_v44 }
 0x262   :  { %1088 = vmatpush.msra.mxu0 %v3443_v35  ;;  %1108 = vmatpush.msra.mxu1 %v3444_v30 }
 0x263   :  { %1128 = vmatpush.msra.mxu2 %v3445_v27  ;;  %1148 = vmatpush.msra.mxu3 %v3446_v32  ;;  %v3461_v32 = vld [vmem:[#allocation41_spill] sm:$0xff] }
 0x264   :  { %1089 = vmatpush.msra.mxu0 %v3447_v37  ;;  %1109 = vmatpush.msra.mxu1 %v3448_v26 }
 0x265   :  { %1129 = vmatpush.msra.mxu2 %v3449_v24  ;;  %1149 = vmatpush.msra.mxu3 %v3450_v43  ;;  %v3460_v43 = vld [vmem:[#allocation39_spill] sm:$0xff] }
 0x266   :  { %1090 = vmatpush.msra.mxu0 %v3451_v25  ;;  %1110 = vmatpush.msra.mxu1 %v3452_v36  ;;  %v3459_v36 = vld [vmem:[#allocation38_spill] sm:$0xff] }
 0x267   :  { %1130 = vmatpush.msra.mxu2 %v3453_v34  ;;  %1150 = vmatpush.msra.mxu3 %v3454_v40  ;;  %v3047_v40 = vld [vmem:[%s3232_s2 + $0x18] sm:$0xff] }
 0x268   :  { %1091 = vmatpush.msra.mxu0 %v3029_v21  ;;  %1111 = vmatpush.msra.mxu1 %v3035_v19  ;;  %3458 = vst [vmem:[#allocation29_spill] sm:$0xff] %v3047_v40 }
 0x269   :  { %1131 = vmatpush.msra.mxu2 %v3041_v31  ;;  %1151 = vmatpush.msra.mxu3 %v3047_v40 }
 0x2c5   :  { %v787_v21 = vpop.f32.mrf.mxu0  ;;  %v807_v34 = vpop.f32.mrf.mxu1 }
 0x2c6   :  { %v850_v25 = vadd.f32 %v787_v21, %v3459_v36  ;;  %v851_v19 = vadd.f32 %v807_v34, %v3460_v43  ;;  %v3462_v43 = vld [vmem:[#allocation40_spill] sm:$0xff] }
 0x2c8   :  { %v1580_v24 = vmul.f32 -1.442695, %v850_v25  ;;  %v1581_v26 = vmul.f32 -1.442695, %v851_v19 }
 0x2ca   :  { %1649 = vpow2.f32 %v1580_v24 }
 0x2cb   :  { %1651 = vpow2.f32 %v1581_v26 }
 0x2cc   :  { %v847_v37 = vpop.f32.mrf.mxu3  ;;  %v827_v40 = vpop.f32.mrf.mxu2 }
 0x2cd   :  { %v853_v31 = vadd.f32 %v847_v37, %v3461_v32  ;;  %v852_v25 = vadd.f32 %v827_v40, %v3462_v43 }
 0x2cf   :  { %v1582_v27 = vmul.f32 -1.442695, %v853_v31 }
 0x2d0   :  { %v1650_v30 = vpop.eup %1649 }
 0x2d1   :  { %v1652_v35 = vpop.eup %1651  ;;  %v857_v44 = vadd.f32 1.0, %v1650_v30  ;;  %1653 = vpow2.f32 %v1582_v27 }
 0x2d2   :  { %v876_v22 = vadd.f32 1.0, %v1652_v35 }
 0x2d3   :  { %1655 = vrcp.f32 %v857_v44  ;;  %v869_v37 = vand.u32 2147483648, %v857_v44  ;;  %v867_v35 = vand.u32 2147483647, %v857_v44  ;;  %vm863_vm7 = vweird.f32 %v857_v44 }
 0x2d4   :  { %1657 = vrcp.f32 %v876_v22  ;;  %v888_v31 = vand.u32 2147483648, %v876_v22  ;;  %v886_v33 = vand.u32 2147483647, %v876_v22  ;;  %vm882_vm8 = vweird.f32 %v876_v22 }
 0x2d5   :  { %v870_v40 = vor.u32 1.1754944e-38, %v869_v37  ;;  %vm868_vm11 = vcmp.eq.f32.partialorder %v867_v35, 8.507059e+37 }
 0x2d6   :  { %vm887_vm12 = vcmp.eq.f32.partialorder %v886_v33, 8.507059e+37 }
 0x2d7   :  { %v1654_v41 = vpop.eup %1653 }
 0x2d8   :  { %v896_v36 = vadd.f32 1.0, %v1654_v41 }
 0x2d9   :  { %v1656_v21 = vpop.eup %1655 }
 0x2da   :  { %v1658_v34 = vpop.eup %1657  ;;  %v859_v24 = vmul.f32 %v1656_v21, %v857_v44  ;;  %1659 = vrcp.f32 %v896_v36  ;;  %vm864_vm5 = vweird.f32 %v1656_v21  ;;  %v908_v37 = vand.u32 2147483648, %v896_v36 }
 0x2db   :  { %v878_v26 = vmul.f32 %v1658_v34, %v876_v22  ;;  %1661 = vtanh.f32 %v852_v25  ;;  %vm883_vm6 = vweird.f32 %v1658_v34  ;;  %vm865_vm9 = vmor %vm863_vm7, %vm864_vm5  ;;  %vm902_vm14 = vweird.f32 %v896_v36 }
 0x2dc   :  { %v860_v19 = vsub.f32 1.0, %v859_v24  ;;  %vm884_vm10 = vmor %vm882_vm8, %vm883_vm6  ;;  %v889_v24 = vor.u32 1.1754944e-38, %v888_v31  ;;  %v909_v35 = vor.u32 1.1754944e-38, %v908_v37  ;;  %v3481_v37 = vld [vmem:[#allocation22_spill] sm:$0xff] }
 0x2dd   :  { %v879_v32 = vsub.f32 1.0, %v878_v26 }
 0x2de   :  { %v861_v30 = vmul.f32 %v1656_v21, %v860_v19 }
 0x2df   :  { %v880_v27 = vmul.f32 %v1658_v34, %v879_v32 }
 0x2e0   :  { %v1660_v20 = vpop.eup %1659  ;;  %v862_v41 = vadd.f32 %v1656_v21, %v861_v30 }
 0x2e1   :  { %v881_v43 = vadd.f32 %v1658_v34, %v880_v27  ;;  %v898_v18 = vmul.f32 %v1660_v20, %v896_v36  ;;  %v1662_v25 = vpop.eup %1661  ;;  %vm903_vm13 = vweird.f32 %v1660_v20  ;;  %v3470_v27 = vld [vmem:[#allocation11_spill] sm:$0xff] }
 0x2e2   :  { %v866_v26 = vsel %vm865_vm9, %v1656_v21, %v862_v41  ;;  %v906_v21 = vand.u32 2147483647, %v896_v36  ;;  %vm904_vm15 = vmor %vm902_vm14, %vm903_vm13  ;;  %v3469_v36 = vld [vmem:[#allocation10_spill] sm:$0xff]  ;;  %v3471_v41 = vld [vmem:[#allocation13_spill] sm:$0xff] }
 0x2e3   :  { %v871_v17 = vsel %vm868_vm11, %v870_v40, %v866_v26  ;;  %v885_v19 = vsel %vm884_vm10, %v1658_v34, %v881_v43  ;;  %v899_v11 = vsub.f32 1.0, %v898_v18  ;;  %v3472_v40 = vld [vmem:[#allocation12_spill] sm:$0xff]  ;;  %v3473_v43 = vld [vmem:[#allocation14_spill] sm:$0xff]  ;;  %v3475_v26 = vld [vmem:[#allocation17_spill] sm:$0xff] }
 0x2e4   :  { %v890_v32 = vsel %vm887_vm12, %v889_v24, %v885_v19  ;;  %v913_v10 = vmul.f32 %v1662_v25, %v871_v17  ;;  %vm907_vm0 = vcmp.eq.f32.partialorder %v906_v21, 8.507059e+37  ;;  %v3467_v17 = vld [vmem:[#allocation9_spill] sm:$0xff]  ;;  %v3474_v24 = vld [vmem:[#allocation15_spill] sm:$0xff]  ;;  %v3476_v25 = vld [vmem:[#allocation16_spill] sm:$0xff] }
 0x2e5   :  { %v912_v28 = vmul.f32 %v890_v32, %v2960_v23  ;;  %v900_v30 = vmul.f32 %v1660_v20, %v899_v11  ;;  %v3463_v23 = vld [vmem:[#allocation5_spill] sm:$0xff]  ;;  %v3466_v11 = vld [vmem:[#allocation7_spill] sm:$0xff]  ;;  %v3477_v19 = vld [vmem:[#allocation18_spill] sm:$0xff] }
 0x2e6   :  { %v3478_v32 = vld [vmem:[#allocation19_spill] sm:$0xff] }
 0x2e7   :  { %v3055_v44 = vadd.f32 %v913_v10, %v912_v28  ;;  %v901_v22 = vadd.f32 %v1660_v20, %v900_v30  ;;  %v3464_v28 = vld [vmem:[#allocation4_spill] sm:$0xff]  ;;  %v3465_v10 = vld [vmem:[#allocation6_spill] sm:$0xff]  ;;  %v3479_v30 = vld [vmem:[#allocation21_spill] sm:$0xff] }
 0x2e8   :  { %v3482_v21 = vld [vmem:[#allocation23_spill] sm:$0xff] }
 0x2e9   :  { %1663 = vtanh.f32 %v3055_v44  ;;  %v905_v31 = vsel %vm904_vm15, %v1660_v20, %v901_v22  ;;  %v3468_v20 = vld [vmem:[#allocation8_spill] sm:$0xff] }
 0x2ea   :  { %v910_v18 = vsel %vm907_vm0, %v909_v35, %v905_v31  ;;  %v3480_v22 = vld [vmem:[#allocation20_spill] sm:$0xff]  ;;  %v3484_v35 = vld [vmem:[#allocation25_spill] sm:$0xff] }
 0x2eb   :  { %v3483_v31 = vld [vmem:[#allocation24_spill] sm:$0xff] }
 0x2ef   :  { %v1664_v33 = vpop.eup %1663 }
 0x2f0   :  { %v916_v34 = vmul.f32 %v1664_v33, %v910_v18  ;;  %v3485_v33 = vld [vmem:[#allocation26_spill] sm:$0xff]  ;;  %v3486_v18 = vld [vmem:[#allocation27_spill] sm:$0xff] }
 0x2f2   :  { %1583 = vst [vmem:[%s3234_s4 + $0x18] sm:$0xff] %v916_v34  ;;  %939 = vmatmul.f32.vlgmr.msrb.gmra.mxu0 %v916_v34  ;;  %959 = vmatmul.f32.vlgmr.msrb.gmra.mxu1 %v916_v34 }
 0x2f3   :  { %979 = vmatmul.f32.vlgmr.msrb.gmra.mxu2 %v916_v34  ;;  %999 = vmatmul.f32.vlgmr.msrb.gmra.mxu3 %v916_v34  ;;  %v3487_v34 = vld [vmem:[#allocation28_spill] sm:$0xff] }
 0x2f4   :  { %1229 = vmatpush.msrb.mxu0 %v2594_v55  ;;  %1249 = vmatpush.msrb.mxu1 %v2600_v38 }
 0x2f5   :  { %1269 = vmatpush.msrb.mxu2 %v2606_v39  ;;  %1289 = vmatpush.msrb.mxu3 %v2612_v45 }
 0x2f6   :  { %1230 = vmatpush.msrb.mxu0 %v2618_v46  ;;  %1250 = vmatpush.msrb.mxu1 %v2624_v47 }
 0x2f7   :  { %1270 = vmatpush.msrb.mxu2 %v2630_v48  ;;  %1290 = vmatpush.msrb.mxu3 %v2636_v49 }
 0x2f8   :  { %1231 = vmatpush.msrb.mxu0 %v2642_v50  ;;  %1251 = vmatpush.msrb.mxu1 %v2648_v51 }
 0x2f9   :  { %1271 = vmatpush.msrb.mxu2 %v2654_v52  ;;  %1291 = vmatpush.msrb.mxu3 %v2660_v53 }
 0x2fa   :  { %1232 = vmatpush.msrb.mxu0 %v2666_v54  ;;  %1252 = vmatpush.msrb.mxu1 %v2672_v56 }
 0x2fb   :  { %1272 = vmatpush.msrb.mxu2 %v2678_v57  ;;  %1292 = vmatpush.msrb.mxu3 %v2684_v58 }
 0x2fc   :  { %1233 = vmatpush.msrb.mxu0 %v2690_v59  ;;  %1253 = vmatpush.msrb.mxu1 %v2696_v63 }
 0x2fd   :  { %1273 = vmatpush.msrb.mxu2 %v2702_v7  ;;  %1293 = vmatpush.msrb.mxu3 %v2708_v62 }
 0x2fe   :  { %1234 = vmatpush.msrb.mxu0 %v2714_v12  ;;  %1254 = vmatpush.msrb.mxu1 %v2720_v29 }
 0x2ff   :  { %1274 = vmatpush.msrb.mxu2 %v2726_v9  ;;  %1294 = vmatpush.msrb.mxu3 %v2732_v4 }
 0x300   :  { %1235 = vmatpush.msrb.mxu0 %v2738_v2  ;;  %1255 = vmatpush.msrb.mxu1 %v2744_v16 }
 0x301   :  { %1275 = vmatpush.msrb.mxu2 %v2750_v1  ;;  %1295 = vmatpush.msrb.mxu3 %v2756_v60 }
 0x302   :  { %1236 = vmatpush.msrb.mxu0 %v2762_v61  ;;  %1256 = vmatpush.msrb.mxu1 %v2768_v15 }
 0x303   :  { %1276 = vmatpush.msrb.mxu2 %v2774_v3  ;;  %1296 = vmatpush.msrb.mxu3 %v2780_v42 }
 0x304   :  { %1237 = vmatpush.msrb.mxu0 %v2786_v5  ;;  %1257 = vmatpush.msrb.mxu1 %v2792_v0 }
 0x305   :  { %1277 = vmatpush.msrb.mxu2 %v2798_v8  ;;  %1297 = vmatpush.msrb.mxu3 %v2804_v13 }
 0x306   :  { %1238 = vmatpush.msrb.mxu0 %v2810_v6  ;;  %1258 = vmatpush.msrb.mxu1 %v2816_v14 }
 0x307   :  { %1278 = vmatpush.msrb.mxu2 %v3463_v23  ;;  %1298 = vmatpush.msrb.mxu3 %v3464_v28 }
 0x308   :  { %1239 = vmatpush.msrb.mxu0 %v3465_v10  ;;  %1259 = vmatpush.msrb.mxu1 %v3466_v11 }
 0x309   :  { %1279 = vmatpush.msrb.mxu2 %v3467_v17  ;;  %1299 = vmatpush.msrb.mxu3 %v3468_v20 }
 0x30a   :  { %1240 = vmatpush.msrb.mxu0 %v3469_v36  ;;  %1260 = vmatpush.msrb.mxu1 %v3470_v27 }
 0x30b   :  { %1280 = vmatpush.msrb.mxu2 %v3471_v41  ;;  %1300 = vmatpush.msrb.mxu3 %v3472_v40 }
 0x30c   :  { %1241 = vmatpush.msrb.mxu0 %v3473_v43  ;;  %1261 = vmatpush.msrb.mxu1 %v3474_v24 }
 0x30d   :  { %1281 = vmatpush.msrb.mxu2 %v3475_v26  ;;  %1301 = vmatpush.msrb.mxu3 %v3476_v25  ;;  %v3489_v25 = vld [vmem:[#allocation42_spill] sm:$0xff]  ;;  %v3490_v26 = vld [vmem:[#allocation43_spill] sm:$0xff] }
 0x30e   :  { %1242 = vmatpush.msrb.mxu0 %v3477_v19  ;;  %1262 = vmatpush.msrb.mxu1 %v3478_v32  ;;  %v3488_v19 = vld [vmem:[#allocation29_spill] sm:$0xff] }
 0x30f   :  { %1282 = vmatpush.msrb.mxu2 %v3479_v30  ;;  %1302 = vmatpush.msrb.mxu3 %v3480_v22 }
 0x310   :  { %1243 = vmatpush.msrb.mxu0 %v3481_v37  ;;  %1263 = vmatpush.msrb.mxu1 %v3482_v21 }
 0x311   :  { %1283 = vmatpush.msrb.mxu2 %v3483_v31  ;;  %1303 = vmatpush.msrb.mxu3 %v3484_v35  ;;  %v3491_v35 = vld [vmem:[#allocation45_spill] sm:$0xff] }
 0x312   :  { %1244 = vmatpush.msrb.mxu0 %v3485_v33  ;;  %1264 = vmatpush.msrb.mxu1 %v3486_v18 }
 0x313   :  { %1284 = vmatpush.msrb.mxu2 %v3487_v34  ;;  %1304 = vmatpush.msrb.mxu3 %v3488_v19 }
 0x36f   :  { %v940_v32 = vpop.f32.mrf.mxu0  ;;  %v960_v30 = vpop.f32.mrf.mxu1 }
 0x370   :  { %v1003_v22 = vadd.f32 %v940_v32, %v3489_v25  ;;  %v1004_v37 = vadd.f32 %v960_v30, %v3490_v26  ;;  %v3492_v26 = vld [vmem:[#allocation44_spill] sm:$0xff] }
 0x372   :  { %v1584_v24 = vmul.f32 -1.442695, %v1003_v22  ;;  %v1585_v21 = vmul.f32 -1.442695, %v1004_v37 }
 0x374   :  { %1665 = vpow2.f32 %v1584_v24 }
 0x375   :  { %1667 = vpow2.f32 %v1585_v21 }
 0x376   :  { %v1000_v31 = vpop.f32.mrf.mxu3  ;;  %v980_v19 = vpop.f32.mrf.mxu2 }
 0x377   :  { %v1006_v43 = vadd.f32 %v1000_v31, %v3491_v35  ;;  %v1005_v30 = vadd.f32 %v980_v19, %v3492_v26 }
 0x379   :  { %v1586_v33 = vmul.f32 -1.442695, %v1006_v43 }
 0x37a   :  { %v1666_v40 = vpop.eup %1665 }
 0x37b   :  { %v1668_v18 = vpop.eup %1667  ;;  %v1010_v41 = vadd.f32 1.0, %v1666_v40  ;;  %1669 = vpow2.f32 %v1586_v33 }
 0x37c   :  { %v1029_v34 = vadd.f32 1.0, %v1668_v18 }
 0x37d   :  { %1671 = vrcp.f32 %v1010_v41  ;;  %v1022_v43 = vand.u32 2147483648, %v1010_v41  ;;  %v1020_v33 = vand.u32 2147483647, %v1010_v41  ;;  %vm1016_vm3 = vweird.f32 %v1010_v41 }
 0x37e   :  { %1673 = vrcp.f32 %v1029_v34  ;;  %v1041_v35 = vand.u32 2147483648, %v1029_v34  ;;  %v1039_v36 = vand.u32 2147483647, %v1029_v34  ;;  %vm1035_vm4 = vweird.f32 %v1029_v34 }
 0x37f   :  { %v1023_v19 = vor.u32 1.1754944e-38, %v1022_v43  ;;  %vm1021_vm7 = vcmp.eq.f32.partialorder %v1020_v33, 8.507059e+37 }
 0x380   :  { %vm1040_vm8 = vcmp.eq.f32.partialorder %v1039_v36, 8.507059e+37 }
 0x381   :  { %v1670_v27 = vpop.eup %1669 }
 0x382   :  { %v1049_v25 = vadd.f32 1.0, %v1670_v27 }
 0x383   :  { %v1672_v32 = vpop.eup %1671 }
 0x384   :  { %v1674_v22 = vpop.eup %1673  ;;  %v1012_v24 = vmul.f32 %v1672_v32, %v1010_v41  ;;  %1675 = vrcp.f32 %v1049_v25  ;;  %vm1017_vm1 = vweird.f32 %v1672_v32  ;;  %v1061_v43 = vand.u32 2147483648, %v1049_v25 }
 0x385   :  { %v1031_v37 = vmul.f32 %v1674_v22, %v1029_v34  ;;  %1677 = vtanh.f32 %v1005_v30  ;;  %vm1036_vm2 = vweird.f32 %v1674_v22  ;;  %vm1018_vm5 = vmor %vm1016_vm3, %vm1017_vm1  ;;  %vm1055_vm10 = vweird.f32 %v1049_v25 }
 0x386   :  { %v1013_v21 = vsub.f32 1.0, %v1012_v24  ;;  %vm1037_vm6 = vmor %vm1035_vm4, %vm1036_vm2  ;;  %v1042_v24 = vor.u32 1.1754944e-38, %v1041_v35  ;;  %v1062_v33 = vor.u32 1.1754944e-38, %v1061_v43 }
 0x387   :  { %v1032_v31 = vsub.f32 1.0, %v1031_v37 }
 0x388   :  { %v1014_v40 = vmul.f32 %v1672_v32, %v1013_v21 }
 0x389   :  { %v1033_v18 = vmul.f32 %v1674_v22, %v1032_v31 }
 0x38a   :  { %v1676_v20 = vpop.eup %1675  ;;  %v1015_v27 = vadd.f32 %v1672_v32, %v1014_v40 }
 0x38b   :  { %v1034_v26 = vadd.f32 %v1674_v22, %v1033_v18  ;;  %v1051_v17 = vmul.f32 %v1676_v20, %v1049_v25  ;;  %v1678_v30 = vpop.eup %1677  ;;  %vm1056_vm9 = vweird.f32 %v1676_v20 }
 0x38c   :  { %v1019_v37 = vsel %vm1018_vm5, %v1672_v32, %v1015_v27  ;;  %v1059_v32 = vand.u32 2147483647, %v1049_v25  ;;  %vm1057_vm11 = vmor %vm1055_vm10, %vm1056_vm9  ;;  %v3522_v27 = vld [vmem:[#allocation48_spill] sm:$0xff] }
 0x38d   :  { %v1024_v11 = vsel %vm1021_vm7, %v1023_v19, %v1019_v37  ;;  %v1038_v21 = vsel %vm1037_vm6, %v1674_v22, %v1034_v26  ;;  %v1052_v10 = vsub.f32 1.0, %v1051_v17 }
 0x38e   :  { %v1043_v31 = vsel %vm1040_vm8, %v1042_v24, %v1038_v21  ;;  %v1066_v28 = vmul.f32 %v1678_v30, %v1024_v11  ;;  %vm1060_vm12 = vcmp.eq.f32.partialorder %v1059_v32, 8.507059e+37 }
 0x38f   :  { %v1065_v23 = vmul.f32 %v1043_v31, %v3055_v44  ;;  %v1053_v40 = vmul.f32 %v1676_v20, %v1052_v10 }
 0x391   :  { %v3130_v41 = vadd.f32 %v1066_v28, %v1065_v23  ;;  %v1054_v34 = vadd.f32 %v1676_v20, %v1053_v40 }
 0x393   :  { %1679 = vtanh.f32 %v3130_v41  ;;  %v1058_v35 = vsel %vm1057_vm11, %v1676_v20, %v1054_v34 }
 0x394   :  { %v1063_v17 = vsel %vm1060_vm12, %v1062_v33, %v1058_v35 }
 0x399   :  { %v1680_v36 = vpop.eup %1679 }
 0x39a   :  { %v1069_v22 = vmul.f32 %v1680_v36, %v1063_v17 }
 0x39c   :  { %1587 = vst [vmem:[%s3234_s4 + $0x20] sm:$0xff] %v1069_v22  ;;  %1092 = vmatmul.f32.vlgmr.msra.gmra.mxu0 %v1069_v22  ;;  %1112 = vmatmul.f32.vlgmr.msra.gmra.mxu1 %v1069_v22 }
 0x39d   :  { %1132 = vmatmul.f32.vlgmr.msra.gmra.mxu2 %v1069_v22  ;;  %1152 = vmatmul.f32.vlgmr.msra.gmra.mxu3 %v1069_v22 }
 0x39e   :  { %1382 = vmatpush.msra.mxu0 %v2594_v55  ;;  %1402 = vmatpush.msra.mxu1 %v2600_v38  ;;  %v3493_v55 = vld [vmem:[#allocation5_spill] sm:$0xff]  ;;  %v3494_v38 = vld [vmem:[#allocation4_spill] sm:$0xff] }
 0x39f   :  { %1422 = vmatpush.msra.mxu2 %v2606_v39  ;;  %1442 = vmatpush.msra.mxu3 %v2612_v45  ;;  %v3495_v39 = vld [vmem:[#allocation6_spill] sm:$0xff]  ;;  %v3496_v45 = vld [vmem:[#allocation7_spill] sm:$0xff] }
 0x3a0   :  { %1383 = vmatpush.msra.mxu0 %v2618_v46  ;;  %1403 = vmatpush.msra.mxu1 %v2624_v47  ;;  %v3497_v46 = vld [vmem:[#allocation9_spill] sm:$0xff]  ;;  %v3498_v47 = vld [vmem:[#allocation8_spill] sm:$0xff] }
 0x3a1   :  { %1423 = vmatpush.msra.mxu2 %v2630_v48  ;;  %1443 = vmatpush.msra.mxu3 %v2636_v49  ;;  %v3499_v48 = vld [vmem:[#allocation10_spill] sm:$0xff]  ;;  %v3500_v49 = vld [vmem:[#allocation11_spill] sm:$0xff] }
 0x3a2   :  { %1384 = vmatpush.msra.mxu0 %v2642_v50  ;;  %1404 = vmatpush.msra.mxu1 %v2648_v51  ;;  %v3501_v50 = vld [vmem:[#allocation13_spill] sm:$0xff]  ;;  %v3502_v51 = vld [vmem:[#allocation12_spill] sm:$0xff] }
 0x3a3   :  { %1424 = vmatpush.msra.mxu2 %v2654_v52  ;;  %1444 = vmatpush.msra.mxu3 %v2660_v53  ;;  %v3503_v52 = vld [vmem:[#allocation14_spill] sm:$0xff]  ;;  %v3504_v53 = vld [vmem:[#allocation15_spill] sm:$0xff] }
 0x3a4   :  { %1385 = vmatpush.msra.mxu0 %v2666_v54  ;;  %1405 = vmatpush.msra.mxu1 %v2672_v56  ;;  %v3505_v54 = vld [vmem:[#allocation17_spill] sm:$0xff]  ;;  %v3506_v56 = vld [vmem:[#allocation16_spill] sm:$0xff] }
 0x3a5   :  { %1425 = vmatpush.msra.mxu2 %v2678_v57  ;;  %1445 = vmatpush.msra.mxu3 %v2684_v58  ;;  %v3507_v57 = vld [vmem:[#allocation18_spill] sm:$0xff]  ;;  %v3508_v58 = vld [vmem:[#allocation19_spill] sm:$0xff] }
 0x3a6   :  { %1386 = vmatpush.msra.mxu0 %v2690_v59  ;;  %1406 = vmatpush.msra.mxu1 %v2696_v63  ;;  %v3509_v59 = vld [vmem:[#allocation21_spill] sm:$0xff]  ;;  %v3510_v63 = vld [vmem:[#allocation20_spill] sm:$0xff] }
 0x3a7   :  { %1426 = vmatpush.msra.mxu2 %v2702_v7  ;;  %1446 = vmatpush.msra.mxu3 %v2708_v62  ;;  %v3511_v7 = vld [vmem:[#allocation22_spill] sm:$0xff]  ;;  %v3512_v62 = vld [vmem:[#allocation23_spill] sm:$0xff] }
 0x3a8   :  { %1387 = vmatpush.msra.mxu0 %v2714_v12  ;;  %1407 = vmatpush.msra.mxu1 %v2720_v29  ;;  %v3513_v12 = vld [vmem:[#allocation24_spill] sm:$0xff]  ;;  %v3514_v29 = vld [vmem:[#allocation25_spill] sm:$0xff] }
 0x3a9   :  { %1427 = vmatpush.msra.mxu2 %v2726_v9  ;;  %1447 = vmatpush.msra.mxu3 %v2732_v4  ;;  %v3515_v9 = vld [vmem:[#allocation26_spill] sm:$0xff]  ;;  %v3516_v4 = vld [vmem:[#allocation27_spill] sm:$0xff] }
 0x3aa   :  { %1388 = vmatpush.msra.mxu0 %v2738_v2  ;;  %1408 = vmatpush.msra.mxu1 %v2744_v16  ;;  %v3517_v2 = vld [vmem:[#allocation28_spill] sm:$0xff]  ;;  %v3518_v16 = vld [vmem:[#allocation29_spill] sm:$0xff] }
 0x3ab   :  { %1428 = vmatpush.msra.mxu2 %v2750_v1  ;;  %1448 = vmatpush.msra.mxu3 %v2756_v60 }
 0x3ac   :  { %1389 = vmatpush.msra.mxu0 %v2762_v61  ;;  %1409 = vmatpush.msra.mxu1 %v2768_v15  ;;  %v3519_v61 = vld [vmem:[#allocation46_spill] sm:$0xff] }
 0x3ad   :  { %1429 = vmatpush.msra.mxu2 %v2774_v3  ;;  %1449 = vmatpush.msra.mxu3 %v2780_v42  ;;  %v3520_v3 = vld [vmem:[#allocation47_spill] sm:$0xff] }
 0x3ae   :  { %1390 = vmatpush.msra.mxu0 %v2786_v5  ;;  %1410 = vmatpush.msra.mxu1 %v2792_v0 }
 0x3af   :  { %1430 = vmatpush.msra.mxu2 %v2798_v8  ;;  %1450 = vmatpush.msra.mxu3 %v2804_v13  ;;  %v3521_v13 = vld [vmem:[#allocation49_spill] sm:$0xff] }
 0x3b0   :  { %1391 = vmatpush.msra.mxu0 %v2810_v6  ;;  %1411 = vmatpush.msra.mxu1 %v2816_v14 }
 0x3b1   :  { %1431 = vmatpush.msra.mxu2 %v3493_v55  ;;  %1451 = vmatpush.msra.mxu3 %v3494_v38 }
 0x3b2   :  { %1392 = vmatpush.msra.mxu0 %v3495_v39  ;;  %1412 = vmatpush.msra.mxu1 %v3496_v45 }
 0x3b3   :  { %1432 = vmatpush.msra.mxu2 %v3497_v46  ;;  %1452 = vmatpush.msra.mxu3 %v3498_v47 }
 0x3b4   :  { %1393 = vmatpush.msra.mxu0 %v3499_v48  ;;  %1413 = vmatpush.msra.mxu1 %v3500_v49 }
 0x3b5   :  { %1433 = vmatpush.msra.mxu2 %v3501_v50  ;;  %1453 = vmatpush.msra.mxu3 %v3502_v51 }
 0x3b6   :  { %1394 = vmatpush.msra.mxu0 %v3503_v52  ;;  %1414 = vmatpush.msra.mxu1 %v3504_v53 }
 0x3b7   :  { %1434 = vmatpush.msra.mxu2 %v3505_v54  ;;  %1454 = vmatpush.msra.mxu3 %v3506_v56 }
 0x3b8   :  { %1395 = vmatpush.msra.mxu0 %v3507_v57  ;;  %1415 = vmatpush.msra.mxu1 %v3508_v58 }
 0x3b9   :  { %1435 = vmatpush.msra.mxu2 %v3509_v59  ;;  %1455 = vmatpush.msra.mxu3 %v3510_v63 }
 0x3ba   :  { %1396 = vmatpush.msra.mxu0 %v3511_v7  ;;  %1416 = vmatpush.msra.mxu1 %v3512_v62 }
 0x3bb   :  { %1436 = vmatpush.msra.mxu2 %v3513_v12  ;;  %1456 = vmatpush.msra.mxu3 %v3514_v29  ;;  %v3523_v29 = vld [vmem:[#allocation50_spill] sm:$0xff] }
 0x3bc   :  { %1397 = vmatpush.msra.mxu0 %v3515_v9  ;;  %1417 = vmatpush.msra.mxu1 %v3516_v4  ;;  %v3524_v4 = vld [vmem:[#allocation51_spill] sm:$0xff] }
 0x3bd   :  { %1437 = vmatpush.msra.mxu2 %v3517_v2  ;;  %1457 = vmatpush.msra.mxu3 %v3518_v16 }
 0x419   :  { %v1093_v1 = vpop.f32.mrf.mxu0  ;;  %v1113_v60 = vpop.f32.mrf.mxu1 }
 0x41a   :  { %v1156_v15 = vadd.f32 %v1093_v1, %v3519_v61  ;;  %v1157_v42 = vadd.f32 %v1113_v60, %v3520_v3  ;;  %v3525_v61 = vld [vmem:[#allocation53_spill] sm:$0xff] }
 0x41c   :  { %v1588_v5 = vmul.f32 -1.442695, %v1156_v15  ;;  %v1589_v0 = vmul.f32 -1.442695, %v1157_v42 }
 0x41e   :  { %1681 = vpow2.f32 %v1588_v5 }
 0x41f   :  { %1683 = vpow2.f32 %v1589_v0 }
 0x420   :  { %v1153_v8 = vpop.f32.mrf.mxu3  ;;  %v1133_v11 = vpop.f32.mrf.mxu2 }
 0x421   :  { %v1159_v6 = vadd.f32 %v1153_v8, %v3521_v13  ;;  %v1158_v19 = vadd.f32 %v1133_v11, %v3522_v27 }
 0x423   :  { %v1590_v14 = vmul.f32 -1.442695, %v1159_v6 }
 0x424   :  { %v1682_v44 = vpop.eup %1681 }
 0x425   :  { %v1684_v23 = vpop.eup %1683  ;;  %v1163_v28 = vadd.f32 1.0, %v1682_v44  ;;  %1685 = vpow2.f32 %v1590_v14 }
 0x426   :  { %v1182_v10 = vadd.f32 1.0, %v1684_v23  ;;  %v3526_v23 = vld [vmem:[#allocation52_spill] sm:$0xff] }
 0x427   :  { %1687 = vrcp.f32 %v1163_v28  ;;  %v1175_v31 = vand.u32 2147483648, %v1163_v28  ;;  %v1173_v43 = vand.u32 2147483647, %v1163_v28  ;;  %vm1169_vm15 = vweird.f32 %v1163_v28 }
 0x428   :  { %1689 = vrcp.f32 %v1182_v10  ;;  %v1194_v40 = vand.u32 2147483648, %v1182_v10  ;;  %v1192_v35 = vand.u32 2147483647, %v1182_v10  ;;  %vm1188_vm0 = vweird.f32 %v1182_v10 }
 0x429   :  { %v1176_v17 = vor.u32 1.1754944e-38, %v1175_v31  ;;  %vm1174_vm3 = vcmp.eq.f32.partialorder %v1173_v43, 8.507059e+37 }
 0x42a   :  { %v1195_v38 = vor.u32 1.1754944e-38, %v1194_v40  ;;  %vm1193_vm4 = vcmp.eq.f32.partialorder %v1192_v35, 8.507059e+37 }
 0x42b   :  { %v1686_v20 = vpop.eup %1685 }
 0x42c   :  { %v1202_v25 = vadd.f32 1.0, %v1686_v20 }
 0x42d   :  { %v1688_v18 = vpop.eup %1687 }
 0x42e   :  { %v1690_v26 = vpop.eup %1689  ;;  %v1165_v24 = vmul.f32 %v1688_v18, %v1163_v28  ;;  %1691 = vrcp.f32 %v1202_v25  ;;  %vm1170_vm13 = vweird.f32 %v1688_v18  ;;  %v1214_v56 = vand.u32 2147483648, %v1202_v25 }
 0x42f   :  { %v1184_v37 = vmul.f32 %v1690_v26, %v1182_v10  ;;  %1693 = vtanh.f32 %v1158_v19  ;;  %vm1189_vm14 = vweird.f32 %v1690_v26  ;;  %vm1171_vm1 = vmor %vm1169_vm15, %vm1170_vm13  ;;  %vm1208_vm6 = vweird.f32 %v1202_v25 }
 0x430   :  { %v1166_v30 = vsub.f32 1.0, %v1165_v24  ;;  %vm1190_vm2 = vmor %vm1188_vm0, %vm1189_vm14  ;;  %v1212_v57 = vand.u32 2147483647, %v1202_v25  ;;  %v1215_v59 = vor.u32 1.1754944e-38, %v1214_v56 }
 0x431   :  { %v1185_v21 = vsub.f32 1.0, %v1184_v37 }
 0x432   :  { %v1167_v34 = vmul.f32 %v1688_v18, %v1166_v30  ;;  %vm1213_vm8 = vcmp.eq.f32.partialorder %v1212_v57, 8.507059e+37 }
 0x433   :  { %v1186_v32 = vmul.f32 %v1690_v26, %v1185_v21 }
 0x434   :  { %v1692_v33 = vpop.eup %1691  ;;  %v1168_v36 = vadd.f32 %v1688_v18, %v1167_v34 }
 0x435   :  { %v1187_v22 = vadd.f32 %v1690_v26, %v1186_v32  ;;  %v1204_v55 = vmul.f32 %v1692_v33, %v1202_v25  ;;  %v1694_v45 = vpop.eup %1693  ;;  %vm1209_vm5 = vweird.f32 %v1692_v33 }
 0x436   :  { %v1172_v39 = vsel %vm1171_vm1, %v1688_v18, %v1168_v36  ;;  %vm1210_vm7 = vmor %vm1208_vm6, %vm1209_vm5 }
 0x437   :  { %v1177_v46 = vsel %vm1174_vm3, %v1176_v17, %v1172_v39  ;;  %v1191_v47 = vsel %vm1190_vm2, %v1690_v26, %v1187_v22  ;;  %v1205_v48 = vsub.f32 1.0, %v1204_v55 }
 0x438   :  { %v1196_v49 = vsel %vm1193_vm4, %v1195_v38, %v1191_v47  ;;  %v1219_v50 = vmul.f32 %v1694_v45, %v1177_v46 }
 0x439   :  { %v1218_v51 = vmul.f32 %v1196_v49, %v3130_v41  ;;  %v1206_v52 = vmul.f32 %v1692_v33, %v1205_v48 }
 0x43b   :  { %v3205_v53 = vadd.f32 %v1219_v50, %v1218_v51  ;;  %v1207_v54 = vadd.f32 %v1692_v33, %v1206_v52 }
 0x43d   :  { %1695 = vtanh.f32 %v3205_v53  ;;  %v1211_v58 = vsel %vm1210_vm7, %v1692_v33, %v1207_v54 }
 0x43e   :  { %v1216_v7 = vsel %vm1213_vm8, %v1215_v59, %v1211_v58  ;;  %v3527_v58 = vld [vmem:[#allocation54_spill] sm:$0xff] }
 0x443   :  { %v1696_v63 = vpop.eup %1695 }
 0x444   :  { %v1222_v62 = vmul.f32 %v1696_v63, %v1216_v7  ;;  %v3528_v63 = vld [vmem:[#allocation55_spill] sm:$0xff] }
 0x446   :  { %1591 = vst [vmem:[%s3234_s4 + $0x28] sm:$0xff] %v1222_v62  ;;  %1245 = vmatmul.f32.vlgmr.msrb.gmra.mxu0 %v1222_v62  ;;  %1265 = vmatmul.f32.vlgmr.msrb.gmra.mxu1 %v1222_v62 }
 0x447   :  { %1285 = vmatmul.f32.vlgmr.msrb.gmra.mxu2 %v1222_v62  ;;  %1305 = vmatmul.f32.vlgmr.msrb.gmra.mxu3 %v1222_v62 }
 0x4c3   :  { %v1246_v41 = vpop.f32.mrf.mxu0  ;;  %v1266_v12 = vpop.f32.mrf.mxu1 }
 0x4c4   :  { %v1309_v9 = vadd.f32 %v1246_v41, %v3523_v29  ;;  %v1310_v2 = vadd.f32 %v1266_v12, %v3524_v4  ;;  %v3529_v29 = vld [vmem:[#allocation57_spill] sm:$0xff] }
 0x4c6   :  { %v1592_v16 = vmul.f32 -1.442695, %v1309_v9  ;;  %v1593_v1 = vmul.f32 -1.442695, %v1310_v2 }
 0x4c8   :  { %1697 = vpow2.f32 %v1592_v16 }
 0x4c9   :  { %1699 = vpow2.f32 %v1593_v1 }
 0x4ca   :  { %v1306_v60 = vpop.f32.mrf.mxu3  ;;  %v1286_v13 = vpop.f32.mrf.mxu2 }
 0x4cb   :  { %v1312_v15 = vadd.f32 %v1306_v60, %v3525_v61  ;;  %v1311_v28 = vadd.f32 %v1286_v13, %v3526_v23 }
 0x4cd   :  { %v1594_v3 = vmul.f32 -1.442695, %v1312_v15 }
 0x4ce   :  { %v1698_v42 = vpop.eup %1697 }
 0x4cf   :  { %v1700_v5 = vpop.eup %1699  ;;  %v1316_v0 = vadd.f32 1.0, %v1698_v42  ;;  %1701 = vpow2.f32 %v1594_v3 }
 0x4d0   :  { %v1335_v8 = vadd.f32 1.0, %v1700_v5  ;;  %v3530_v5 = vld [vmem:[#allocation56_spill] sm:$0xff] }
 0x4d1   :  { %1703 = vrcp.f32 %v1316_v0  ;;  %v1328_v27 = vand.u32 2147483648, %v1316_v0  ;;  %v1326_v24 = vand.u32 2147483647, %v1316_v0  ;;  %vm1322_vm11 = vweird.f32 %v1316_v0 }
 0x4d2   :  { %1705 = vrcp.f32 %v1335_v8  ;;  %v1347_v19 = vand.u32 2147483648, %v1335_v8  ;;  %v1345_v30 = vand.u32 2147483647, %v1335_v8  ;;  %vm1341_vm12 = vweird.f32 %v1335_v8 }
 0x4d3   :  { %v1329_v40 = vor.u32 1.1754944e-38, %v1328_v27  ;;  %vm1327_vm15 = vcmp.eq.f32.partialorder %v1326_v24, 8.507059e+37 }
 0x4d4   :  { %v1348_v32 = vor.u32 1.1754944e-38, %v1347_v19  ;;  %vm1346_vm0 = vcmp.eq.f32.partialorder %v1345_v30, 8.507059e+37 }
 0x4d5   :  { %v1702_v6 = vpop.eup %1701 }
 0x4d6   :  { %v1355_v14 = vadd.f32 1.0, %v1702_v6 }
 0x4d7   :  { %v1704_v44 = vpop.eup %1703 }
 0x4d8   :  { %v1706_v10 = vpop.eup %1705  ;;  %v1318_v11 = vmul.f32 %v1704_v44, %v1316_v0  ;;  %1707 = vrcp.f32 %v1355_v14  ;;  %vm1323_vm9 = vweird.f32 %v1704_v44  ;;  %v1367_v48 = vand.u32 2147483648, %v1355_v14 }
 0x4d9   :  { %v1337_v20 = vmul.f32 %v1706_v10, %v1335_v8  ;;  %1709 = vtanh.f32 %v1311_v28  ;;  %vm1342_vm10 = vweird.f32 %v1706_v10  ;;  %vm1324_vm13 = vmor %vm1322_vm11, %vm1323_vm9  ;;  %vm1361_vm2 = vweird.f32 %v1355_v14 }
 0x4da   :  { %v1319_v25 = vsub.f32 1.0, %v1318_v11  ;;  %vm1343_vm14 = vmor %vm1341_vm12, %vm1342_vm10  ;;  %v1365_v49 = vand.u32 2147483647, %v1355_v14  ;;  %v1368_v51 = vor.u32 1.1754944e-38, %v1367_v48 }
 0x4db   :  { %v1338_v18 = vsub.f32 1.0, %v1337_v20 }
 0x4dc   :  { %v1320_v26 = vmul.f32 %v1704_v44, %v1319_v25  ;;  %vm1366_vm4 = vcmp.eq.f32.partialorder %v1365_v49, 8.507059e+37 }
 0x4dd   :  { %v1339_v37 = vmul.f32 %v1706_v10, %v1338_v18 }
 0x4de   :  { %v1708_v21 = vpop.eup %1707  ;;  %v1321_v31 = vadd.f32 %v1704_v44, %v1320_v26 }
 0x4df   :  { %v1340_v34 = vadd.f32 %v1706_v10, %v1339_v37  ;;  %v1357_v43 = vmul.f32 %v1708_v21, %v1355_v14  ;;  %v1710_v33 = vpop.eup %1709  ;;  %vm1362_vm1 = vweird.f32 %v1708_v21 }
 0x4e0   :  { %v1325_v35 = vsel %vm1324_vm13, %v1704_v44, %v1321_v31  ;;  %vm1363_vm3 = vmor %vm1361_vm2, %vm1362_vm1 }
 0x4e1   :  { %v1330_v36 = vsel %vm1327_vm15, %v1329_v40, %v1325_v35  ;;  %v1344_v17 = vsel %vm1343_vm14, %v1706_v10, %v1340_v34  ;;  %v1358_v22 = vsub.f32 1.0, %v1357_v43 }
 0x4e2   :  { %v1349_v55 = vsel %vm1346_vm0, %v1348_v32, %v1344_v17  ;;  %v1372_v38 = vmul.f32 %v1710_v33, %v1330_v36 }
 0x4e3   :  { %v1371_v39 = vmul.f32 %v1349_v55, %v3205_v53  ;;  %v1359_v45 = vmul.f32 %v1708_v21, %v1358_v22 }
 0x4e5   :  { %v3216_v46 = vadd.f32 %v1372_v38, %v1371_v39  ;;  %v1360_v47 = vadd.f32 %v1708_v21, %v1359_v45 }
 0x4e7   :  { %1711 = vtanh.f32 %v3216_v46  ;;  %v1364_v50 = vsel %vm1363_vm3, %v1708_v21, %v1360_v47 }
 0x4e8   :  { %v1369_v54 = vsel %vm1366_vm4, %v1368_v51, %v1364_v50 }
 0x4ed   :  { %v1712_v52 = vpop.eup %1711 }
 0x4ee   :  { %v1375_v56 = vmul.f32 %v1712_v52, %v1369_v54 }
 0x4f0   :  { %1595 = vst [vmem:[%s3234_s4 + $0x30] sm:$0xff] %v1375_v56  ;;  %1398 = vmatmul.f32.vlgmr.msra.gmra.mxu0 %v1375_v56  ;;  %1418 = vmatmul.f32.vlgmr.msra.gmra.mxu1 %v1375_v56 }
 0x4f1   :  { %1438 = vmatmul.f32.vlgmr.msra.gmra.mxu2 %v1375_v56  ;;  %1458 = vmatmul.f32.vlgmr.msra.gmra.mxu3 %v1375_v56 }
 0x56d   :  { %v1399_v53 = vpop.f32.mrf.mxu0  ;;  %v1419_v57 = vpop.f32.mrf.mxu1 }
 0x56e   :  { %v1462_v59 = vadd.f32 %v1399_v53, %v3527_v58  ;;  %v1463_v7 = vadd.f32 %v1419_v57, %v3528_v63 }
 0x570   :  { %v1596_v62 = vmul.f32 -1.442695, %v1462_v59  ;;  %v1597_v41 = vmul.f32 -1.442695, %v1463_v7 }
 0x572   :  { %1713 = vpow2.f32 %v1596_v62 }
 0x573   :  { %1715 = vpow2.f32 %v1597_v41 }
 0x574   :  { %v1459_v12 = vpop.f32.mrf.mxu3  ;;  %v1439_v61 = vpop.f32.mrf.mxu2 }
 0x575   :  { %v1465_v9 = vadd.f32 %v1459_v12, %v3529_v29  ;;  %v1464_v0 = vadd.f32 %v1439_v61, %v3530_v5 }
 0x577   :  { %v1598_v4 = vmul.f32 -1.442695, %v1465_v9 }
 0x578   :  { %v1714_v2 = vpop.eup %1713 }
 0x579   :  { %v1716_v16 = vpop.eup %1715  ;;  %v1469_v1 = vadd.f32 1.0, %v1714_v2  ;;  %1717 = vpow2.f32 %v1598_v4 }
 0x57a   :  { %v1488_v60 = vadd.f32 1.0, %v1716_v16 }
 0x57b   :  { %1719 = vrcp.f32 %v1469_v1  ;;  %v1481_v23 = vand.u32 2147483648, %v1469_v1  ;;  %v1479_v11 = vand.u32 2147483647, %v1469_v1  ;;  %vm1475_vm7 = vweird.f32 %v1469_v1 }
 0x57c   :  { %1721 = vrcp.f32 %v1488_v60  ;;  %v1500_v28 = vand.u32 2147483648, %v1488_v60  ;;  %v1498_v25 = vand.u32 2147483647, %v1488_v60  ;;  %vm1494_vm8 = vweird.f32 %v1488_v60 }
 0x57d   :  { %v1482_v19 = vor.u32 1.1754944e-38, %v1481_v23  ;;  %vm1480_vm11 = vcmp.eq.f32.partialorder %v1479_v11, 8.507059e+37 }
 0x57e   :  { %v1501_v37 = vor.u32 1.1754944e-38, %v1500_v28  ;;  %vm1499_vm12 = vcmp.eq.f32.partialorder %v1498_v25, 8.507059e+37 }
 0x57f   :  { %v1718_v15 = vpop.eup %1717 }
 0x580   :  { %v1508_v3 = vadd.f32 1.0, %v1718_v15 }
 0x581   :  { %v1720_v42 = vpop.eup %1719 }
 0x582   :  { %v1722_v8 = vpop.eup %1721  ;;  %v1471_v13 = vmul.f32 %v1720_v42, %v1469_v1  ;;  %1723 = vrcp.f32 %v1508_v3  ;;  %vm1476_vm5 = vweird.f32 %v1720_v42  ;;  %v1520_v22 = vand.u32 2147483648, %v1508_v3 }
 0x583   :  { %v1490_v6 = vmul.f32 %v1722_v8, %v1488_v60  ;;  %1725 = vtanh.f32 %v1464_v0  ;;  %vm1495_vm6 = vweird.f32 %v1722_v8  ;;  %vm1477_vm9 = vmor %vm1475_vm7, %vm1476_vm5  ;;  %vm1514_vm14 = vweird.f32 %v1508_v3 }
 0x584   :  { %v1472_v14 = vsub.f32 1.0, %v1471_v13  ;;  %vm1496_vm10 = vmor %vm1494_vm8, %vm1495_vm6  ;;  %v1518_v55 = vand.u32 2147483647, %v1508_v3  ;;  %v1521_v39 = vor.u32 1.1754944e-38, %v1520_v22 }
 0x585   :  { %v1491_v44 = vsub.f32 1.0, %v1490_v6 }
 0x586   :  { %v1473_v10 = vmul.f32 %v1720_v42, %v1472_v14  ;;  %vm1519_vm0 = vcmp.eq.f32.partialorder %v1518_v55, 8.507059e+37 }
 0x587   :  { %v1492_v20 = vmul.f32 %v1722_v8, %v1491_v44 }
 0x588   :  { %v1724_v18 = vpop.eup %1723  ;;  %v1474_v27 = vadd.f32 %v1720_v42, %v1473_v10 }
 0x589   :  { %v1493_v26 = vadd.f32 %v1722_v8, %v1492_v20  ;;  %v1510_v24 = vmul.f32 %v1724_v18, %v1508_v3  ;;  %v1726_v21 = vpop.eup %1725  ;;  %vm1515_vm13 = vweird.f32 %v1724_v18 }
 0x58a   :  { %v1478_v30 = vsel %vm1477_vm9, %v1720_v42, %v1474_v27  ;;  %vm1516_vm15 = vmor %vm1514_vm14, %vm1515_vm13 }
 0x58b   :  { %v1483_v31 = vsel %vm1480_vm11, %v1482_v19, %v1478_v30  ;;  %v1497_v40 = vsel %vm1496_vm10, %v1722_v8, %v1493_v26  ;;  %v1511_v34 = vsub.f32 1.0, %v1510_v24 }
 0x58c   :  { %v1502_v43 = vsel %vm1499_vm12, %v1501_v37, %v1497_v40  ;;  %v1525_v32 = vmul.f32 %v1726_v21, %v1483_v31 }
 0x58d   :  { %v1524_v35 = vmul.f32 %v1502_v43, %v3216_v46  ;;  %v1512_v33 = vmul.f32 %v1724_v18, %v1511_v34 }
 0x58f   :  { %v1526_v36 = vadd.f32 %v1525_v32, %v1524_v35  ;;  %v1513_v17 = vadd.f32 %v1724_v18, %v1512_v33 }
 0x591   :  { %1727 = vtanh.f32 %v1526_v36  ;;  %v1517_v38 = vsel %vm1516_vm15, %v1724_v18, %v1513_v17 }
 0x592   :  { %v1522_v47 = vsel %vm1519_vm0, %v1521_v39, %v1517_v38 }
 0x597   :  { %v1728_v45 = vpop.eup %1727 }
 0x598   :  { %v1528_v48 = vmul.f32 %v1728_v45, %v1522_v47 }
 0x59a   :  { %1599 = vst [vmem:[%s3234_s4 + $0x38] sm:$0xff] %v1528_v48 }

</bundles_post_ra>
